<compile_context>
chip_gen: v7x
topology: tpu7x:2x2x1
jax: 0.10.0
libtpu: 0.0.40
codegen_flags: <defaults>
</compile_context>

<pallas_src>
import numpy as np
import jax
import jax.numpy as jnp
from jax import lax
from jax.experimental import pallas as pl
from jax.experimental.pallas import tpu as pltpu


# ----------------------------- fused Pallas kernel ------------------------------

def _net_kernel(x_ref, w1t_ref, b1_ref, w2t_ref, b2_ref,
                wfc1_ref, bfc1_ref, wfc2_ref, bfc2_ref, o_ref):
    B = o_ref.shape[0]
    x = x_ref[...]                                                 # (28, B, 28) bf16

    # ---- conv1: Toeplitz-over-width, 5 kh-accumulated MXU dots -> (24*B, 512) f32 ----
    # result lanes = [even-wo block (240) | 0-pad | odd-wo block (240) | 0-pad]
    acc1 = jnp.dot(x[0:24].reshape(24 * B, 28), w1t_ref[0],
                   preferred_element_type=jnp.float32)
    for kh in range(1, 5):
        acc1 = acc1 + jnp.dot(x[kh:kh + 24].reshape(24 * B, 28), w1t_ref[kh],
                              preferred_element_type=jnp.float32)

    # ---- 2x2 max-pool: H via leading-dim reshape, W via aligned even/odd halves.
    #      bias + ReLU after the pool (per-channel bias & monotone ReLU commute). ----
    a1 = jnp.max(acc1.reshape(12, 2, B, 512), axis=1)              # (12, B, 512)
    p1 = jnp.maximum(a1[:, :, 0:256], a1[:, :, 256:512])
    p1 = jnp.maximum(p1 + b1_ref[...], 0.0).astype(jnp.bfloat16)   # (12, B, 256); lanes 240..255 == 0

    # ---- conv2: same pattern, lane-dense K=256 per kh tap group ----
    acc2 = jnp.dot(p1[0:8].reshape(8 * B, 256), w2t_ref[0],
                   preferred_element_type=jnp.float32)
    for kh in range(1, 5):
        acc2 = acc2 + jnp.dot(p1[kh:kh + 8].reshape(8 * B, 256), w2t_ref[kh],
                              preferred_element_type=jnp.float32)

    a2 = jnp.max(acc2.reshape(4, 2, B, 512), axis=1)               # (4, B, 512)
    p2 = jnp.maximum(a2[:, :, 0:256], a2[:, :, 256:512])
    p2 = jnp.maximum(p2 + b2_ref[...], 0.0).astype(jnp.bfloat16)   # (4, B, 256); lanes 200..255 == 0

    # ---- fc1 (800->500): 4 accumulated K=256 dots; the PyTorch NCHW flatten order is
    #      baked into the host-side weight permutation (zero rows under the pad lanes) ----
    h = jnp.dot(p2[0], wfc1_ref[0], preferred_element_type=jnp.float32)
    for i in range(1, 4):
        h = h + jnp.dot(p2[i], wfc1_ref[i], preferred_element_type=jnp.float32)
    h = jnp.maximum(h + bfc1_ref[...], 0.0).astype(jnp.bfloat16)   # (B, 500)

    # ---- fc2 (500->10) + log_softmax ----
    y = jnp.dot(h, wfc2_ref[...], preferred_element_type=jnp.float32) + bfc2_ref[...]
    m = jnp.max(y, axis=-1, keepdims=True)
    s = y - m
    lse = jnp.log(jnp.sum(jnp.exp(s), axis=-1, keepdims=True))
    o_ref[...] = (s - lse).astype(o_ref.dtype)


# ----------------------------- wrapper ------------------------------

def _pick_b_tile(n):
    # 32 images/step amortizes per-step overhead and fills the MXU M dim; 16 for small
    # batches so batches in (16, 64) still give >=2 grid steps (v7x has 2 TensorCores
    # sharing the "parallel" grid axis).  Multiples of 16 keep bf16 sublane packing
    # aligned for the in-kernel (H, B, W) -> (H*B, W) merges.
    return 32 if n >= 64 else 16


def net_forward(x_nchw, params):
    """x_nchw: (N, 1, 28, 28) f32 -> (N, 10) log-probabilities."""
    N = x_nchw.shape[0]
    assert x_nchw.shape[1:] == (1, 28, 28), x_nchw.shape
    bt = _pick_b_tile(N)
    n_pad = ((N + bt - 1) // bt) * bt

    x = x_nchw[:, 0]                                    # (N, 28, 28)
    if n_pad != N:
        x = jnp.pad(x, ((0, n_pad - N), (0, 0), (0, 0)))
    # Raw image, batch in the sublane dim, width in lanes; bf16 halves the DMA stream.
    xr = jnp.transpose(x, (1, 0, 2)).astype(jnp.bfloat16)          # (28, Npad, 28)

    out = pl.pallas_call(
        _net_kernel,
        out_shape=jax.ShapeDtypeStruct((n_pad, 10), jnp.float32),
        grid=(n_pad // bt,),
        in_specs=[
            pl.BlockSpec((28, bt, 28), lambda i: (0, i, 0)),       # raw image tile
            pl.BlockSpec((5, 28, 512), lambda i: (0, 0, 0)),       # conv1 Toeplitz weights
            pl.BlockSpec((1, 256), lambda i: (0, 0)),              # conv1 bias (tiled, padded)
            pl.BlockSpec((5, 256, 512), lambda i: (0, 0, 0)),      # conv2 Toeplitz weights
            pl.BlockSpec((1, 256), lambda i: (0, 0)),              # conv2 bias (tiled, padded)
            pl.BlockSpec((4, 256, 500), lambda i: (0, 0, 0)),      # fc1 (pos-major, padded K)
            pl.BlockSpec((1, 500), lambda i: (0, 0)),              # fc1 bias
            pl.BlockSpec((500, 10), lambda i: (0, 0)),             # fc2
            pl.BlockSpec((1, 10), lambda i: (0, 0)),               # fc2 bias
        ],
        out_specs=pl.BlockSpec((bt, 10), lambda i: (i, 0)),
        compiler_params=pltpu.CompilerParams(
            dimension_semantics=("parallel",),
            vmem_limit_bytes=48 * 1024 * 1024),
    )(xr,
      params["w1t"], params["b1"], params["w2t"], params["b2"],
      params["wfc1"], params["bfc1"], params["wfc2"], params["bfc2"])
    return out[:N]


# ----------------------------- parameters ------------------------------

def init_torch_params(key):
    """Random params in the native PyTorch layouts."""
    ks = jax.random.split(key, 8)

    def u(k, shape, fan_in):
        bound = 1.0 / float(fan_in) ** 0.5
        return jax.random.uniform(k, shape, jnp.float32, -bound, bound)

    return {
        "conv1.weight": u(ks[0], (20, 1, 5, 5), 25),
        "conv1.bias":   u(ks[1], (20,), 25),
        "conv2.weight": u(ks[2], (50, 20, 5, 5), 500),
        "conv2.bias":   u(ks[3], (50,), 500),
        "fc1.weight":   u(ks[4], (500, 800), 800),
        "fc1.bias":     u(ks[5], (500,), 800),
        "fc2.weight":   u(ks[6], (10, 500), 500),
        "fc2.bias":     u(ks[7], (10,), 500),
    }


def prepare_params(tp):
    """One-time host-side repack of PyTorch-layout weights into kernel layouts.

    Conv weights become "Toeplitz-over-width" matrices: for each kernel row kh, a
    (W_in*C_in, 512) matrix whose columns are (output-column, output-channel) pairs,
    split into even-wo / odd-wo halves each padded to a 256-lane block so the 2x2
    W-pool in the kernel is a max of two vreg-aligned slices.  fc1 weights are
    reordered so PyTorch's NCHW flatten is reproduced without any in-kernel transpose.
    MXU operands are stored as bf16; biases stay f32 (pre-tiled to the lane layout).
    """
    w1 = np.asarray(tp["conv1.weight"], np.float32)    # (20, 1, 5, 5)
    b1 = np.asarray(tp["conv1.bias"], np.float32)
    w2 = np.asarray(tp["conv2.weight"], np.float32)    # (50, 20, 5, 5)
    b2 = np.asarray(tp["conv2.bias"], np.float32)
    fc1w = np.asarray(tp["fc1.weight"], np.float32)    # (500, 800)
    fc1b = np.asarray(tp["fc1.bias"], np.float32)
    fc2w = np.asarray(tp["fc2.weight"], np.float32)    # (10, 500)
    fc2b = np.asarray(tp["fc2.bias"], np.float32)

    # conv1: columns = even wo block [0:240] | pad | odd wo block [256:496] | pad
    w1t = np.zeros((5, 28, 512), np.float32)
    for kh in range(5):
        for wo in range(24):
            col0 = (wo % 2) * 256 + (wo // 2) * 20
            for kw in range(5):
                w1t[kh, wo + kw, col0:col0 + 20] = w1[:, 0, kh, kw]
    b1r = np.zeros((1, 256), np.float32)
    b1r[0, :240] = np.tile(b1, 12)                     # lane = wo'*20 + co

    # conv2: rows = p1 lane order (w_in*20 + ci), cols = even/odd wo blocks of (wo, co2)
    w2t = np.zeros((5, 256, 512), np.float32)
    for kh in range(5):
        for wo in range(8):
            col0 = (wo % 2) * 256 + (wo // 2) * 50
            for kw in range(5):
                wi = wo + kw
                w2t[kh, wi * 20:(wi + 1) * 20, col0:col0 + 50] = w2[:, :, kh, kw].T
    b2r = np.zeros((1, 256), np.float32)
    b2r[0, :200] = np.tile(b2, 4)                      # lane = wo'*50 + co2

    # fc1: p2 lane order is (w*50 + c) per spatial row h; PyTorch flatten is c*16+h*4+w.
    wfc1 = np.zeros((4, 256, 500), np.float32)
    wfc1[:, :200, :] = (fc1w.reshape(500, 50, 4, 4)    # [f, c, h, w]
                        .transpose(2, 3, 1, 0)         # [h, w, c, f]
                        .reshape(4, 200, 500))
    return {
        "w1t":  jnp.asarray(w1t, jnp.bfloat16),
        "b1":   jnp.asarray(b1r),
        "w2t":  jnp.asarray(w2t, jnp.bfloat16),
        "b2":   jnp.asarray(b2r),
        "wfc1": jnp.asarray(wfc1, jnp.bfloat16),
        "bfc1": jnp.asarray(fc1b.reshape(1, 500)),
        "wfc2": jnp.asarray(fc2w.T, jnp.bfloat16),
        "bfc2": jnp.asarray(fc2b.reshape(1, 10)),
    }


# ----------------------------- pure-JAX reference ------------------------------

def net_reference(x, tp):
    """f32 reference of the PyTorch module (for validation)."""
    dn = ("NCHW", "OIHW", "NCHW")
    y = lax.conv_general_dilated(x, tp["conv1.weight"], (1, 1), "VALID",
                                 dimension_numbers=dn)
    y = jax.nn.relu(y + tp["conv1.bias"].reshape(1, 20, 1, 1))
    y = lax.reduce_window(y, -jnp.inf, lax.max, (1, 1, 2, 2), (1, 1, 2, 2), "VALID")
    y = lax.conv_general_dilated(y, tp["conv2.weight"], (1, 1), "VALID",
                                 dimension_numbers=dn)
    y = jax.nn.relu(y + tp["conv2.bias"].reshape(1, 50, 1, 1))
    y = lax.reduce_window(y, -jnp.inf, lax.max, (1, 1, 2, 2), (1, 1, 2, 2), "VALID")
    y = y.reshape(y.shape[0], -1)
    y = jax.nn.relu(y @ tp["fc1.weight"].T + tp["fc1.bias"])
    y = y @ tp["fc2.weight"].T + tp["fc2.bias"]
    return jax.nn.log_softmax(y, axis=-1)


if __name__ == "__main__":
    key = jax.random.PRNGKey(0)
    pkey, xkey = jax.random.split(key)
    torch_params = init_torch_params(pkey)
    params = prepare_params(torch_params)

    # 28x28 input is implied by fc1's 4*4*50 flatten; small batch of 2 (padded inside).
    x = jax.random.normal(xkey, (2, 1, 28, 28), jnp.float32)

    fwd = jax.jit(net_forward)
    out = jax.block_until_ready(fwd(x, params))

    assert out.shape == (2, 10), out.shape
    # log_softmax rows must exponentiate-sum to 1
    row_sums = jnp.sum(jnp.exp(out), axis=1)
    assert bool(jnp.all(jnp.abs(row_sums - 1.0) < 1e-3)), row_sums
    # match the f32 reference (bf16 MXU operands -> loose tolerance)
    ref = net_reference(x, torch_params)
    err = float(jnp.max(jnp.abs(out - ref)))
    assert err < 1e-1, err

    print("KERNEL_OK")
</pallas_src>

<mosaic_0001>
module attributes {stable_mosaic.version = 11 : i64} {
  func.func @_net_kernel(%arg0: i32, %arg1: memref<28x16x28xbf16, #tpu.memory_space<vmem>>, %arg2: memref<5x28x512xbf16, #tpu.memory_space<vmem>>, %arg3: memref<1x256xf32, #tpu.memory_space<vmem>>, %arg4: memref<5x256x512xbf16, #tpu.memory_space<vmem>>, %arg5: memref<1x256xf32, #tpu.memory_space<vmem>>, %arg6: memref<4x256x500xbf16, #tpu.memory_space<vmem>>, %arg7: memref<1x500xf32, #tpu.memory_space<vmem>>, %arg8: memref<500x10xbf16, #tpu.memory_space<vmem>>, %arg9: memref<1x10xf32, #tpu.memory_space<vmem>>, %arg10: memref<16x10xf32, #tpu.memory_space<vmem>>) attributes {dimension_semantics = [#tpu.dimension_semantics<parallel>], iteration_bounds = array<i64: 1>, scalar_prefetch = 0 : i64, scratch_operands = 0 : i64, tpu.core_type = #tpu.core_type<tc>, window_params = [{transform_indices = @transform_0, window_bounds = array<i64: 28, 16, 28>}, {pipeline_mode = #tpu.pipeline_mode<synchronous>, transform_indices = @transform_1, window_bounds = array<i64: 5, 28, 512>}, {pipeline_mode = #tpu.pipeline_mode<synchronous>, transform_indices = @transform_2, window_bounds = array<i64: 1, 256>}, {pipeline_mode = #tpu.pipeline_mode<synchronous>, transform_indices = @transform_3, window_bounds = array<i64: 5, 256, 512>}, {pipeline_mode = #tpu.pipeline_mode<synchronous>, transform_indices = @transform_4, window_bounds = array<i64: 1, 256>}, {pipeline_mode = #tpu.pipeline_mode<synchronous>, transform_indices = @transform_5, window_bounds = array<i64: 4, 256, 500>}, {pipeline_mode = #tpu.pipeline_mode<synchronous>, transform_indices = @transform_6, window_bounds = array<i64: 1, 500>}, {pipeline_mode = #tpu.pipeline_mode<synchronous>, transform_indices = @transform_7, window_bounds = array<i64: 500, 10>}, {pipeline_mode = #tpu.pipeline_mode<synchronous>, transform_indices = @transform_8, window_bounds = array<i64: 1, 10>}, {transform_indices = @transform_9, window_bounds = array<i64: 16, 10>}]} {
    %c0 = arith.constant 0 : index
    %c0_0 = arith.constant 0 : index
    %c0_1 = arith.constant 0 : index
    %0 = vector.load %arg1[%c0, %c0_0, %c0_1] : memref<28x16x28xbf16, #tpu.memory_space<vmem>>, vector<28x16x28xbf16>
    %1 = vector.extract_strided_slice %0 {offsets = [0, 0, 0], sizes = [24, 16, 28], strides = [1, 1, 1]} : vector<28x16x28xbf16> to vector<24x16x28xbf16>
    %2 = vector.shape_cast %1 : vector<24x16x28xbf16> to vector<384x28xbf16>
    %c0_2 = arith.constant 0 : index
    %c0_3 = arith.constant 0 : index
    %c0_4 = arith.constant 0 : index
    %3 = vector.load %arg2[%c0_2, %c0_3, %c0_4] : memref<5x28x512xbf16, #tpu.memory_space<vmem>>, vector<1x28x512xbf16>
    %4 = vector.shape_cast %3 : vector<1x28x512xbf16> to vector<28x512xbf16>
    %cst = arith.constant dense<0.000000e+00> : vector<384x512xf32>
    %5 = tpu.matmul %2, %4, %cst {dimension_numbers = #tpu.dot_dimension_numbers<[1], [0], [0], [1], [0, 0, 1, 1], [], []>} : vector<384x28xbf16>, vector<28x512xbf16>, vector<384x512xf32> -> vector<384x512xf32>
    %6 = vector.extract_strided_slice %0 {offsets = [1, 0, 0], sizes = [24, 16, 28], strides = [1, 1, 1]} : vector<28x16x28xbf16> to vector<24x16x28xbf16>
    %7 = vector.shape_cast %6 : vector<24x16x28xbf16> to vector<384x28xbf16>
    %c1 = arith.constant 1 : index
    %c0_5 = arith.constant 0 : index
    %c0_6 = arith.constant 0 : index
    %8 = vector.load %arg2[%c1, %c0_5, %c0_6] : memref<5x28x512xbf16, #tpu.memory_space<vmem>>, vector<1x28x512xbf16>
    %9 = vector.shape_cast %8 : vector<1x28x512xbf16> to vector<28x512xbf16>
    %cst_7 = arith.constant dense<0.000000e+00> : vector<384x512xf32>
    %10 = tpu.matmul %7, %9, %cst_7 {dimension_numbers = #tpu.dot_dimension_numbers<[1], [0], [0], [1], [0, 0, 1, 1], [], []>} : vector<384x28xbf16>, vector<28x512xbf16>, vector<384x512xf32> -> vector<384x512xf32>
    %11 = arith.addf %5, %10 : vector<384x512xf32>
    %12 = vector.extract_strided_slice %0 {offsets = [2, 0, 0], sizes = [24, 16, 28], strides = [1, 1, 1]} : vector<28x16x28xbf16> to vector<24x16x28xbf16>
    %13 = vector.shape_cast %12 : vector<24x16x28xbf16> to vector<384x28xbf16>
    %c2 = arith.constant 2 : index
    %c0_8 = arith.constant 0 : index
    %c0_9 = arith.constant 0 : index
    %14 = vector.load %arg2[%c2, %c0_8, %c0_9] : memref<5x28x512xbf16, #tpu.memory_space<vmem>>, vector<1x28x512xbf16>
    %15 = vector.shape_cast %14 : vector<1x28x512xbf16> to vector<28x512xbf16>
    %cst_10 = arith.constant dense<0.000000e+00> : vector<384x512xf32>
    %16 = tpu.matmul %13, %15, %cst_10 {dimension_numbers = #tpu.dot_dimension_numbers<[1], [0], [0], [1], [0, 0, 1, 1], [], []>} : vector<384x28xbf16>, vector<28x512xbf16>, vector<384x512xf32> -> vector<384x512xf32>
    %17 = arith.addf %11, %16 : vector<384x512xf32>
    %18 = vector.extract_strided_slice %0 {offsets = [3, 0, 0], sizes = [24, 16, 28], strides = [1, 1, 1]} : vector<28x16x28xbf16> to vector<24x16x28xbf16>
    %19 = vector.shape_cast %18 : vector<24x16x28xbf16> to vector<384x28xbf16>
    %c3 = arith.constant 3 : index
    %c0_11 = arith.constant 0 : index
    %c0_12 = arith.constant 0 : index
    %20 = vector.load %arg2[%c3, %c0_11, %c0_12] : memref<5x28x512xbf16, #tpu.memory_space<vmem>>, vector<1x28x512xbf16>
    %21 = vector.shape_cast %20 : vector<1x28x512xbf16> to vector<28x512xbf16>
    %cst_13 = arith.constant dense<0.000000e+00> : vector<384x512xf32>
    %22 = tpu.matmul %19, %21, %cst_13 {dimension_numbers = #tpu.dot_dimension_numbers<[1], [0], [0], [1], [0, 0, 1, 1], [], []>} : vector<384x28xbf16>, vector<28x512xbf16>, vector<384x512xf32> -> vector<384x512xf32>
    %23 = arith.addf %17, %22 : vector<384x512xf32>
    %24 = vector.extract_strided_slice %0 {offsets = [4, 0, 0], sizes = [24, 16, 28], strides = [1, 1, 1]} : vector<28x16x28xbf16> to vector<24x16x28xbf16>
    %25 = vector.shape_cast %24 : vector<24x16x28xbf16> to vector<384x28xbf16>
    %c4 = arith.constant 4 : index
    %c0_14 = arith.constant 0 : index
    %c0_15 = arith.constant 0 : index
    %26 = vector.load %arg2[%c4, %c0_14, %c0_15] : memref<5x28x512xbf16, #tpu.memory_space<vmem>>, vector<1x28x512xbf16>
    %27 = vector.shape_cast %26 : vector<1x28x512xbf16> to vector<28x512xbf16>
    %cst_16 = arith.constant dense<0.000000e+00> : vector<384x512xf32>
    %28 = tpu.matmul %25, %27, %cst_16 {dimension_numbers = #tpu.dot_dimension_numbers<[1], [0], [0], [1], [0, 0, 1, 1], [], []>} : vector<384x28xbf16>, vector<28x512xbf16>, vector<384x512xf32> -> vector<384x512xf32>
    %29 = arith.addf %23, %28 : vector<384x512xf32>
    %30 = vector.shape_cast %29 : vector<384x512xf32> to vector<12x2x16x512xf32>
    %cst_17 = arith.constant dense<0xFF800000> : vector<12x16x512xf32>
    %31 = vector.multi_reduction <maximumf>, %30, %cst_17 [1] : vector<12x2x16x512xf32> to vector<12x16x512xf32>
    %32 = vector.extract_strided_slice %31 {offsets = [0, 0, 0], sizes = [12, 16, 256], strides = [1, 1, 1]} : vector<12x16x512xf32> to vector<12x16x256xf32>
    %33 = vector.extract_strided_slice %31 {offsets = [0, 0, 256], sizes = [12, 16, 256], strides = [1, 1, 1]} : vector<12x16x512xf32> to vector<12x16x256xf32>
    %34 = arith.maximumf %32, %33 : vector<12x16x256xf32>
    %c0_18 = arith.constant 0 : index
    %c0_19 = arith.constant 0 : index
    %35 = vector.load %arg3[%c0_18, %c0_19] : memref<1x256xf32, #tpu.memory_space<vmem>>, vector<1x256xf32>
    %36 = vector.shape_cast %35 : vector<1x256xf32> to vector<1x1x256xf32>
    %37 = vector.broadcast %36 : vector<1x1x256xf32> to vector<12x16x256xf32>
    %38 = arith.addf %34, %37 : vector<12x16x256xf32>
    %cst_20 = arith.constant 0.000000e+00 : f32
    %39 = vector.broadcast %cst_20 : f32 to vector<12x16x256xf32>
    %40 = arith.maximumf %38, %39 : vector<12x16x256xf32>
    %41 = arith.truncf %40 : vector<12x16x256xf32> to vector<12x16x256xbf16>
    %42 = vector.extract_strided_slice %41 {offsets = [0, 0, 0], sizes = [8, 16, 256], strides = [1, 1, 1]} : vector<12x16x256xbf16> to vector<8x16x256xbf16>
    %43 = vector.shape_cast %42 : vector<8x16x256xbf16> to vector<128x256xbf16>
    %c0_21 = arith.constant 0 : index
    %c0_22 = arith.constant 0 : index
    %c0_23 = arith.constant 0 : index
    %44 = vector.load %arg4[%c0_21, %c0_22, %c0_23] : memref<5x256x512xbf16, #tpu.memory_space<vmem>>, vector<1x256x512xbf16>
    %45 = vector.shape_cast %44 : vector<1x256x512xbf16> to vector<256x512xbf16>
    %cst_24 = arith.constant dense<0.000000e+00> : vector<128x512xf32>
    %46 = tpu.matmul %43, %45, %cst_24 {dimension_numbers = #tpu.dot_dimension_numbers<[1], [0], [0], [1], [0, 0, 1, 1], [], []>} : vector<128x256xbf16>, vector<256x512xbf16>, vector<128x512xf32> -> vector<128x512xf32>
    %47 = vector.extract_strided_slice %41 {offsets = [1, 0, 0], sizes = [8, 16, 256], strides = [1, 1, 1]} : vector<12x16x256xbf16> to vector<8x16x256xbf16>
    %48 = vector.shape_cast %47 : vector<8x16x256xbf16> to vector<128x256xbf16>
    %c1_25 = arith.constant 1 : index
    %c0_26 = arith.constant 0 : index
    %c0_27 = arith.constant 0 : index
    %49 = vector.load %arg4[%c1_25, %c0_26, %c0_27] : memref<5x256x512xbf16, #tpu.memory_space<vmem>>, vector<1x256x512xbf16>
    %50 = vector.shape_cast %49 : vector<1x256x512xbf16> to vector<256x512xbf16>
    %cst_28 = arith.constant dense<0.000000e+00> : vector<128x512xf32>
    %51 = tpu.matmul %48, %50, %cst_28 {dimension_numbers = #tpu.dot_dimension_numbers<[1], [0], [0], [1], [0, 0, 1, 1], [], []>} : vector<128x256xbf16>, vector<256x512xbf16>, vector<128x512xf32> -> vector<128x512xf32>
    %52 = arith.addf %46, %51 : vector<128x512xf32>
    %53 = vector.extract_strided_slice %41 {offsets = [2, 0, 0], sizes = [8, 16, 256], strides = [1, 1, 1]} : vector<12x16x256xbf16> to vector<8x16x256xbf16>
    %54 = vector.shape_cast %53 : vector<8x16x256xbf16> to vector<128x256xbf16>
    %c2_29 = arith.constant 2 : index
    %c0_30 = arith.constant 0 : index
    %c0_31 = arith.constant 0 : index
    %55 = vector.load %arg4[%c2_29, %c0_30, %c0_31] : memref<5x256x512xbf16, #tpu.memory_space<vmem>>, vector<1x256x512xbf16>
    %56 = vector.shape_cast %55 : vector<1x256x512xbf16> to vector<256x512xbf16>
    %cst_32 = arith.constant dense<0.000000e+00> : vector<128x512xf32>
    %57 = tpu.matmul %54, %56, %cst_32 {dimension_numbers = #tpu.dot_dimension_numbers<[1], [0], [0], [1], [0, 0, 1, 1], [], []>} : vector<128x256xbf16>, vector<256x512xbf16>, vector<128x512xf32> -> vector<128x512xf32>
    %58 = arith.addf %52, %57 : vector<128x512xf32>
    %59 = vector.extract_strided_slice %41 {offsets = [3, 0, 0], sizes = [8, 16, 256], strides = [1, 1, 1]} : vector<12x16x256xbf16> to vector<8x16x256xbf16>
    %60 = vector.shape_cast %59 : vector<8x16x256xbf16> to vector<128x256xbf16>
    %c3_33 = arith.constant 3 : index
    %c0_34 = arith.constant 0 : index
    %c0_35 = arith.constant 0 : index
    %61 = vector.load %arg4[%c3_33, %c0_34, %c0_35] : memref<5x256x512xbf16, #tpu.memory_space<vmem>>, vector<1x256x512xbf16>
    %62 = vector.shape_cast %61 : vector<1x256x512xbf16> to vector<256x512xbf16>
    %cst_36 = arith.constant dense<0.000000e+00> : vector<128x512xf32>
    %63 = tpu.matmul %60, %62, %cst_36 {dimension_numbers = #tpu.dot_dimension_numbers<[1], [0], [0], [1], [0, 0, 1, 1], [], []>} : vector<128x256xbf16>, vector<256x512xbf16>, vector<128x512xf32> -> vector<128x512xf32>
    %64 = arith.addf %58, %63 : vector<128x512xf32>
    %65 = vector.extract_strided_slice %41 {offsets = [4, 0, 0], sizes = [8, 16, 256], strides = [1, 1, 1]} : vector<12x16x256xbf16> to vector<8x16x256xbf16>
    %66 = vector.shape_cast %65 : vector<8x16x256xbf16> to vector<128x256xbf16>
    %c4_37 = arith.constant 4 : index
    %c0_38 = arith.constant 0 : index
    %c0_39 = arith.constant 0 : index
    %67 = vector.load %arg4[%c4_37, %c0_38, %c0_39] : memref<5x256x512xbf16, #tpu.memory_space<vmem>>, vector<1x256x512xbf16>
    %68 = vector.shape_cast %67 : vector<1x256x512xbf16> to vector<256x512xbf16>
    %cst_40 = arith.constant dense<0.000000e+00> : vector<128x512xf32>
    %69 = tpu.matmul %66, %68, %cst_40 {dimension_numbers = #tpu.dot_dimension_numbers<[1], [0], [0], [1], [0, 0, 1, 1], [], []>} : vector<128x256xbf16>, vector<256x512xbf16>, vector<128x512xf32> -> vector<128x512xf32>
    %70 = arith.addf %64, %69 : vector<128x512xf32>
    %71 = vector.shape_cast %70 : vector<128x512xf32> to vector<4x2x16x512xf32>
    %cst_41 = arith.constant dense<0xFF800000> : vector<4x16x512xf32>
    %72 = vector.multi_reduction <maximumf>, %71, %cst_41 [1] : vector<4x2x16x512xf32> to vector<4x16x512xf32>
    %73 = vector.extract_strided_slice %72 {offsets = [0, 0, 0], sizes = [4, 16, 256], strides = [1, 1, 1]} : vector<4x16x512xf32> to vector<4x16x256xf32>
    %74 = vector.extract_strided_slice %72 {offsets = [0, 0, 256], sizes = [4, 16, 256], strides = [1, 1, 1]} : vector<4x16x512xf32> to vector<4x16x256xf32>
    %75 = arith.maximumf %73, %74 : vector<4x16x256xf32>
    %c0_42 = arith.constant 0 : index
    %c0_43 = arith.constant 0 : index
    %76 = vector.load %arg5[%c0_42, %c0_43] : memref<1x256xf32, #tpu.memory_space<vmem>>, vector<1x256xf32>
    %77 = vector.shape_cast %76 : vector<1x256xf32> to vector<1x1x256xf32>
    %78 = vector.broadcast %77 : vector<1x1x256xf32> to vector<4x16x256xf32>
    %79 = arith.addf %75, %78 : vector<4x16x256xf32>
    %cst_44 = arith.constant 0.000000e+00 : f32
    %80 = vector.broadcast %cst_44 : f32 to vector<4x16x256xf32>
    %81 = arith.maximumf %79, %80 : vector<4x16x256xf32>
    %82 = arith.truncf %81 : vector<4x16x256xf32> to vector<4x16x256xbf16>
    %83 = vector.extract_strided_slice %82 {offsets = [0, 0, 0], sizes = [1, 16, 256], strides = [1, 1, 1]} : vector<4x16x256xbf16> to vector<1x16x256xbf16>
    %84 = vector.shape_cast %83 : vector<1x16x256xbf16> to vector<16x256xbf16>
    %c0_45 = arith.constant 0 : index
    %c0_46 = arith.constant 0 : index
    %c0_47 = arith.constant 0 : index
    %85 = vector.load %arg6[%c0_45, %c0_46, %c0_47] : memref<4x256x500xbf16, #tpu.memory_space<vmem>>, vector<1x256x500xbf16>
    %86 = vector.shape_cast %85 : vector<1x256x500xbf16> to vector<256x500xbf16>
    %cst_48 = arith.constant dense<0.000000e+00> : vector<16x500xf32>
    %87 = tpu.matmul %84, %86, %cst_48 {dimension_numbers = #tpu.dot_dimension_numbers<[1], [0], [0], [1], [0, 0, 1, 1], [], []>} : vector<16x256xbf16>, vector<256x500xbf16>, vector<16x500xf32> -> vector<16x500xf32>
    %88 = vector.extract_strided_slice %82 {offsets = [1, 0, 0], sizes = [1, 16, 256], strides = [1, 1, 1]} : vector<4x16x256xbf16> to vector<1x16x256xbf16>
    %89 = vector.shape_cast %88 : vector<1x16x256xbf16> to vector<16x256xbf16>
    %c1_49 = arith.constant 1 : index
    %c0_50 = arith.constant 0 : index
    %c0_51 = arith.constant 0 : index
    %90 = vector.load %arg6[%c1_49, %c0_50, %c0_51] : memref<4x256x500xbf16, #tpu.memory_space<vmem>>, vector<1x256x500xbf16>
    %91 = vector.shape_cast %90 : vector<1x256x500xbf16> to vector<256x500xbf16>
    %cst_52 = arith.constant dense<0.000000e+00> : vector<16x500xf32>
    %92 = tpu.matmul %89, %91, %cst_52 {dimension_numbers = #tpu.dot_dimension_numbers<[1], [0], [0], [1], [0, 0, 1, 1], [], []>} : vector<16x256xbf16>, vector<256x500xbf16>, vector<16x500xf32> -> vector<16x500xf32>
    %93 = arith.addf %87, %92 : vector<16x500xf32>
    %94 = vector.extract_strided_slice %82 {offsets = [2, 0, 0], sizes = [1, 16, 256], strides = [1, 1, 1]} : vector<4x16x256xbf16> to vector<1x16x256xbf16>
    %95 = vector.shape_cast %94 : vector<1x16x256xbf16> to vector<16x256xbf16>
    %c2_53 = arith.constant 2 : index
    %c0_54 = arith.constant 0 : index
    %c0_55 = arith.constant 0 : index
    %96 = vector.load %arg6[%c2_53, %c0_54, %c0_55] : memref<4x256x500xbf16, #tpu.memory_space<vmem>>, vector<1x256x500xbf16>
    %97 = vector.shape_cast %96 : vector<1x256x500xbf16> to vector<256x500xbf16>
    %cst_56 = arith.constant dense<0.000000e+00> : vector<16x500xf32>
    %98 = tpu.matmul %95, %97, %cst_56 {dimension_numbers = #tpu.dot_dimension_numbers<[1], [0], [0], [1], [0, 0, 1, 1], [], []>} : vector<16x256xbf16>, vector<256x500xbf16>, vector<16x500xf32> -> vector<16x500xf32>
    %99 = arith.addf %93, %98 : vector<16x500xf32>
    %100 = vector.extract_strided_slice %82 {offsets = [3, 0, 0], sizes = [1, 16, 256], strides = [1, 1, 1]} : vector<4x16x256xbf16> to vector<1x16x256xbf16>
    %101 = vector.shape_cast %100 : vector<1x16x256xbf16> to vector<16x256xbf16>
    %c3_57 = arith.constant 3 : index
    %c0_58 = arith.constant 0 : index
    %c0_59 = arith.constant 0 : index
    %102 = vector.load %arg6[%c3_57, %c0_58, %c0_59] : memref<4x256x500xbf16, #tpu.memory_space<vmem>>, vector<1x256x500xbf16>
    %103 = vector.shape_cast %102 : vector<1x256x500xbf16> to vector<256x500xbf16>
    %cst_60 = arith.constant dense<0.000000e+00> : vector<16x500xf32>
    %104 = tpu.matmul %101, %103, %cst_60 {dimension_numbers = #tpu.dot_dimension_numbers<[1], [0], [0], [1], [0, 0, 1, 1], [], []>} : vector<16x256xbf16>, vector<256x500xbf16>, vector<16x500xf32> -> vector<16x500xf32>
    %105 = arith.addf %99, %104 : vector<16x500xf32>
    %c0_61 = arith.constant 0 : index
    %c0_62 = arith.constant 0 : index
    %106 = vector.load %arg7[%c0_61, %c0_62] : memref<1x500xf32, #tpu.memory_space<vmem>>, vector<1x500xf32>
    %107 = vector.broadcast %106 : vector<1x500xf32> to vector<16x500xf32>
    %108 = arith.addf %105, %107 : vector<16x500xf32>
    %cst_63 = arith.constant 0.000000e+00 : f32
    %109 = vector.broadcast %cst_63 : f32 to vector<16x500xf32>
    %110 = arith.maximumf %108, %109 : vector<16x500xf32>
    %111 = arith.truncf %110 : vector<16x500xf32> to vector<16x500xbf16>
    %c0_64 = arith.constant 0 : index
    %c0_65 = arith.constant 0 : index
    %112 = vector.load %arg8[%c0_64, %c0_65] : memref<500x10xbf16, #tpu.memory_space<vmem>>, vector<500x10xbf16>
    %cst_66 = arith.constant dense<0.000000e+00> : vector<16x10xf32>
    %113 = tpu.matmul %111, %112, %cst_66 {dimension_numbers = #tpu.dot_dimension_numbers<[1], [0], [0], [1], [0, 0, 1, 1], [], []>} : vector<16x500xbf16>, vector<500x10xbf16>, vector<16x10xf32> -> vector<16x10xf32>
    %c0_67 = arith.constant 0 : index
    %c0_68 = arith.constant 0 : index
    %114 = vector.load %arg9[%c0_67, %c0_68] : memref<1x10xf32, #tpu.memory_space<vmem>>, vector<1x10xf32>
    %115 = vector.broadcast %114 : vector<1x10xf32> to vector<16x10xf32>
    %116 = arith.addf %113, %115 : vector<16x10xf32>
    %cst_69 = arith.constant dense<0xFF800000> : vector<16xf32>
    %117 = vector.multi_reduction <maximumf>, %116, %cst_69 [1] : vector<16x10xf32> to vector<16xf32>
    %118 = vector.shape_cast %117 : vector<16xf32> to vector<16x1xf32>
    %119 = vector.broadcast %118 : vector<16x1xf32> to vector<16x10xf32>
    %120 = arith.subf %116, %119 : vector<16x10xf32>
    %121 = math.exp %120 : vector<16x10xf32>
    %cst_70 = arith.constant dense<0.000000e+00> : vector<16xf32>
    %122 = vector.multi_reduction <add>, %121, %cst_70 [1] : vector<16x10xf32> to vector<16xf32>
    %123 = vector.shape_cast %122 : vector<16xf32> to vector<16x1xf32>
    %124 = math.log %123 : vector<16x1xf32>
    %125 = vector.broadcast %124 : vector<16x1xf32> to vector<16x10xf32>
    %126 = arith.subf %120, %125 : vector<16x10xf32>
    %c0_71 = arith.constant 0 : index
    %c0_72 = arith.constant 0 : index
    %127 = vector.load %arg10[%c0_71, %c0_72] : memref<16x10xf32, #tpu.memory_space<vmem>>, vector<16x10xf32>
    tpu.vector_store %arg10[%c0_71, %c0_72], %126 {strides = array<i32>} : memref<16x10xf32, #tpu.memory_space<vmem>>, vector<16x10xf32>,
    return
  }
  func.func @transform_0(%arg0: i32) -> (i32, i32, i32) {
    %c0_i32 = arith.constant 0 : i32
    %c0_i32_0 = arith.constant 0 : i32
    %c0_i32_1 = arith.constant 0 : i32
    return %c0_i32, %arg0, %c0_i32_0 : i32, i32, i32
  }
  func.func @transform_1(%arg0: i32) -> (i32, i32, i32) {
    %c0_i32 = arith.constant 0 : i32
    %c0_i32_0 = arith.constant 0 : i32
    %c0_i32_1 = arith.constant 0 : i32
    %c0_i32_2 = arith.constant 0 : i32
    return %c0_i32, %c0_i32_0, %c0_i32_1 : i32, i32, i32
  }
  func.func @transform_2(%arg0: i32) -> (i32, i32) {
    %c0_i32 = arith.constant 0 : i32
    %c0_i32_0 = arith.constant 0 : i32
    %c0_i32_1 = arith.constant 0 : i32
    return %c0_i32, %c0_i32_0 : i32, i32
  }
  func.func @transform_3(%arg0: i32) -> (i32, i32, i32) {
    %c0_i32 = arith.constant 0 : i32
    %c0_i32_0 = arith.constant 0 : i32
    %c0_i32_1 = arith.constant 0 : i32
    %c0_i32_2 = arith.constant 0 : i32
    return %c0_i32, %c0_i32_0, %c0_i32_1 : i32, i32, i32
  }
  func.func @transform_4(%arg0: i32) -> (i32, i32) {
    %c0_i32 = arith.constant 0 : i32
    %c0_i32_0 = arith.constant 0 : i32
    %c0_i32_1 = arith.constant 0 : i32
    return %c0_i32, %c0_i32_0 : i32, i32
  }
  func.func @transform_5(%arg0: i32) -> (i32, i32, i32) {
    %c0_i32 = arith.constant 0 : i32
    %c0_i32_0 = arith.constant 0 : i32
    %c0_i32_1 = arith.constant 0 : i32
    %c0_i32_2 = arith.constant 0 : i32
    return %c0_i32, %c0_i32_0, %c0_i32_1 : i32, i32, i32
  }
  func.func @transform_6(%arg0: i32) -> (i32, i32) {
    %c0_i32 = arith.constant 0 : i32
    %c0_i32_0 = arith.constant 0 : i32
    %c0_i32_1 = arith.constant 0 : i32
    return %c0_i32, %c0_i32_0 : i32, i32
  }
  func.func @transform_7(%arg0: i32) -> (i32, i32) {
    %c0_i32 = arith.constant 0 : i32
    %c0_i32_0 = arith.constant 0 : i32
    %c0_i32_1 = arith.constant 0 : i32
    return %c0_i32, %c0_i32_0 : i32, i32
  }
  func.func @transform_8(%arg0: i32) -> (i32, i32) {
    %c0_i32 = arith.constant 0 : i32
    %c0_i32_0 = arith.constant 0 : i32
    %c0_i32_1 = arith.constant 0 : i32
    return %c0_i32, %c0_i32_0 : i32, i32
  }
  func.func @transform_9(%arg0: i32) -> (i32, i32) {
    %c0_i32 = arith.constant 0 : i32
    %c0_i32_0 = arith.constant 0 : i32
    return %arg0, %c0_i32 : i32, i32
  }
}

</mosaic_0001>

<bundles_post_ra>
// kernel: net_forward.1
= control target key start
LH: loop header
LB: loop body
LE: loop exit
PB: predicated region body
PF: predicated region fallthrough
CT: control target
= control target key end

     0   :  { %v13365_v1 = vmov 0   ;;  %vm335_vm0 = vcmask 1045504   ;;  %vm262_vm1 = vcmask 228352   ;;  %vm9731_vm2 = vcmask 1041408   ;;  %s16591_s1 = inlined_call_operand.vmem [shape: bf16[5,28,512], index: 1, kind: input, shape index: {}]   ;;  %s16592_s0 = inlined_call_operand.vmem [shape: bf16[28,16,28], index: 0, kind: input, shape index: {}]   ;;  %s16593_s3 = inlined_call_operand.vmem [shape: bf16[5,256,512], index: 3, kind: input, shape index: {}]   ;;  %s16594_s2 = inlined_call_operand.vmem [shape: f32[1,256], index: 2, kind: input, shape index: {}]   ;;  %s16595_s5 = inlined_call_operand.vmem [shape: bf16[4,256,500], index: 5, kind: input, shape index: {}]   ;;  %s16596_s4 = inlined_call_operand.vmem [shape: f32[1,256], index: 4, kind: input, shape index: {}]   ;;  %s16597_s7 = inlined_call_operand.vmem [shape: bf16[500,10], index: 7, kind: input, shape index: {}]   ;;  %s16598_s6 = inlined_call_operand.vmem [shape: f32[1,500], index: 6, kind: input, shape index: {}]   ;;  %s16599_s8 = inlined_call_operand.vmem [shape: f32[1,10], index: 8, kind: input, shape index: {}]   ;;  %s16600_s9 = inlined_call_operand.vmem [shape: f32[16,10], index: 9, kind: output, shape index: {}]  }
   0x1   :  { %v12350_v0 = vld [vmem:[%s16591_s1 + $0x44] ss:$16 sps:$4 sm:$0xff]   ;;  %380 = vmatprep.mubr.bf16.mxu0 %v13365_v1  ;;  %653 = vmatprep.mubr.bf16.mxu1 %v13365_v1  ;;  %v12352_v2 = vld [vmem:[%s16591_s1 + $0x4c] ss:$16 sps:$4 sm:$0xff]   ;;  %v12354_v3 = vld [vmem:[%s16591_s1 + $0x40] ss:$16 sps:$4 sm:$0xff]  }
   0x2   :  { %348 = vmatprep.subr.bf16.mxu0 %v12350_v0  ;;  %v12355_v4 = vld [vmem:[%s16591_s1 + $0x48] ss:$16 sps:$4 sm:$0xff]   ;;  %621 = vmatprep.subr.bf16.mxu1 %v12352_v2  ;;  %v12356_v5 = vld [vmem:[%s16591_s1 + $0x64] ss:$16 sps:$4 sm:$0x3f]   ;;  %vm9727_vm3 = vcmask 949248  }
   0x3   :  { %349 = vmatpush1.bf16.msra.mxu0 %v12354_v3  ;;  %622 = vmatpush1.bf16.msra.mxu1 %v12355_v4  ;;  %v12358_v6 = vld [vmem:[%s16591_s1 + $0x6c] ss:$16 sps:$4 sm:$0x3f]   ;;  %v12360_v7 = vld [vmem:[%s16591_s1 + $0x60] ss:$16 sps:$4 sm:$0x3f]  }
   0x4   :  { %9888 = vmatprep.subr.msk.bf16.mxu0 %vm335_vm0, %v12356_v5  ;;  %v12361_v8 = vld [vmem:[%s16591_s1 + $0x68] ss:$16 sps:$4 sm:$0x3f]   ;;  %9913 = vmatprep.subr.msk.bf16.mxu1 %vm335_vm0, %v12358_v6  ;;  %v337_v10 = vsel %vm335_vm0, %v12360_v7, 0  ;;  %v12363_v12 = vld [vmem:[%s16591_s1] ss:$16 sps:$4 sm:$0xff]  }
   0x5   :  { %v13446_v9 = vld [vmem:[%s16592_s0 + $0x8] sm:$0xff]   ;;  %v343_v11 = vsel %vm335_vm0, %v12361_v8, 0  ;;  %v12365_v13 = vld [vmem:[%s16591_s1 + $0x4] ss:$16 sps:$4 sm:$0xff]   ;;  %v13483_v17 = vld [vmem:[%s16592_s0 + $0x18] sm:$0xff]   ;;  %vm9817_vm4 = vcmask 80896  }
   0x6   :  { %v12366_v14 = vld [vmem:[%s16591_s1 + $0x8] ss:$16 sps:$4 sm:$0xff]   ;;  %v12368_v15 = vld [vmem:[%s16591_s1 + $0xc] ss:$16 sps:$4 sm:$0xff]   ;;  %v13472_v16 = vld [vmem:[%s16592_s0 + $0x10] sm:$0xff]  }
   0x7   :  { %351 = vmatpush1.bf16.msra.mxu0 %v337_v10  ;;  %624 = vmatpush1.bf16.msra.mxu1 %v343_v11  ;;  %v12381_v18 = vld [vmem:[%s16591_s1 + $0x24] ss:$16 sps:$4 sm:$0x3f]   ;;  %v12383_v19 = vld [vmem:[%s16591_s1 + $0x2c] ss:$16 sps:$4 sm:$0x3f]  }
   0x8   :  { %950 = vmatprep.subr.bf16.mxu0 %v12365_v13  ;;  %1223 = vmatprep.subr.bf16.mxu1 %v12368_v15  ;;  %v12385_v20 = vld [vmem:[%s16591_s1 + $0x20] ss:$16 sps:$4 sm:$0x3f]   ;;  %v12386_v21 = vld [vmem:[%s16591_s1 + $0x28] ss:$16 sps:$4 sm:$0x3f]  }
   0x9   :  { %v939_v22 = vsel %vm335_vm0, %v12385_v20, 0  ;;  %v945_v23 = vsel %vm335_vm0, %v12386_v21, 0  ;;  %v13510_v24 = vld [vmem:[%s16592_s0 + $0x20] sm:$0xff]   ;;  %v13521_v25 = vld [vmem:[%s16592_s0 + $0x28] sm:$0xff]   ;;  %v13532_v26 = vld [vmem:[%s16592_s0 + $0x30] sm:$0xff]  }
   0xa   :  { %9889 = vmatmul.mubr.msk.bf16.vlgmr.msra.gmra.mrb[0].mxu0 %vm262_vm1, %v13446_v9  ;;  %9914 = vmatmul.mubr.msk.bf16.vlgmr.msra.gmra.mrb[0].mxu1 %vm262_vm1, %v13446_v9  ;;  %v13543_v27 = vld [vmem:[%s16592_s0 + $0x38] sm:$0xff]   ;;  %v13554_v28 = vld [vmem:[%s16592_s0 + $0x40] sm:$0xff]   ;;  %v13565_v29 = vld [vmem:[%s16592_s0 + $0x48] sm:$0xff]  }
   0xb   :  { %951 = vmatpush1.bf16.msra.mxu0 %v12363_v12  ;;  %1224 = vmatpush1.bf16.msra.mxu1 %v12366_v14  ;;  %v12401_v30 = vld [vmem:[%s16591_s1 + $0x84] ss:$16 sps:$4 sm:$0xff]   ;;  %v12404_v31 = vld [vmem:[%s16591_s1 + $0x8c] ss:$16 sps:$4 sm:$0xff]   ;;  %v12399_v48 = vld [vmem:[%s16591_s1 + $0x80] ss:$16 sps:$4 sm:$0xff]  }
   0xc   :  { %390 = vmatprep.mubr.bf16.mxu0 %v13365_v1  ;;  %663 = vmatprep.mubr.bf16.mxu1 %v13365_v1  ;;  %v13582_v32 = vld [vmem:[%s16592_s0 + $0x50] sm:$0xff]   ;;  %v13593_v33 = vld [vmem:[%s16592_s0 + $0x58] sm:$0xff]   ;;  %v13604_v34 = vld [vmem:[%s16592_s0 + $0x60] sm:$0xff]  }
   0xd   :  { %9947 = vmatprep.subr.msk.bf16.mxu0 %vm335_vm0, %v12381_v18  ;;  %9972 = vmatprep.subr.msk.bf16.mxu1 %vm335_vm0, %v12383_v19  ;;  %v13615_v35 = vld [vmem:[%s16592_s0 + $0x68] sm:$0xff]   ;;  %v13626_v36 = vld [vmem:[%s16592_s0 + $0x70] sm:$0xff]   ;;  %v13637_v37 = vld [vmem:[%s16592_s0 + $0x78] sm:$0xff]  }
   0xe   :  { %v13648_v38 = vld [vmem:[%s16592_s0 + $0x80] sm:$0xff]   ;;  %v13659_v39 = vld [vmem:[%s16592_s0 + $0x88] sm:$0xff]   ;;  %v13670_v40 = vld [vmem:[%s16592_s0 + $0x90] sm:$0xff]  }
   0xf   :  { %953 = vmatpush1.bf16.msra.mxu0 %v939_v22  ;;  %1226 = vmatpush1.bf16.msra.mxu1 %v945_v23  ;;  %v13681_v41 = vld [vmem:[%s16592_s0 + $0x98] sm:$0xff]   ;;  %v13692_v42 = vld [vmem:[%s16592_s0 + $0xa0] sm:$0xff]   ;;  %v13703_v43 = vld [vmem:[%s16592_s0 + $0xa8] sm:$0xff]  }
  0x10   :  { %1561 = vmatprep.subr.bf16.mxu0 %v12401_v30  ;;  %1834 = vmatprep.subr.bf16.mxu1 %v12404_v31  ;;  %v13714_v44 = vld [vmem:[%s16592_s0 + $0xb0] sm:$0xff]   ;;  %v13725_v45 = vld [vmem:[%s16592_s0 + $0xb8] sm:$0xff]   ;;  %v13736_v46 = vld [vmem:[%s16592_s0 + $0xc0] sm:$0xff]  }
  0x11   :  { %v12398_v47 = vld [vmem:[%s16592_s0] sm:$0xff]   ;;  %v12402_v49 = vld [vmem:[%s16591_s1 + $0x88] ss:$16 sps:$4 sm:$0xff]   ;;  %v12407_v53 = vld [vmem:[%s16591_s1 + $0xac] ss:$16 sps:$4 sm:$0x3f]  }
  0x12   :  { %9890 = vmatmul.mubr.msk.bf16.gmra.mrb[4].mxu0 %vm262_vm1, %v13472_v16  ;;  %9915 = vmatmul.mubr.msk.bf16.gmra.mrb[4].mxu1 %vm262_vm1, %v13472_v16  ;;  %v12409_v50 = vld [vmem:[%s16591_s1 + $0xa0] ss:$16 sps:$4 sm:$0x3f]   ;;  %v12410_v51 = vld [vmem:[%s16591_s1 + $0xa8] ss:$16 sps:$4 sm:$0x3f]  }
  0x13   :  { %400 = vmatprep.mubr.bf16.mxu0 %v13365_v1  ;;  %673 = vmatprep.mubr.bf16.mxu1 %v13365_v1  ;;  %v12405_v52 = vld [vmem:[%s16591_s1 + $0xa4] ss:$16 sps:$4 sm:$0x3f]   ;;  %v1550_v54 = vsel %vm335_vm0, %v12409_v50, 0  ;;  %v1556_v55 = vsel %vm335_vm0, %v12410_v51, 0  ;;  %v14086_v5 = vld [vmem:[%s16592_s0 + $0xc8] sm:$0xff]  }
  0x14   :  { %v12413_v56 = vld [vmem:[%s16591_s1 + $0xc4] ss:$16 sps:$4 sm:$0xff]   ;;  %v12416_v57 = vld [vmem:[%s16591_s1 + $0xcc] ss:$16 sps:$4 sm:$0xff]   ;;  %v12411_v58 = vld [vmem:[%s16591_s1 + $0xc0] ss:$16 sps:$4 sm:$0xff]  }
  0x15   :  { %v12414_v59 = vld [vmem:[%s16591_s1 + $0xc8] ss:$16 sps:$4 sm:$0xff]   ;;  %v12421_v60 = vld [vmem:[%s16591_s1 + $0xe0] ss:$16 sps:$4 sm:$0x3f]  }
  0x16   :  { %v12422_v61 = vld [vmem:[%s16591_s1 + $0xe8] ss:$16 sps:$4 sm:$0x3f]   ;;  %v12417_v62 = vld [vmem:[%s16591_s1 + $0xe4] ss:$16 sps:$4 sm:$0x3f]  }
  0x17   :  { %v12419_v63 = vld [vmem:[%s16591_s1 + $0xec] ss:$16 sps:$4 sm:$0x3f]   ;;  %v2353_v0 = vsel %vm335_vm0, %v12421_v60, 0  ;;  %v2359_v2 = vsel %vm335_vm0, %v12422_v61, 0  ;;  %v12436_v15 = vld [vmem:[%s16592_s0 + $0xd0] sm:$0xff]  }
  0x18   :  { %v12426_v3 = vld [vmem:[%s16591_s1 + $0x104] ss:$16 sps:$4 sm:$0xff]   ;;  %v12429_v4 = vld [vmem:[%s16591_s1 + $0x10c] ss:$16 sps:$4 sm:$0xff]   ;;  %v12424_v6 = vld [vmem:[%s16591_s1 + $0x100] ss:$16 sps:$4 sm:$0xff]  }
  0x19   :  { %v12427_v7 = vld [vmem:[%s16591_s1 + $0x108] ss:$16 sps:$4 sm:$0xff]   ;;  %v12434_v8 = vld [vmem:[%s16591_s1 + $0x120] ss:$16 sps:$4 sm:$0x3f]  }
  0x1a   :  { %9891 = vmatmul.mubr.msk.bf16.gmra.mrb[8].mxu0 %vm262_vm1, %v13483_v17  ;;  %9916 = vmatmul.mubr.msk.bf16.gmra.mrb[8].mxu1 %vm262_vm1, %v13483_v17  ;;  %v12430_v10 = vld [vmem:[%s16591_s1 + $0x124] ss:$16 sps:$4 sm:$0x3f]   ;;  %v12432_v11 = vld [vmem:[%s16591_s1 + $0x12c] ss:$16 sps:$4 sm:$0x3f]  }
  0x1b   :  { %410 = vmatprep.mubr.bf16.mxu0 %v13365_v1  ;;  %683 = vmatprep.mubr.bf16.mxu1 %v13365_v1  ;;  %v3156_v12 = vsel %vm335_vm0, %v12434_v8, 0  ;;  %v12439_v14 = vld [vmem:[%s16593_s3 + $0x204] ss:$16 sps:$4 sm:$0xff]   ;;  %v12440_v18 = vld [vmem:[%s16593_s3 + $0x208] ss:$16 sps:$4 sm:$0xff]  }
  0x1c   :  { %v12445_v19 = vld [vmem:[%s16593_s3 + $0x224] ss:$16 sps:$4 sm:$0xff]   ;;  %v12448_v20 = vld [vmem:[%s16593_s3 + $0x22c] ss:$16 sps:$4 sm:$0xff]   ;;  %v12443_v22 = vld [vmem:[%s16593_s3 + $0x220] ss:$16 sps:$4 sm:$0xff]  }
  0x1d   :  { %v13342_v21 = vld [vmem:[%s16592_s0 + $0x20] sm:$0xff]   ;;  %v12446_v23 = vld [vmem:[%s16593_s3 + $0x228] ss:$16 sps:$4 sm:$0xff]   ;;  %v12479_v50 = vld [vmem:[%s16593_s3 + $0x2cc] ss:$16 sps:$4 sm:$0xff]  }
  0x1e   :  { %v12455_v30 = vld [vmem:[%s16593_s3 + $0x260] ss:$16 sps:$4 sm:$0xff]   ;;  %v12457_v31 = vld [vmem:[%s16593_s3 + $0x264] ss:$16 sps:$4 sm:$0xff]   ;;  %v13351_v60 = vld [vmem:[%s16592_s0 + $0x68] sm:$0xff]  }
  0x1f   :  { %v12482_v51 = vld [vmem:[%s16593_s3 + $0x2e4] ss:$16 sps:$4 sm:$0xff]   ;;  %v12501_v8 = vld [vmem:[%s16593_s3 + $0x348] ss:$16 sps:$4 sm:$0xff]  }
  0x20   :  { %v13352_v61 = vld [vmem:[%s16592_s0 + $0x70] sm:$0xff]  }
  0x22   :  { %9892 = vmatmul.mubr.msk.bf16.gmra.mrb[12].mxu0 %vm262_vm1, %v13510_v24  ;;  %9917 = vmatmul.mubr.msk.bf16.gmra.mrb[12].mxu1 %vm262_vm1, %v13510_v24 }
  0x23   :  { %420 = vmatprep.mubr.bf16.mxu0 %v13365_v1  ;;  %693 = vmatprep.mubr.bf16.mxu1 %v13365_v1 }
  0x2a   :  { %9893 = vmatmul.mubr.msk.bf16.gmra.mrb[16].mxu0 %vm262_vm1, %v13521_v25  ;;  %9918 = vmatmul.mubr.msk.bf16.gmra.mrb[16].mxu1 %vm262_vm1, %v13521_v25 }
  0x2b   :  { %430 = vmatprep.mubr.bf16.mxu0 %v13365_v1  ;;  %703 = vmatprep.mubr.bf16.mxu1 %v13365_v1 }
  0x32   :  { %9894 = vmatmul.mubr.msk.bf16.gmra.mrb[20].mxu0 %vm262_vm1, %v13532_v26  ;;  %9919 = vmatmul.mubr.msk.bf16.gmra.mrb[20].mxu1 %vm262_vm1, %v13532_v26 }
  0x33   :  { %440 = vmatprep.mubr.bf16.mxu0 %v13365_v1  ;;  %713 = vmatprep.mubr.bf16.mxu1 %v13365_v1 }
  0x3a   :  { %9895 = vmatmul.mubr.msk.bf16.gmra.mrb[24].mxu0 %vm262_vm1, %v13543_v27  ;;  %9920 = vmatmul.mubr.msk.bf16.gmra.mrb[24].mxu1 %vm262_vm1, %v13543_v27 }
  0x3b   :  { %450 = vmatprep.mubr.bf16.mxu0 %v13365_v1  ;;  %723 = vmatprep.mubr.bf16.mxu1 %v13365_v1 }
  0x42   :  { %9896 = vmatmul.mubr.msk.bf16.gmra.mrb[28].mxu0 %vm262_vm1, %v13554_v28  ;;  %9921 = vmatmul.mubr.msk.bf16.gmra.mrb[28].mxu1 %vm262_vm1, %v13554_v28 }
  0x43   :  { %460 = vmatprep.mubr.bf16.mxu0 %v13365_v1  ;;  %733 = vmatprep.mubr.bf16.mxu1 %v13365_v1 }
  0x4a   :  { %9897 = vmatmul.mubr.msk.bf16.gmra.mrb[32].mxu0 %vm262_vm1, %v13565_v29  ;;  %9922 = vmatmul.mubr.msk.bf16.gmra.mrb[32].mxu1 %vm262_vm1, %v13565_v29 }
  0x4b   :  { %470 = vmatprep.mubr.bf16.mxu0 %v13365_v1  ;;  %743 = vmatprep.mubr.bf16.mxu1 %v13365_v1 }
  0x52   :  { %9898 = vmatmul.mubr.msk.bf16.gmra.mrb[36].mxu0 %vm262_vm1, %v13582_v32  ;;  %9923 = vmatmul.mubr.msk.bf16.gmra.mrb[36].mxu1 %vm262_vm1, %v13582_v32 }
  0x53   :  { %480 = vmatprep.mubr.bf16.mxu0 %v13365_v1  ;;  %753 = vmatprep.mubr.bf16.mxu1 %v13365_v1 }
  0x5a   :  { %9899 = vmatmul.mubr.msk.bf16.gmra.mrb[40].mxu0 %vm262_vm1, %v13593_v33  ;;  %9924 = vmatmul.mubr.msk.bf16.gmra.mrb[40].mxu1 %vm262_vm1, %v13593_v33 }
  0x5b   :  { %490 = vmatprep.mubr.bf16.mxu0 %v13365_v1  ;;  %763 = vmatprep.mubr.bf16.mxu1 %v13365_v1 }
  0x62   :  { %9900 = vmatmul.mubr.msk.bf16.gmra.mrb[44].mxu0 %vm262_vm1, %v13604_v34  ;;  %9925 = vmatmul.mubr.msk.bf16.gmra.mrb[44].mxu1 %vm262_vm1, %v13604_v34 }
  0x63   :  { %500 = vmatprep.mubr.bf16.mxu0 %v13365_v1  ;;  %773 = vmatprep.mubr.bf16.mxu1 %v13365_v1 }
  0x6a   :  { %9901 = vmatmul.mubr.msk.bf16.gmra.mrb[48].mxu0 %vm262_vm1, %v13615_v35  ;;  %9926 = vmatmul.mubr.msk.bf16.gmra.mrb[48].mxu1 %vm262_vm1, %v13615_v35 }
  0x6b   :  { %510 = vmatprep.mubr.bf16.mxu0 %v13365_v1  ;;  %783 = vmatprep.mubr.bf16.mxu1 %v13365_v1 }
  0x72   :  { %9902 = vmatmul.mubr.msk.bf16.gmra.mrb[52].mxu0 %vm262_vm1, %v13626_v36  ;;  %9927 = vmatmul.mubr.msk.bf16.gmra.mrb[52].mxu1 %vm262_vm1, %v13626_v36 }
  0x73   :  { %520 = vmatprep.mubr.bf16.mxu0 %v13365_v1  ;;  %793 = vmatprep.mubr.bf16.mxu1 %v13365_v1 }
  0x7a   :  { %9903 = vmatmul.mubr.msk.bf16.gmra.mrb[56].mxu0 %vm262_vm1, %v13637_v37  ;;  %9928 = vmatmul.mubr.msk.bf16.gmra.mrb[56].mxu1 %vm262_vm1, %v13637_v37 }
  0x7b   :  { %530 = vmatprep.mubr.bf16.mxu0 %v13365_v1  ;;  %803 = vmatprep.mubr.bf16.mxu1 %v13365_v1 }
  0x82   :  { %9904 = vmatmul.mubr.msk.bf16.gmra.mrb[60].mxu0 %vm262_vm1, %v13648_v38  ;;  %9929 = vmatmul.mubr.msk.bf16.gmra.mrb[60].mxu1 %vm262_vm1, %v13648_v38 }
  0x83   :  { %540 = vmatprep.mubr.bf16.mxu0 %v13365_v1  ;;  %813 = vmatprep.mubr.bf16.mxu1 %v13365_v1 }
  0x8a   :  { %9905 = vmatmul.mubr.msk.bf16.gmra.mrb[64].mxu0 %vm262_vm1, %v13659_v39  ;;  %9930 = vmatmul.mubr.msk.bf16.gmra.mrb[64].mxu1 %vm262_vm1, %v13659_v39 }
  0x8b   :  { %550 = vmatprep.mubr.bf16.mxu0 %v13365_v1  ;;  %823 = vmatprep.mubr.bf16.mxu1 %v13365_v1 }
  0x92   :  { %9906 = vmatmul.mubr.msk.bf16.gmra.mrb[68].mxu0 %vm262_vm1, %v13670_v40  ;;  %9931 = vmatmul.mubr.msk.bf16.gmra.mrb[68].mxu1 %vm262_vm1, %v13670_v40 }
  0x93   :  { %560 = vmatprep.mubr.bf16.mxu0 %v13365_v1  ;;  %833 = vmatprep.mubr.bf16.mxu1 %v13365_v1 }
  0x9a   :  { %9907 = vmatmul.mubr.msk.bf16.gmra.mrb[72].mxu0 %vm262_vm1, %v13681_v41  ;;  %9932 = vmatmul.mubr.msk.bf16.gmra.mrb[72].mxu1 %vm262_vm1, %v13681_v41 }
  0x9b   :  { %570 = vmatprep.mubr.bf16.mxu0 %v13365_v1  ;;  %843 = vmatprep.mubr.bf16.mxu1 %v13365_v1 }
  0xa2   :  { %9908 = vmatmul.mubr.msk.bf16.gmra.mrb[76].mxu0 %vm262_vm1, %v13692_v42  ;;  %9933 = vmatmul.mubr.msk.bf16.gmra.mrb[76].mxu1 %vm262_vm1, %v13692_v42 }
  0xa3   :  { %580 = vmatprep.mubr.bf16.mxu0 %v13365_v1  ;;  %853 = vmatprep.mubr.bf16.mxu1 %v13365_v1 }
  0xaa   :  { %9909 = vmatmul.mubr.msk.bf16.gmra.mrb[80].mxu0 %vm262_vm1, %v13703_v43  ;;  %9934 = vmatmul.mubr.msk.bf16.gmra.mrb[80].mxu1 %vm262_vm1, %v13703_v43 }
  0xab   :  { %590 = vmatprep.mubr.bf16.mxu0 %v13365_v1  ;;  %863 = vmatprep.mubr.bf16.mxu1 %v13365_v1 }
  0xb2   :  { %9910 = vmatmul.mubr.msk.bf16.gmra.mrb[84].mxu0 %vm262_vm1, %v13714_v44  ;;  %9935 = vmatmul.mubr.msk.bf16.gmra.mrb[84].mxu1 %vm262_vm1, %v13714_v44 }
  0xb3   :  { %600 = vmatprep.mubr.bf16.mxu0 %v13365_v1  ;;  %873 = vmatprep.mubr.bf16.mxu1 %v13365_v1 }
  0xba   :  { %9911 = vmatmul.mubr.msk.bf16.gmra.mrb[88].mxu0 %vm262_vm1, %v13725_v45  ;;  %9936 = vmatmul.mubr.msk.bf16.gmra.mrb[88].mxu1 %vm262_vm1, %v13725_v45 }
  0xbb   :  { %610 = vmatprep.mubr.bf16.mxu0 %v13365_v1  ;;  %883 = vmatprep.mubr.bf16.mxu1 %v13365_v1 }
  0xc2   :  { %9912 = vmatmul.mubr.msk.bf16.gmra.mrb[92].mxu0 %vm262_vm1, %v13736_v46  ;;  %9937 = vmatmul.mubr.msk.bf16.gmra.mrb[92].mxu1 %vm262_vm1, %v13736_v46 }
  0xc3   :  { %982 = vmatprep.mubr.bf16.mxu0 %v13365_v1  ;;  %1255 = vmatprep.mubr.bf16.mxu1 %v13365_v1 }
  0xca   :  { %9948 = vmatmul.mubr.msk.bf16.vlgmr.msra.gmra.mrb[0].mxu0 %vm262_vm1, %v12398_v47  ;;  %9973 = vmatmul.mubr.msk.bf16.vlgmr.msra.gmra.mrb[0].mxu1 %vm262_vm1, %v12398_v47  ;;  %v12474_v47 = vld [vmem:[%s16593_s3 + $0x2c0] ss:$16 sps:$4 sm:$0xff]  }
  0xcb   :  { %1562 = vmatpush1.bf16.msra.mxu0 %v12399_v48  ;;  %1835 = vmatpush1.bf16.msra.mxu1 %v12402_v49  ;;  %v12476_v48 = vld [vmem:[%s16593_s3 + $0x2c4] ss:$16 sps:$4 sm:$0xff]   ;;  %v12477_v49 = vld [vmem:[%s16593_s3 + $0x2c8] ss:$16 sps:$4 sm:$0xff]  }
  0xcc   :  { %992 = vmatprep.mubr.bf16.mxu0 %v13365_v1  ;;  %1265 = vmatprep.mubr.bf16.mxu1 %v13365_v1 }
  0xcd   :  { %10014 = vmatprep.subr.msk.bf16.mxu0 %vm335_vm0, %v12405_v52  ;;  %10039 = vmatprep.subr.msk.bf16.mxu1 %vm335_vm0, %v12407_v53  ;;  %v12485_v52 = vld [vmem:[%s16593_s3 + $0x2ec] ss:$16 sps:$4 sm:$0xff]   ;;  %v12480_v53 = vld [vmem:[%s16593_s3 + $0x2e0] ss:$16 sps:$4 sm:$0xff]  }
  0xcf   :  { %1564 = vmatpush1.bf16.msra.mxu0 %v1550_v54  ;;  %1837 = vmatpush1.bf16.msra.mxu1 %v1556_v55  ;;  %v12483_v54 = vld [vmem:[%s16593_s3 + $0x2e8] ss:$16 sps:$4 sm:$0xff]   ;;  %v12488_v55 = vld [vmem:[%s16593_s3 + $0x304] ss:$16 sps:$4 sm:$0xff]  }
  0xd0   :  { %2364 = vmatprep.subr.bf16.mxu0 %v12413_v56  ;;  %2637 = vmatprep.subr.bf16.mxu1 %v12416_v57  ;;  %v12486_v56 = vld [vmem:[%s16593_s3 + $0x300] ss:$16 sps:$4 sm:$0xff]   ;;  %v12491_v57 = vld [vmem:[%s16593_s3 + $0x30c] ss:$16 sps:$4 sm:$0xff]  }
  0xd2   :  { %9949 = vmatmul.mubr.msk.bf16.gmra.mrb[4].mxu0 %vm262_vm1, %v13446_v9  ;;  %9974 = vmatmul.mubr.msk.bf16.gmra.mrb[4].mxu1 %vm262_vm1, %v13446_v9  ;;  %v12435_v9 = vld [vmem:[%s16591_s1 + $0x128] ss:$16 sps:$4 sm:$0x3f]  }
  0xd3   :  { %1002 = vmatprep.mubr.bf16.mxu0 %v13365_v1  ;;  %1275 = vmatprep.mubr.bf16.mxu1 %v13365_v1  ;;  %v3162_v13 = vsel %vm335_vm0, %v12435_v9, 0  ;;  %v12506_v9 = vld [vmem:[%s16593_s3 + $0x364] ss:$16 sps:$4 sm:$0xff]  }
  0xda   :  { %9950 = vmatmul.mubr.msk.bf16.gmra.mrb[8].mxu0 %vm262_vm1, %v13472_v16  ;;  %9975 = vmatmul.mubr.msk.bf16.gmra.mrb[8].mxu1 %vm262_vm1, %v13472_v16 }
  0xdb   :  { %1012 = vmatprep.mubr.bf16.mxu0 %v13365_v1  ;;  %1285 = vmatprep.mubr.bf16.mxu1 %v13365_v1 }
  0xe2   :  { %9951 = vmatmul.mubr.msk.bf16.gmra.mrb[12].mxu0 %vm262_vm1, %v13483_v17  ;;  %9976 = vmatmul.mubr.msk.bf16.gmra.mrb[12].mxu1 %vm262_vm1, %v13483_v17 }
  0xe3   :  { %1022 = vmatprep.mubr.bf16.mxu0 %v13365_v1  ;;  %1295 = vmatprep.mubr.bf16.mxu1 %v13365_v1 }
  0xea   :  { %9952 = vmatmul.mubr.msk.bf16.gmra.mrb[16].mxu0 %vm262_vm1, %v13510_v24  ;;  %9977 = vmatmul.mubr.msk.bf16.gmra.mrb[16].mxu1 %vm262_vm1, %v13510_v24 }
  0xeb   :  { %1032 = vmatprep.mubr.bf16.mxu0 %v13365_v1  ;;  %1305 = vmatprep.mubr.bf16.mxu1 %v13365_v1 }
  0xf2   :  { %9953 = vmatmul.mubr.msk.bf16.gmra.mrb[20].mxu0 %vm262_vm1, %v13521_v25  ;;  %9978 = vmatmul.mubr.msk.bf16.gmra.mrb[20].mxu1 %vm262_vm1, %v13521_v25 }
  0xf3   :  { %1042 = vmatprep.mubr.bf16.mxu0 %v13365_v1  ;;  %1315 = vmatprep.mubr.bf16.mxu1 %v13365_v1 }
  0xfa   :  { %9954 = vmatmul.mubr.msk.bf16.gmra.mrb[24].mxu0 %vm262_vm1, %v13532_v26  ;;  %9979 = vmatmul.mubr.msk.bf16.gmra.mrb[24].mxu1 %vm262_vm1, %v13532_v26 }
  0xfb   :  { %1052 = vmatprep.mubr.bf16.mxu0 %v13365_v1  ;;  %1325 = vmatprep.mubr.bf16.mxu1 %v13365_v1 }
 0x102   :  { %9955 = vmatmul.mubr.msk.bf16.gmra.mrb[28].mxu0 %vm262_vm1, %v13543_v27  ;;  %9980 = vmatmul.mubr.msk.bf16.gmra.mrb[28].mxu1 %vm262_vm1, %v13543_v27 }
 0x103   :  { %1062 = vmatprep.mubr.bf16.mxu0 %v13365_v1  ;;  %1335 = vmatprep.mubr.bf16.mxu1 %v13365_v1 }
 0x10a   :  { %9956 = vmatmul.mubr.msk.bf16.gmra.mrb[32].mxu0 %vm262_vm1, %v13554_v28  ;;  %9981 = vmatmul.mubr.msk.bf16.gmra.mrb[32].mxu1 %vm262_vm1, %v13554_v28 }
 0x10b   :  { %1072 = vmatprep.mubr.bf16.mxu0 %v13365_v1  ;;  %1345 = vmatprep.mubr.bf16.mxu1 %v13365_v1 }
 0x112   :  { %9957 = vmatmul.mubr.msk.bf16.gmra.mrb[36].mxu0 %vm262_vm1, %v13565_v29  ;;  %9982 = vmatmul.mubr.msk.bf16.gmra.mrb[36].mxu1 %vm262_vm1, %v13565_v29 }
 0x113   :  { %1082 = vmatprep.mubr.bf16.mxu0 %v13365_v1  ;;  %1355 = vmatprep.mubr.bf16.mxu1 %v13365_v1 }
 0x11a   :  { %9958 = vmatmul.mubr.msk.bf16.gmra.mrb[40].mxu0 %vm262_vm1, %v13582_v32  ;;  %9983 = vmatmul.mubr.msk.bf16.gmra.mrb[40].mxu1 %vm262_vm1, %v13582_v32 }
 0x11b   :  { %1092 = vmatprep.mubr.bf16.mxu0 %v13365_v1  ;;  %1365 = vmatprep.mubr.bf16.mxu1 %v13365_v1 }
 0x122   :  { %9959 = vmatmul.mubr.msk.bf16.gmra.mrb[44].mxu0 %vm262_vm1, %v13593_v33  ;;  %9984 = vmatmul.mubr.msk.bf16.gmra.mrb[44].mxu1 %vm262_vm1, %v13593_v33 }
 0x123   :  { %1102 = vmatprep.mubr.bf16.mxu0 %v13365_v1  ;;  %1375 = vmatprep.mubr.bf16.mxu1 %v13365_v1 }
 0x12a   :  { %9960 = vmatmul.mubr.msk.bf16.gmra.mrb[48].mxu0 %vm262_vm1, %v13604_v34  ;;  %9985 = vmatmul.mubr.msk.bf16.gmra.mrb[48].mxu1 %vm262_vm1, %v13604_v34 }
 0x12b   :  { %1112 = vmatprep.mubr.bf16.mxu0 %v13365_v1  ;;  %1385 = vmatprep.mubr.bf16.mxu1 %v13365_v1 }
 0x132   :  { %9961 = vmatmul.mubr.msk.bf16.gmra.mrb[52].mxu0 %vm262_vm1, %v13615_v35  ;;  %9986 = vmatmul.mubr.msk.bf16.gmra.mrb[52].mxu1 %vm262_vm1, %v13615_v35 }
 0x133   :  { %1122 = vmatprep.mubr.bf16.mxu0 %v13365_v1  ;;  %1395 = vmatprep.mubr.bf16.mxu1 %v13365_v1 }
 0x13a   :  { %9962 = vmatmul.mubr.msk.bf16.gmra.mrb[56].mxu0 %vm262_vm1, %v13626_v36  ;;  %9987 = vmatmul.mubr.msk.bf16.gmra.mrb[56].mxu1 %vm262_vm1, %v13626_v36 }
 0x13b   :  { %1132 = vmatprep.mubr.bf16.mxu0 %v13365_v1  ;;  %1405 = vmatprep.mubr.bf16.mxu1 %v13365_v1 }
 0x142   :  { %9963 = vmatmul.mubr.msk.bf16.gmra.mrb[60].mxu0 %vm262_vm1, %v13637_v37  ;;  %9988 = vmatmul.mubr.msk.bf16.gmra.mrb[60].mxu1 %vm262_vm1, %v13637_v37 }
 0x143   :  { %1142 = vmatprep.mubr.bf16.mxu0 %v13365_v1  ;;  %1415 = vmatprep.mubr.bf16.mxu1 %v13365_v1 }
 0x14a   :  { %9964 = vmatmul.mubr.msk.bf16.gmra.mrb[64].mxu0 %vm262_vm1, %v13648_v38  ;;  %9989 = vmatmul.mubr.msk.bf16.gmra.mrb[64].mxu1 %vm262_vm1, %v13648_v38 }
 0x14b   :  { %1152 = vmatprep.mubr.bf16.mxu0 %v13365_v1  ;;  %1425 = vmatprep.mubr.bf16.mxu1 %v13365_v1 }
 0x152   :  { %9965 = vmatmul.mubr.msk.bf16.gmra.mrb[68].mxu0 %vm262_vm1, %v13659_v39  ;;  %9990 = vmatmul.mubr.msk.bf16.gmra.mrb[68].mxu1 %vm262_vm1, %v13659_v39 }
 0x153   :  { %1162 = vmatprep.mubr.bf16.mxu0 %v13365_v1  ;;  %1435 = vmatprep.mubr.bf16.mxu1 %v13365_v1 }
 0x15a   :  { %9966 = vmatmul.mubr.msk.bf16.gmra.mrb[72].mxu0 %vm262_vm1, %v13670_v40  ;;  %9991 = vmatmul.mubr.msk.bf16.gmra.mrb[72].mxu1 %vm262_vm1, %v13670_v40 }
 0x15b   :  { %1172 = vmatprep.mubr.bf16.mxu0 %v13365_v1  ;;  %1445 = vmatprep.mubr.bf16.mxu1 %v13365_v1 }
 0x162   :  { %9967 = vmatmul.mubr.msk.bf16.gmra.mrb[76].mxu0 %vm262_vm1, %v13681_v41  ;;  %9992 = vmatmul.mubr.msk.bf16.gmra.mrb[76].mxu1 %vm262_vm1, %v13681_v41 }
 0x163   :  { %1182 = vmatprep.mubr.bf16.mxu0 %v13365_v1  ;;  %1455 = vmatprep.mubr.bf16.mxu1 %v13365_v1 }
 0x16a   :  { %9968 = vmatmul.mubr.msk.bf16.gmra.mrb[80].mxu0 %vm262_vm1, %v13692_v42  ;;  %9993 = vmatmul.mubr.msk.bf16.gmra.mrb[80].mxu1 %vm262_vm1, %v13692_v42 }
 0x16b   :  { %1192 = vmatprep.mubr.bf16.mxu0 %v13365_v1  ;;  %1465 = vmatprep.mubr.bf16.mxu1 %v13365_v1 }
 0x172   :  { %9969 = vmatmul.mubr.msk.bf16.gmra.mrb[84].mxu0 %vm262_vm1, %v13703_v43  ;;  %9994 = vmatmul.mubr.msk.bf16.gmra.mrb[84].mxu1 %vm262_vm1, %v13703_v43 }
 0x173   :  { %1202 = vmatprep.mubr.bf16.mxu0 %v13365_v1  ;;  %1475 = vmatprep.mubr.bf16.mxu1 %v13365_v1 }
 0x17a   :  { %9970 = vmatmul.mubr.msk.bf16.gmra.mrb[88].mxu0 %vm262_vm1, %v13714_v44  ;;  %9995 = vmatmul.mubr.msk.bf16.gmra.mrb[88].mxu1 %vm262_vm1, %v13714_v44 }
 0x17b   :  { %1212 = vmatprep.mubr.bf16.mxu0 %v13365_v1  ;;  %1485 = vmatprep.mubr.bf16.mxu1 %v13365_v1 }
 0x182   :  { %9971 = vmatmul.mubr.msk.bf16.gmra.mrb[92].mxu0 %vm262_vm1, %v13725_v45  ;;  %9996 = vmatmul.mubr.msk.bf16.gmra.mrb[92].mxu1 %vm262_vm1, %v13725_v45 }
 0x183   :  { %1593 = vmatprep.mubr.bf16.mxu0 %v13365_v1  ;;  %1866 = vmatprep.mubr.bf16.mxu1 %v13365_v1 }
 0x18a   :  { %10015 = vmatmul.mubr.msk.bf16.vlgmr.msra.gmra.mrb[0].mxu0 %vm262_vm1, %v13472_v16  ;;  %10040 = vmatmul.mubr.msk.bf16.vlgmr.msra.gmra.mrb[0].mxu1 %vm262_vm1, %v13472_v16  ;;  %v12442_v16 = vld [vmem:[%s16593_s3 + $0x20c] ss:$16 sps:$4 sm:$0xff]  }
 0x18b   :  { %2365 = vmatpush1.bf16.msra.mxu0 %v12411_v58  ;;  %2638 = vmatpush1.bf16.msra.mxu1 %v12414_v59  ;;  %v13350_v58 = vld [vmem:[%s16592_s0 + $0x60] sm:$0xff]   ;;  %v12489_v59 = vld [vmem:[%s16593_s3 + $0x308] ss:$16 sps:$4 sm:$0xff]  }
 0x18c   :  { %1603 = vmatprep.mubr.bf16.mxu0 %v13365_v1  ;;  %1876 = vmatprep.mubr.bf16.mxu1 %v13365_v1 }
 0x18d   :  { %10081 = vmatprep.subr.msk.bf16.mxu0 %vm335_vm0, %v12417_v62  ;;  %10106 = vmatprep.subr.msk.bf16.mxu1 %vm335_vm0, %v12419_v63  ;;  %v13353_v62 = vld [vmem:[%s16592_s0 + $0x78] sm:$0xff]   ;;  %v12494_v63 = vld [vmem:[%s16593_s3 + $0x324] ss:$16 sps:$4 sm:$0xff]  }
 0x18f   :  { %2367 = vmatpush1.bf16.msra.mxu0 %v2353_v0  ;;  %2640 = vmatpush1.bf16.msra.mxu1 %v2359_v2  ;;  %v12497_v0 = vld [vmem:[%s16593_s3 + $0x32c] ss:$16 sps:$4 sm:$0xff]   ;;  %v12492_v2 = vld [vmem:[%s16593_s3 + $0x320] ss:$16 sps:$4 sm:$0xff]  }
 0x190   :  { %3167 = vmatprep.subr.bf16.mxu0 %v12426_v3  ;;  %3440 = vmatprep.subr.bf16.mxu1 %v12429_v4  ;;  %v12495_v3 = vld [vmem:[%s16593_s3 + $0x328] ss:$16 sps:$4 sm:$0xff]   ;;  %v13354_v4 = vld [vmem:[%s16592_s0 + $0x80] sm:$0xff]  }
 0x192   :  { %10016 = vmatmul.mubr.msk.bf16.gmra.mrb[4].mxu0 %vm262_vm1, %v13483_v17  ;;  %10041 = vmatmul.mubr.msk.bf16.gmra.mrb[4].mxu1 %vm262_vm1, %v13483_v17 }
 0x193   :  { %1613 = vmatprep.mubr.bf16.mxu0 %v13365_v1  ;;  %1886 = vmatprep.mubr.bf16.mxu1 %v13365_v1 }
 0x19a   :  { %10017 = vmatmul.mubr.msk.bf16.gmra.mrb[8].mxu0 %vm262_vm1, %v13510_v24  ;;  %10042 = vmatmul.mubr.msk.bf16.gmra.mrb[8].mxu1 %vm262_vm1, %v13510_v24 }
 0x19b   :  { %1623 = vmatprep.mubr.bf16.mxu0 %v13365_v1  ;;  %1896 = vmatprep.mubr.bf16.mxu1 %v13365_v1 }
 0x1a2   :  { %10018 = vmatmul.mubr.msk.bf16.gmra.mrb[12].mxu0 %vm262_vm1, %v13521_v25  ;;  %10043 = vmatmul.mubr.msk.bf16.gmra.mrb[12].mxu1 %vm262_vm1, %v13521_v25 }
 0x1a3   :  { %1633 = vmatprep.mubr.bf16.mxu0 %v13365_v1  ;;  %1906 = vmatprep.mubr.bf16.mxu1 %v13365_v1 }
 0x1aa   :  { %10019 = vmatmul.mubr.msk.bf16.gmra.mrb[16].mxu0 %vm262_vm1, %v13532_v26  ;;  %10044 = vmatmul.mubr.msk.bf16.gmra.mrb[16].mxu1 %vm262_vm1, %v13532_v26 }
 0x1ab   :  { %1643 = vmatprep.mubr.bf16.mxu0 %v13365_v1  ;;  %1916 = vmatprep.mubr.bf16.mxu1 %v13365_v1 }
 0x1b2   :  { %10020 = vmatmul.mubr.msk.bf16.gmra.mrb[20].mxu0 %vm262_vm1, %v13543_v27  ;;  %10045 = vmatmul.mubr.msk.bf16.gmra.mrb[20].mxu1 %vm262_vm1, %v13543_v27 }
 0x1b3   :  { %1653 = vmatprep.mubr.bf16.mxu0 %v13365_v1  ;;  %1926 = vmatprep.mubr.bf16.mxu1 %v13365_v1 }
 0x1ba   :  { %10021 = vmatmul.mubr.msk.bf16.gmra.mrb[24].mxu0 %vm262_vm1, %v13554_v28  ;;  %10046 = vmatmul.mubr.msk.bf16.gmra.mrb[24].mxu1 %vm262_vm1, %v13554_v28 }
 0x1bb   :  { %1663 = vmatprep.mubr.bf16.mxu0 %v13365_v1  ;;  %1936 = vmatprep.mubr.bf16.mxu1 %v13365_v1 }
 0x1c2   :  { %10022 = vmatmul.mubr.msk.bf16.gmra.mrb[28].mxu0 %vm262_vm1, %v13565_v29  ;;  %10047 = vmatmul.mubr.msk.bf16.gmra.mrb[28].mxu1 %vm262_vm1, %v13565_v29 }
 0x1c3   :  { %1673 = vmatprep.mubr.bf16.mxu0 %v13365_v1  ;;  %1946 = vmatprep.mubr.bf16.mxu1 %v13365_v1 }
 0x1ca   :  { %10023 = vmatmul.mubr.msk.bf16.gmra.mrb[32].mxu0 %vm262_vm1, %v13582_v32  ;;  %10048 = vmatmul.mubr.msk.bf16.gmra.mrb[32].mxu1 %vm262_vm1, %v13582_v32 }
 0x1cb   :  { %1683 = vmatprep.mubr.bf16.mxu0 %v13365_v1  ;;  %1956 = vmatprep.mubr.bf16.mxu1 %v13365_v1 }
 0x1d2   :  { %10024 = vmatmul.mubr.msk.bf16.gmra.mrb[36].mxu0 %vm262_vm1, %v13593_v33  ;;  %10049 = vmatmul.mubr.msk.bf16.gmra.mrb[36].mxu1 %vm262_vm1, %v13593_v33 }
 0x1d3   :  { %1693 = vmatprep.mubr.bf16.mxu0 %v13365_v1  ;;  %1966 = vmatprep.mubr.bf16.mxu1 %v13365_v1 }
 0x1da   :  { %10025 = vmatmul.mubr.msk.bf16.gmra.mrb[40].mxu0 %vm262_vm1, %v13604_v34  ;;  %10050 = vmatmul.mubr.msk.bf16.gmra.mrb[40].mxu1 %vm262_vm1, %v13604_v34 }
 0x1db   :  { %1703 = vmatprep.mubr.bf16.mxu0 %v13365_v1  ;;  %1976 = vmatprep.mubr.bf16.mxu1 %v13365_v1 }
 0x1e2   :  { %10026 = vmatmul.mubr.msk.bf16.gmra.mrb[44].mxu0 %vm262_vm1, %v13615_v35  ;;  %10051 = vmatmul.mubr.msk.bf16.gmra.mrb[44].mxu1 %vm262_vm1, %v13615_v35 }
 0x1e3   :  { %1713 = vmatprep.mubr.bf16.mxu0 %v13365_v1  ;;  %1986 = vmatprep.mubr.bf16.mxu1 %v13365_v1 }
 0x1ea   :  { %10027 = vmatmul.mubr.msk.bf16.gmra.mrb[48].mxu0 %vm262_vm1, %v13626_v36  ;;  %10052 = vmatmul.mubr.msk.bf16.gmra.mrb[48].mxu1 %vm262_vm1, %v13626_v36 }
 0x1eb   :  { %1723 = vmatprep.mubr.bf16.mxu0 %v13365_v1  ;;  %1996 = vmatprep.mubr.bf16.mxu1 %v13365_v1 }
 0x1f2   :  { %10028 = vmatmul.mubr.msk.bf16.gmra.mrb[52].mxu0 %vm262_vm1, %v13637_v37  ;;  %10053 = vmatmul.mubr.msk.bf16.gmra.mrb[52].mxu1 %vm262_vm1, %v13637_v37 }
 0x1f3   :  { %1733 = vmatprep.mubr.bf16.mxu0 %v13365_v1  ;;  %2006 = vmatprep.mubr.bf16.mxu1 %v13365_v1 }
 0x1fa   :  { %10029 = vmatmul.mubr.msk.bf16.gmra.mrb[56].mxu0 %vm262_vm1, %v13648_v38  ;;  %10054 = vmatmul.mubr.msk.bf16.gmra.mrb[56].mxu1 %vm262_vm1, %v13648_v38 }
 0x1fb   :  { %1743 = vmatprep.mubr.bf16.mxu0 %v13365_v1  ;;  %2016 = vmatprep.mubr.bf16.mxu1 %v13365_v1 }
 0x202   :  { %10030 = vmatmul.mubr.msk.bf16.gmra.mrb[60].mxu0 %vm262_vm1, %v13659_v39  ;;  %10055 = vmatmul.mubr.msk.bf16.gmra.mrb[60].mxu1 %vm262_vm1, %v13659_v39 }
 0x203   :  { %1753 = vmatprep.mubr.bf16.mxu0 %v13365_v1  ;;  %2026 = vmatprep.mubr.bf16.mxu1 %v13365_v1 }
 0x20a   :  { %10031 = vmatmul.mubr.msk.bf16.gmra.mrb[64].mxu0 %vm262_vm1, %v13670_v40  ;;  %10056 = vmatmul.mubr.msk.bf16.gmra.mrb[64].mxu1 %vm262_vm1, %v13670_v40 }
 0x20b   :  { %1763 = vmatprep.mubr.bf16.mxu0 %v13365_v1  ;;  %2036 = vmatprep.mubr.bf16.mxu1 %v13365_v1 }
 0x212   :  { %10032 = vmatmul.mubr.msk.bf16.gmra.mrb[68].mxu0 %vm262_vm1, %v13681_v41  ;;  %10057 = vmatmul.mubr.msk.bf16.gmra.mrb[68].mxu1 %vm262_vm1, %v13681_v41 }
 0x213   :  { %1773 = vmatprep.mubr.bf16.mxu0 %v13365_v1  ;;  %2046 = vmatprep.mubr.bf16.mxu1 %v13365_v1 }
 0x21a   :  { %10033 = vmatmul.mubr.msk.bf16.gmra.mrb[72].mxu0 %vm262_vm1, %v13692_v42  ;;  %10058 = vmatmul.mubr.msk.bf16.gmra.mrb[72].mxu1 %vm262_vm1, %v13692_v42 }
 0x21b   :  { %1783 = vmatprep.mubr.bf16.mxu0 %v13365_v1  ;;  %2056 = vmatprep.mubr.bf16.mxu1 %v13365_v1 }
 0x222   :  { %10034 = vmatmul.mubr.msk.bf16.gmra.mrb[76].mxu0 %vm262_vm1, %v13703_v43  ;;  %10059 = vmatmul.mubr.msk.bf16.gmra.mrb[76].mxu1 %vm262_vm1, %v13703_v43 }
 0x223   :  { %1793 = vmatprep.mubr.bf16.mxu0 %v13365_v1  ;;  %2066 = vmatprep.mubr.bf16.mxu1 %v13365_v1 }
 0x22a   :  { %10035 = vmatmul.mubr.msk.bf16.gmra.mrb[80].mxu0 %vm262_vm1, %v13714_v44  ;;  %10060 = vmatmul.mubr.msk.bf16.gmra.mrb[80].mxu1 %vm262_vm1, %v13714_v44 }
 0x22b   :  { %1803 = vmatprep.mubr.bf16.mxu0 %v13365_v1  ;;  %2076 = vmatprep.mubr.bf16.mxu1 %v13365_v1 }
 0x232   :  { %10036 = vmatmul.mubr.msk.bf16.gmra.mrb[84].mxu0 %vm262_vm1, %v13725_v45  ;;  %10061 = vmatmul.mubr.msk.bf16.gmra.mrb[84].mxu1 %vm262_vm1, %v13725_v45 }
 0x233   :  { %1813 = vmatprep.mubr.bf16.mxu0 %v13365_v1  ;;  %2086 = vmatprep.mubr.bf16.mxu1 %v13365_v1 }
 0x23a   :  { %10037 = vmatmul.mubr.msk.bf16.gmra.mrb[88].mxu0 %vm262_vm1, %v13736_v46  ;;  %10062 = vmatmul.mubr.msk.bf16.gmra.mrb[88].mxu1 %vm262_vm1, %v13736_v46 }
 0x23b   :  { %1823 = vmatprep.mubr.bf16.mxu0 %v13365_v1  ;;  %2096 = vmatprep.mubr.bf16.mxu1 %v13365_v1 }
 0x242   :  { %10038 = vmatmul.mubr.msk.bf16.gmra.mrb[92].mxu0 %vm262_vm1, %v14086_v5  ;;  %10063 = vmatmul.mubr.msk.bf16.gmra.mrb[92].mxu1 %vm262_vm1, %v14086_v5 }
 0x243   :  { %2396 = vmatprep.mubr.bf16.mxu0 %v13365_v1  ;;  %2669 = vmatprep.mubr.bf16.mxu1 %v13365_v1 }
 0x24a   :  { %10082 = vmatmul.mubr.msk.bf16.vlgmr.msra.gmra.mrb[0].mxu0 %vm262_vm1, %v13483_v17  ;;  %10107 = vmatmul.mubr.msk.bf16.vlgmr.msra.gmra.mrb[0].mxu1 %vm262_vm1, %v13483_v17  ;;  %v12437_v17 = vld [vmem:[%s16593_s3 + $0x200] ss:$16 sps:$4 sm:$0xff]  }
 0x24b   :  { %3168 = vmatpush1.bf16.msra.mxu0 %v12424_v6  ;;  %3441 = vmatpush1.bf16.msra.mxu1 %v12427_v7  ;;  %v12503_v6 = vld [vmem:[%s16593_s3 + $0x34c] ss:$16 sps:$4 sm:$0xff]   ;;  %v12498_v7 = vld [vmem:[%s16593_s3 + $0x340] ss:$16 sps:$4 sm:$0xff]  }
 0x24c   :  { %2406 = vmatprep.mubr.bf16.mxu0 %v13365_v1  ;;  %2679 = vmatprep.mubr.bf16.mxu1 %v13365_v1 }
 0x24d   :  { %10148 = vmatprep.subr.msk.bf16.mxu0 %vm335_vm0, %v12430_v10  ;;  %10173 = vmatprep.subr.msk.bf16.mxu1 %vm335_vm0, %v12432_v11  ;;  %v12509_v10 = vld [vmem:[%s16593_s3 + $0x36c] ss:$16 sps:$4 sm:$0xff]   ;;  %v12504_v11 = vld [vmem:[%s16593_s3 + $0x360] ss:$16 sps:$4 sm:$0xff]  }
 0x24f   :  { %3170 = vmatpush1.bf16.msra.mxu0 %v3156_v12  ;;  %3443 = vmatpush1.bf16.msra.mxu1 %v3162_v13  ;;  %v12507_v12 = vld [vmem:[%s16593_s3 + $0x368] ss:$16 sps:$4 sm:$0xff]   ;;  %v12510_v13 = vld [vmem:[%s16593_s3 + $0x380] ss:$16 sps:$4 sm:$0xff]  }
 0x250   :  { %4630 = vmatprep.subr.bf16.mxu0 %v12439_v14  ;;  %4743 = vmatprep.subr.bf16.mxu1 %v12442_v16  ;;  %v12512_v14 = vld [vmem:[%s16593_s3 + $0x384] ss:$16 sps:$4 sm:$0xff]   ;;  %v13355_v16 = vld [vmem:[%s16592_s0 + $0x88] sm:$0xff]  }
 0x252   :  { %10083 = vmatmul.mubr.msk.bf16.gmra.mrb[4].mxu0 %vm262_vm1, %v13510_v24  ;;  %10108 = vmatmul.mubr.msk.bf16.gmra.mrb[4].mxu1 %vm262_vm1, %v13510_v24  ;;  %v13343_v24 = vld [vmem:[%s16592_s0 + $0x28] sm:$0xff]  }
 0x253   :  { %2416 = vmatprep.mubr.bf16.mxu0 %v13365_v1  ;;  %2689 = vmatprep.mubr.bf16.mxu1 %v13365_v1 }
 0x25a   :  { %10084 = vmatmul.mubr.msk.bf16.gmra.mrb[8].mxu0 %vm262_vm1, %v13521_v25  ;;  %10109 = vmatmul.mubr.msk.bf16.gmra.mrb[8].mxu1 %vm262_vm1, %v13521_v25  ;;  %v12449_v25 = vld [vmem:[%s16593_s3 + $0x240] ss:$16 sps:$4 sm:$0xff]  }
 0x25b   :  { %2426 = vmatprep.mubr.bf16.mxu0 %v13365_v1  ;;  %2699 = vmatprep.mubr.bf16.mxu1 %v13365_v1 }
 0x262   :  { %10085 = vmatmul.mubr.msk.bf16.gmra.mrb[12].mxu0 %vm262_vm1, %v13532_v26  ;;  %10110 = vmatmul.mubr.msk.bf16.gmra.mrb[12].mxu1 %vm262_vm1, %v13532_v26  ;;  %v12451_v26 = vld [vmem:[%s16593_s3 + $0x244] ss:$16 sps:$4 sm:$0xff]  }
 0x263   :  { %2436 = vmatprep.mubr.bf16.mxu0 %v13365_v1  ;;  %2709 = vmatprep.mubr.bf16.mxu1 %v13365_v1 }
 0x26a   :  { %10086 = vmatmul.mubr.msk.bf16.gmra.mrb[16].mxu0 %vm262_vm1, %v13543_v27  ;;  %10111 = vmatmul.mubr.msk.bf16.gmra.mrb[16].mxu1 %vm262_vm1, %v13543_v27  ;;  %v12452_v27 = vld [vmem:[%s16593_s3 + $0x248] ss:$16 sps:$4 sm:$0xff]  }
 0x26b   :  { %2446 = vmatprep.mubr.bf16.mxu0 %v13365_v1  ;;  %2719 = vmatprep.mubr.bf16.mxu1 %v13365_v1 }
 0x272   :  { %10087 = vmatmul.mubr.msk.bf16.gmra.mrb[20].mxu0 %vm262_vm1, %v13554_v28  ;;  %10112 = vmatmul.mubr.msk.bf16.gmra.mrb[20].mxu1 %vm262_vm1, %v13554_v28  ;;  %v12454_v28 = vld [vmem:[%s16593_s3 + $0x24c] ss:$16 sps:$4 sm:$0xff]  }
 0x273   :  { %2456 = vmatprep.mubr.bf16.mxu0 %v13365_v1  ;;  %2729 = vmatprep.mubr.bf16.mxu1 %v13365_v1 }
 0x27a   :  { %10088 = vmatmul.mubr.msk.bf16.gmra.mrb[24].mxu0 %vm262_vm1, %v13565_v29  ;;  %10113 = vmatmul.mubr.msk.bf16.gmra.mrb[24].mxu1 %vm262_vm1, %v13565_v29  ;;  %v13344_v29 = vld [vmem:[%s16592_s0 + $0x30] sm:$0xff]  }
 0x27b   :  { %2466 = vmatprep.mubr.bf16.mxu0 %v13365_v1  ;;  %2739 = vmatprep.mubr.bf16.mxu1 %v13365_v1 }
 0x282   :  { %10089 = vmatmul.mubr.msk.bf16.gmra.mrb[28].mxu0 %vm262_vm1, %v13582_v32  ;;  %10114 = vmatmul.mubr.msk.bf16.gmra.mrb[28].mxu1 %vm262_vm1, %v13582_v32  ;;  %v12458_v32 = vld [vmem:[%s16593_s3 + $0x268] ss:$16 sps:$4 sm:$0xff]  }
 0x283   :  { %2476 = vmatprep.mubr.bf16.mxu0 %v13365_v1  ;;  %2749 = vmatprep.mubr.bf16.mxu1 %v13365_v1 }
 0x28a   :  { %10090 = vmatmul.mubr.msk.bf16.gmra.mrb[32].mxu0 %vm262_vm1, %v13593_v33  ;;  %10115 = vmatmul.mubr.msk.bf16.gmra.mrb[32].mxu1 %vm262_vm1, %v13593_v33  ;;  %v12460_v33 = vld [vmem:[%s16593_s3 + $0x26c] ss:$16 sps:$4 sm:$0xff]  }
 0x28b   :  { %2486 = vmatprep.mubr.bf16.mxu0 %v13365_v1  ;;  %2759 = vmatprep.mubr.bf16.mxu1 %v13365_v1 }
 0x292   :  { %10091 = vmatmul.mubr.msk.bf16.gmra.mrb[36].mxu0 %vm262_vm1, %v13604_v34  ;;  %10116 = vmatmul.mubr.msk.bf16.gmra.mrb[36].mxu1 %vm262_vm1, %v13604_v34  ;;  %v13345_v34 = vld [vmem:[%s16592_s0 + $0x38] sm:$0xff]  }
 0x293   :  { %2496 = vmatprep.mubr.bf16.mxu0 %v13365_v1  ;;  %2769 = vmatprep.mubr.bf16.mxu1 %v13365_v1 }
 0x29a   :  { %10092 = vmatmul.mubr.msk.bf16.gmra.mrb[40].mxu0 %vm262_vm1, %v13615_v35  ;;  %10117 = vmatmul.mubr.msk.bf16.gmra.mrb[40].mxu1 %vm262_vm1, %v13615_v35  ;;  %v13346_v35 = vld [vmem:[%s16592_s0 + $0x40] sm:$0xff]  }
 0x29b   :  { %2506 = vmatprep.mubr.bf16.mxu0 %v13365_v1  ;;  %2779 = vmatprep.mubr.bf16.mxu1 %v13365_v1 }
 0x2a2   :  { %10093 = vmatmul.mubr.msk.bf16.gmra.mrb[44].mxu0 %vm262_vm1, %v13626_v36  ;;  %10118 = vmatmul.mubr.msk.bf16.gmra.mrb[44].mxu1 %vm262_vm1, %v13626_v36  ;;  %v12461_v36 = vld [vmem:[%s16593_s3 + $0x280] ss:$16 sps:$4 sm:$0xff]  }
 0x2a3   :  { %2516 = vmatprep.mubr.bf16.mxu0 %v13365_v1  ;;  %2789 = vmatprep.mubr.bf16.mxu1 %v13365_v1 }
 0x2aa   :  { %10094 = vmatmul.mubr.msk.bf16.gmra.mrb[48].mxu0 %vm262_vm1, %v13637_v37  ;;  %10119 = vmatmul.mubr.msk.bf16.gmra.mrb[48].mxu1 %vm262_vm1, %v13637_v37  ;;  %v12463_v37 = vld [vmem:[%s16593_s3 + $0x284] ss:$16 sps:$4 sm:$0xff]  }
 0x2ab   :  { %2526 = vmatprep.mubr.bf16.mxu0 %v13365_v1  ;;  %2799 = vmatprep.mubr.bf16.mxu1 %v13365_v1 }
 0x2b2   :  { %10095 = vmatmul.mubr.msk.bf16.gmra.mrb[52].mxu0 %vm262_vm1, %v13648_v38  ;;  %10120 = vmatmul.mubr.msk.bf16.gmra.mrb[52].mxu1 %vm262_vm1, %v13648_v38  ;;  %v12464_v38 = vld [vmem:[%s16593_s3 + $0x288] ss:$16 sps:$4 sm:$0xff]  }
 0x2b3   :  { %2536 = vmatprep.mubr.bf16.mxu0 %v13365_v1  ;;  %2809 = vmatprep.mubr.bf16.mxu1 %v13365_v1 }
 0x2ba   :  { %10096 = vmatmul.mubr.msk.bf16.gmra.mrb[56].mxu0 %vm262_vm1, %v13659_v39  ;;  %10121 = vmatmul.mubr.msk.bf16.gmra.mrb[56].mxu1 %vm262_vm1, %v13659_v39  ;;  %v12466_v39 = vld [vmem:[%s16593_s3 + $0x28c] ss:$16 sps:$4 sm:$0xff]  }
 0x2bb   :  { %2546 = vmatprep.mubr.bf16.mxu0 %v13365_v1  ;;  %2819 = vmatprep.mubr.bf16.mxu1 %v13365_v1 }
 0x2c2   :  { %10097 = vmatmul.mubr.msk.bf16.gmra.mrb[60].mxu0 %vm262_vm1, %v13670_v40  ;;  %10122 = vmatmul.mubr.msk.bf16.gmra.mrb[60].mxu1 %vm262_vm1, %v13670_v40  ;;  %v13347_v40 = vld [vmem:[%s16592_s0 + $0x48] sm:$0xff]  }
 0x2c3   :  { %2556 = vmatprep.mubr.bf16.mxu0 %v13365_v1  ;;  %2829 = vmatprep.mubr.bf16.mxu1 %v13365_v1 }
 0x2ca   :  { %10098 = vmatmul.mubr.msk.bf16.gmra.mrb[64].mxu0 %vm262_vm1, %v13681_v41  ;;  %10123 = vmatmul.mubr.msk.bf16.gmra.mrb[64].mxu1 %vm262_vm1, %v13681_v41  ;;  %v12467_v41 = vld [vmem:[%s16593_s3 + $0x2a0] ss:$16 sps:$4 sm:$0xff]  }
 0x2cb   :  { %2566 = vmatprep.mubr.bf16.mxu0 %v13365_v1  ;;  %2839 = vmatprep.mubr.bf16.mxu1 %v13365_v1 }
 0x2d2   :  { %10099 = vmatmul.mubr.msk.bf16.gmra.mrb[68].mxu0 %vm262_vm1, %v13692_v42  ;;  %10124 = vmatmul.mubr.msk.bf16.gmra.mrb[68].mxu1 %vm262_vm1, %v13692_v42  ;;  %v12469_v42 = vld [vmem:[%s16593_s3 + $0x2a4] ss:$16 sps:$4 sm:$0xff]  }
 0x2d3   :  { %2576 = vmatprep.mubr.bf16.mxu0 %v13365_v1  ;;  %2849 = vmatprep.mubr.bf16.mxu1 %v13365_v1 }
 0x2da   :  { %10100 = vmatmul.mubr.msk.bf16.gmra.mrb[72].mxu0 %vm262_vm1, %v13703_v43  ;;  %10125 = vmatmul.mubr.msk.bf16.gmra.mrb[72].mxu1 %vm262_vm1, %v13703_v43  ;;  %v12470_v43 = vld [vmem:[%s16593_s3 + $0x2a8] ss:$16 sps:$4 sm:$0xff]  }
 0x2db   :  { %2586 = vmatprep.mubr.bf16.mxu0 %v13365_v1  ;;  %2859 = vmatprep.mubr.bf16.mxu1 %v13365_v1 }
 0x2e2   :  { %10101 = vmatmul.mubr.msk.bf16.gmra.mrb[76].mxu0 %vm262_vm1, %v13714_v44  ;;  %10126 = vmatmul.mubr.msk.bf16.gmra.mrb[76].mxu1 %vm262_vm1, %v13714_v44  ;;  %v12472_v44 = vld [vmem:[%s16593_s3 + $0x2ac] ss:$16 sps:$4 sm:$0xff]  }
 0x2e3   :  { %2596 = vmatprep.mubr.bf16.mxu0 %v13365_v1  ;;  %2869 = vmatprep.mubr.bf16.mxu1 %v13365_v1 }
 0x2ea   :  { %10102 = vmatmul.mubr.msk.bf16.gmra.mrb[80].mxu0 %vm262_vm1, %v13725_v45  ;;  %10127 = vmatmul.mubr.msk.bf16.gmra.mrb[80].mxu1 %vm262_vm1, %v13725_v45  ;;  %v13348_v45 = vld [vmem:[%s16592_s0 + $0x50] sm:$0xff]  }
 0x2eb   :  { %2606 = vmatprep.mubr.bf16.mxu0 %v13365_v1  ;;  %2879 = vmatprep.mubr.bf16.mxu1 %v13365_v1 }
 0x2f2   :  { %10103 = vmatmul.mubr.msk.bf16.gmra.mrb[84].mxu0 %vm262_vm1, %v13736_v46  ;;  %10128 = vmatmul.mubr.msk.bf16.gmra.mrb[84].mxu1 %vm262_vm1, %v13736_v46  ;;  %v13349_v46 = vld [vmem:[%s16592_s0 + $0x58] sm:$0xff]  }
 0x2f3   :  { %2616 = vmatprep.mubr.bf16.mxu0 %v13365_v1  ;;  %2889 = vmatprep.mubr.bf16.mxu1 %v13365_v1 }
 0x2fa   :  { %10104 = vmatmul.mubr.msk.bf16.gmra.mrb[88].mxu0 %vm262_vm1, %v14086_v5  ;;  %10129 = vmatmul.mubr.msk.bf16.gmra.mrb[88].mxu1 %vm262_vm1, %v14086_v5  ;;  %v12500_v5 = vld [vmem:[%s16593_s3 + $0x344] ss:$16 sps:$4 sm:$0xff]  }
 0x2fb   :  { %2626 = vmatprep.mubr.bf16.mxu0 %v13365_v1  ;;  %2899 = vmatprep.mubr.bf16.mxu1 %v13365_v1 }
 0x302   :  { %10105 = vmatmul.mubr.msk.bf16.gmra.mrb[92].mxu0 %vm262_vm1, %v12436_v15  ;;  %10130 = vmatmul.mubr.msk.bf16.gmra.mrb[92].mxu1 %vm262_vm1, %v12436_v15  ;;  %v12515_v15 = vld [vmem:[%s16593_s3 + $0x38c] ss:$16 sps:$4 sm:$0xff]  }
 0x303   :  { %3199 = vmatprep.mubr.bf16.mxu0 %v13365_v1  ;;  %3472 = vmatprep.mubr.bf16.mxu1 %v13365_v1 }
 0x30a   :  { %10149 = vmatmul.mubr.msk.bf16.vlgmr.msra.gmra.mrb[0].mxu0 %vm262_vm1, %v13342_v21  ;;  %10174 = vmatmul.mubr.msk.bf16.vlgmr.msra.gmra.mrb[0].mxu1 %vm262_vm1, %v13342_v21  ;;  %v12519_v21 = vld [vmem:[%s16593_s3 + $0x3a8] ss:$16 sps:$4 sm:$0xff]  }
 0x30b   :  { %3209 = vmatprep.mubr.bf16.mxu0 %v13365_v1  ;;  %3482 = vmatprep.mubr.bf16.mxu1 %v13365_v1 }
 0x30c   :  { %4631 = vmatpush1.bf16.msra.mxu0 %v12437_v17  ;;  %4744 = vmatpush1.bf16.msra.mxu1 %v12440_v18  ;;  %v12513_v17 = vld [vmem:[%s16593_s3 + $0x388] ss:$16 sps:$4 sm:$0xff]   ;;  %v12518_v18 = vld [vmem:[%s16593_s3 + $0x3a4] ss:$16 sps:$4 sm:$0xff]  }
 0x30d   :  { %4632 = vmatprep.subr.bf16.mxu0 %v12445_v19  ;;  %4745 = vmatprep.subr.bf16.mxu1 %v12448_v20  ;;  %v12521_v19 = vld [vmem:[%s16593_s3 + $0x3ac] ss:$16 sps:$4 sm:$0xff]   ;;  %v12516_v20 = vld [vmem:[%s16593_s3 + $0x3a0] ss:$16 sps:$4 sm:$0xff]  }
 0x310   :  { %4633 = vmatpush1.bf16.msra.mxu0 %v12443_v22  ;;  %4746 = vmatpush1.bf16.msra.mxu1 %v12446_v23  ;;  %v13356_v22 = vld [vmem:[%s16592_s0 + $0x90] sm:$0xff]  }
 0x311   :  { %4634 = vmatprep.subr.bf16.mxu0 %v12451_v26  ;;  %4747 = vmatprep.subr.bf16.mxu1 %v12454_v28  ;;  %v12524_v23 = vld [vmem:[%s16593_s3 + $0x3c4] ss:$16 sps:$4 sm:$0xff]   ;;  %v12525_v26 = vld [vmem:[%s16593_s3 + $0x3c8] ss:$16 sps:$4 sm:$0xff]   ;;  %v12533_v28 = vld [vmem:[%s16593_s3 + $0x3ec] ss:$16 sps:$4 sm:$0xff]  }
 0x312   :  { %10150 = vmatmul.mubr.msk.bf16.gmra.mrb[4].mxu0 %vm262_vm1, %v13343_v24  ;;  %10175 = vmatmul.mubr.msk.bf16.gmra.mrb[4].mxu1 %vm262_vm1, %v13343_v24  ;;  %v12527_v24 = vld [vmem:[%s16593_s3 + $0x3cc] ss:$16 sps:$4 sm:$0xff]  }
 0x313   :  { %3219 = vmatprep.mubr.bf16.mxu0 %v13365_v1  ;;  %3492 = vmatprep.mubr.bf16.mxu1 %v13365_v1 }
 0x314   :  { %4635 = vmatpush1.bf16.msra.mxu0 %v12449_v25  ;;  %4748 = vmatpush1.bf16.msra.mxu1 %v12452_v27  ;;  %v12522_v25 = vld [vmem:[%s16593_s3 + $0x3c0] ss:$16 sps:$4 sm:$0xff]   ;;  %v12530_v27 = vld [vmem:[%s16593_s3 + $0x3e4] ss:$16 sps:$4 sm:$0xff]  }
 0x315   :  { %4636 = vmatprep.subr.bf16.mxu0 %v12457_v31  ;;  %4749 = vmatprep.subr.bf16.mxu1 %v12460_v33  ;;  %v13357_v31 = vld [vmem:[%s16592_s0 + $0x98] sm:$0xff]   ;;  %v13359_v33 = vld [vmem:[%s16592_s0 + $0xa8] sm:$0xff]  }
 0x318   :  { %4637 = vmatpush1.bf16.msra.mxu0 %v12455_v30  ;;  %4750 = vmatpush1.bf16.msra.mxu1 %v12458_v32  ;;  %v12531_v30 = vld [vmem:[%s16593_s3 + $0x3e8] ss:$16 sps:$4 sm:$0xff]   ;;  %v13358_v32 = vld [vmem:[%s16592_s0 + $0xa0] sm:$0xff]  }
 0x319   :  { %4638 = vmatprep.subr.bf16.mxu0 %v12463_v37  ;;  %4751 = vmatprep.subr.bf16.mxu1 %v12466_v39  ;;  %v13363_v37 = vld [vmem:[%s16592_s0 + $0xc8] sm:$0xff]   ;;  %v12536_v39 = vld [vmem:[%s16593_s3 + $0x4] ss:$16 sps:$4 sm:$0xff]  }
 0x31a   :  { %10151 = vmatmul.mubr.msk.bf16.gmra.mrb[8].mxu0 %vm262_vm1, %v13344_v29  ;;  %10176 = vmatmul.mubr.msk.bf16.gmra.mrb[8].mxu1 %vm262_vm1, %v13344_v29  ;;  %v12528_v29 = vld [vmem:[%s16593_s3 + $0x3e0] ss:$16 sps:$4 sm:$0xff]  }
 0x31b   :  { %3229 = vmatprep.mubr.bf16.mxu0 %v13365_v1  ;;  %3502 = vmatprep.mubr.bf16.mxu1 %v13365_v1 }
 0x31c   :  { %4639 = vmatpush1.bf16.msra.mxu0 %v12461_v36  ;;  %4752 = vmatpush1.bf16.msra.mxu1 %v12464_v38  ;;  %v13362_v36 = vld [vmem:[%s16592_s0 + $0xc0] sm:$0xff]   ;;  %v13364_v38 = vld [vmem:[%s16592_s0 + $0xd0] sm:$0xff]  }
 0x31d   :  { %4640 = vmatprep.subr.bf16.mxu0 %v12469_v42  ;;  %4753 = vmatprep.subr.bf16.mxu1 %v12472_v44  ;;  %v4051_v42 = vlaneseq }
 0x320   :  { %4641 = vmatpush1.bf16.msra.mxu0 %v12467_v41  ;;  %4754 = vmatpush1.bf16.msra.mxu1 %v12470_v43  ;;  %v12473_v41 = vld [vmem:[%s16592_s0 + $0xd8] sm:$0xff]  }
 0x321   :  { %4642 = vmatprep.subr.bf16.mxu0 %v12476_v48  ;;  %4755 = vmatprep.subr.bf16.mxu1 %v12479_v50 }
 0x322   :  { %10152 = vmatmul.mubr.msk.bf16.gmra.mrb[12].mxu0 %vm262_vm1, %v13345_v34  ;;  %10177 = vmatmul.mubr.msk.bf16.gmra.mrb[12].mxu1 %vm262_vm1, %v13345_v34  ;;  %v13360_v34 = vld [vmem:[%s16592_s0 + $0xb0] sm:$0xff]  }
 0x323   :  { %3239 = vmatprep.mubr.bf16.mxu0 %v13365_v1  ;;  %3512 = vmatprep.mubr.bf16.mxu1 %v13365_v1 }
 0x324   :  { %4643 = vmatpush1.bf16.msra.mxu0 %v12474_v47  ;;  %4756 = vmatpush1.bf16.msra.mxu1 %v12477_v49  ;;  %v14625_v47 = vshrl.u32 %v4051_v42, 7 }
 0x325   :  { %4644 = vmatprep.subr.bf16.mxu0 %v12482_v51  ;;  %4757 = vmatprep.subr.bf16.mxu1 %v12485_v52  ;;  %v4049_v52 = vld [vmem:[%s16594_s2] sm:$0x3] }
 0x326   :  { %v14628_v51 = vsub.s32 0, %v14625_v47 }
 0x328   :  { %4645 = vmatpush1.bf16.msra.mxu0 %v12480_v53  ;;  %4758 = vmatpush1.bf16.msra.mxu1 %v12483_v54  ;;  %v14634_v53 = vsub.s32 1, %v14625_v47 }
 0x329   :  { %4646 = vmatprep.subr.bf16.mxu0 %v12488_v55  ;;  %4759 = vmatprep.subr.bf16.mxu1 %v12491_v57 }
 0x32a   :  { %10153 = vmatmul.mubr.msk.bf16.gmra.mrb[16].mxu0 %vm262_vm1, %v13346_v35  ;;  %10178 = vmatmul.mubr.msk.bf16.gmra.mrb[16].mxu1 %vm262_vm1, %v13346_v35  ;;  %v13361_v35 = vld [vmem:[%s16592_s0 + $0xb8] sm:$0xff]  }
 0x32b   :  { %3249 = vmatprep.mubr.bf16.mxu0 %v13365_v1  ;;  %3522 = vmatprep.mubr.bf16.mxu1 %v13365_v1 }
 0x32c   :  { %4647 = vmatpush1.bf16.msra.mxu0 %v12486_v56  ;;  %4760 = vmatpush1.bf16.msra.mxu1 %v12489_v59 }
 0x32d   :  { %4648 = vmatprep.subr.bf16.mxu0 %v12494_v63  ;;  %4761 = vmatprep.subr.bf16.mxu1 %v12497_v0  ;;  %v14640_v63 = vrot.slane %v4049_v52, %v14634_v53 }
 0x330   :  { %4649 = vmatpush1.bf16.msra.mxu0 %v12492_v2  ;;  %4762 = vmatpush1.bf16.msra.mxu1 %v12495_v3 }
 0x331   :  { %4650 = vmatprep.subr.bf16.mxu0 %v12500_v5  ;;  %4763 = vmatprep.subr.bf16.mxu1 %v12503_v6 }
 0x332   :  { %10154 = vmatmul.mubr.msk.bf16.gmra.mrb[20].mxu0 %vm262_vm1, %v13347_v40  ;;  %10179 = vmatmul.mubr.msk.bf16.gmra.mrb[20].mxu1 %vm262_vm1, %v13347_v40  ;;  %v12539_v40 = vld [vmem:[%s16593_s3 + $0xc] ss:$16 sps:$4 sm:$0xff]  }
 0x333   :  { %3259 = vmatprep.mubr.bf16.mxu0 %v13365_v1  ;;  %3532 = vmatprep.mubr.bf16.mxu1 %v13365_v1 }
 0x334   :  { %4651 = vmatpush1.bf16.msra.mxu0 %v12498_v7  ;;  %4764 = vmatpush1.bf16.msra.mxu1 %v12501_v8 }
 0x335   :  { %4652 = vmatprep.subr.bf16.mxu0 %v12506_v9  ;;  %4765 = vmatprep.subr.bf16.mxu1 %v12509_v10 }
 0x338   :  { %4653 = vmatpush1.bf16.msra.mxu0 %v12504_v11  ;;  %4766 = vmatpush1.bf16.msra.mxu1 %v12507_v12 }
 0x339   :  { %4654 = vmatprep.subr.bf16.mxu0 %v12512_v14  ;;  %4767 = vmatprep.subr.bf16.mxu1 %v12515_v15 }
 0x33a   :  { %10155 = vmatmul.mubr.msk.bf16.gmra.mrb[24].mxu0 %vm262_vm1, %v13348_v45  ;;  %10180 = vmatmul.mubr.msk.bf16.gmra.mrb[24].mxu1 %vm262_vm1, %v13348_v45 }
 0x33b   :  { %3269 = vmatprep.mubr.bf16.mxu0 %v13365_v1  ;;  %3542 = vmatprep.mubr.bf16.mxu1 %v13365_v1 }
 0x33c   :  { %4655 = vmatpush1.bf16.msra.mxu0 %v12510_v13  ;;  %4768 = vmatpush1.bf16.msra.mxu1 %v12513_v17 }
 0x33d   :  { %4656 = vmatprep.subr.bf16.mxu0 %v12518_v18  ;;  %4769 = vmatprep.subr.bf16.mxu1 %v12521_v19 }
 0x340   :  { %4657 = vmatpush1.bf16.msra.mxu0 %v12516_v20  ;;  %4770 = vmatpush1.bf16.msra.mxu1 %v12519_v21 }
 0x341   :  { %4658 = vmatprep.subr.bf16.mxu0 %v12524_v23  ;;  %4771 = vmatprep.subr.bf16.mxu1 %v12527_v24 }
 0x342   :  { %10156 = vmatmul.mubr.msk.bf16.gmra.mrb[28].mxu0 %vm262_vm1, %v13349_v46  ;;  %10181 = vmatmul.mubr.msk.bf16.gmra.mrb[28].mxu1 %vm262_vm1, %v13349_v46 }
 0x343   :  { %3279 = vmatprep.mubr.bf16.mxu0 %v13365_v1  ;;  %3552 = vmatprep.mubr.bf16.mxu1 %v13365_v1 }
 0x344   :  { %4659 = vmatpush1.bf16.msra.mxu0 %v12522_v25  ;;  %4772 = vmatpush1.bf16.msra.mxu1 %v12525_v26 }
 0x345   :  { %4660 = vmatprep.subr.bf16.mxu0 %v12530_v27  ;;  %4773 = vmatprep.subr.bf16.mxu1 %v12533_v28 }
 0x348   :  { %4661 = vmatpush1.bf16.msra.mxu0 %v12528_v29  ;;  %4774 = vmatpush1.bf16.msra.mxu1 %v12531_v30 }
 0x349   :  { %5176 = vmatprep.subr.bf16.mxu0 %v12536_v39  ;;  %5289 = vmatprep.subr.bf16.mxu1 %v12539_v40 }
 0x34a   :  { %10157 = vmatmul.mubr.msk.bf16.gmra.mrb[32].mxu0 %vm262_vm1, %v13350_v58  ;;  %10182 = vmatmul.mubr.msk.bf16.gmra.mrb[32].mxu1 %vm262_vm1, %v13350_v58  ;;  %v14637_v58 = vrot.slane %v4049_v52, %v14628_v51 }
 0x34b   :  { %3289 = vmatprep.mubr.bf16.mxu0 %v13365_v1  ;;  %3562 = vmatprep.mubr.bf16.mxu1 %v13365_v1 }
 0x352   :  { %10158 = vmatmul.mubr.msk.bf16.gmra.mrb[36].mxu0 %vm262_vm1, %v13351_v60  ;;  %10183 = vmatmul.mubr.msk.bf16.gmra.mrb[36].mxu1 %vm262_vm1, %v13351_v60 }
 0x353   :  { %3299 = vmatprep.mubr.bf16.mxu0 %v13365_v1  ;;  %3572 = vmatprep.mubr.bf16.mxu1 %v13365_v1 }
 0x35a   :  { %10159 = vmatmul.mubr.msk.bf16.gmra.mrb[40].mxu0 %vm262_vm1, %v13352_v61  ;;  %10184 = vmatmul.mubr.msk.bf16.gmra.mrb[40].mxu1 %vm262_vm1, %v13352_v61 }
 0x35b   :  { %3309 = vmatprep.mubr.bf16.mxu0 %v13365_v1  ;;  %3582 = vmatprep.mubr.bf16.mxu1 %v13365_v1 }
 0x362   :  { %10160 = vmatmul.mubr.msk.bf16.gmra.mrb[44].mxu0 %vm262_vm1, %v13353_v62  ;;  %10185 = vmatmul.mubr.msk.bf16.gmra.mrb[44].mxu1 %vm262_vm1, %v13353_v62 }
 0x363   :  { %3319 = vmatprep.mubr.bf16.mxu0 %v13365_v1  ;;  %3592 = vmatprep.mubr.bf16.mxu1 %v13365_v1 }
 0x36a   :  { %10161 = vmatmul.mubr.msk.bf16.gmra.mrb[48].mxu0 %vm262_vm1, %v13354_v4  ;;  %10186 = vmatmul.mubr.msk.bf16.gmra.mrb[48].mxu1 %vm262_vm1, %v13354_v4 }
 0x36b   :  { %3329 = vmatprep.mubr.bf16.mxu0 %v13365_v1  ;;  %3602 = vmatprep.mubr.bf16.mxu1 %v13365_v1 }
 0x372   :  { %10162 = vmatmul.mubr.msk.bf16.gmra.mrb[52].mxu0 %vm262_vm1, %v13355_v16  ;;  %10187 = vmatmul.mubr.msk.bf16.gmra.mrb[52].mxu1 %vm262_vm1, %v13355_v16 }
 0x373   :  { %3339 = vmatprep.mubr.bf16.mxu0 %v13365_v1  ;;  %3612 = vmatprep.mubr.bf16.mxu1 %v13365_v1 }
 0x37a   :  { %10163 = vmatmul.mubr.msk.bf16.gmra.mrb[56].mxu0 %vm262_vm1, %v13356_v22  ;;  %10188 = vmatmul.mubr.msk.bf16.gmra.mrb[56].mxu1 %vm262_vm1, %v13356_v22 }
 0x37b   :  { %3349 = vmatprep.mubr.bf16.mxu0 %v13365_v1  ;;  %3622 = vmatprep.mubr.bf16.mxu1 %v13365_v1 }
 0x382   :  { %10164 = vmatmul.mubr.msk.bf16.gmra.mrb[60].mxu0 %vm262_vm1, %v13357_v31  ;;  %10189 = vmatmul.mubr.msk.bf16.gmra.mrb[60].mxu1 %vm262_vm1, %v13357_v31 }
 0x383   :  { %3359 = vmatprep.mubr.bf16.mxu0 %v13365_v1  ;;  %3632 = vmatprep.mubr.bf16.mxu1 %v13365_v1 }
 0x38a   :  { %10165 = vmatmul.mubr.msk.bf16.gmra.mrb[64].mxu0 %vm262_vm1, %v13358_v32  ;;  %10190 = vmatmul.mubr.msk.bf16.gmra.mrb[64].mxu1 %vm262_vm1, %v13358_v32 }
 0x38b   :  { %3369 = vmatprep.mubr.bf16.mxu0 %v13365_v1  ;;  %3642 = vmatprep.mubr.bf16.mxu1 %v13365_v1 }
 0x392   :  { %10166 = vmatmul.mubr.msk.bf16.gmra.mrb[68].mxu0 %vm262_vm1, %v13359_v33  ;;  %10191 = vmatmul.mubr.msk.bf16.gmra.mrb[68].mxu1 %vm262_vm1, %v13359_v33 }
 0x393   :  { %3379 = vmatprep.mubr.bf16.mxu0 %v13365_v1  ;;  %3652 = vmatprep.mubr.bf16.mxu1 %v13365_v1 }
 0x39a   :  { %10167 = vmatmul.mubr.msk.bf16.gmra.mrb[72].mxu0 %vm262_vm1, %v13360_v34  ;;  %10192 = vmatmul.mubr.msk.bf16.gmra.mrb[72].mxu1 %vm262_vm1, %v13360_v34 }
 0x39b   :  { %3389 = vmatprep.mubr.bf16.mxu0 %v13365_v1  ;;  %3662 = vmatprep.mubr.bf16.mxu1 %v13365_v1 }
 0x3a2   :  { %10168 = vmatmul.mubr.msk.bf16.gmra.mrb[76].mxu0 %vm262_vm1, %v13361_v35  ;;  %10193 = vmatmul.mubr.msk.bf16.gmra.mrb[76].mxu1 %vm262_vm1, %v13361_v35 }
 0x3a3   :  { %3399 = vmatprep.mubr.bf16.mxu0 %v13365_v1  ;;  %3672 = vmatprep.mubr.bf16.mxu1 %v13365_v1 }
 0x3aa   :  { %10169 = vmatmul.mubr.msk.bf16.gmra.mrb[80].mxu0 %vm262_vm1, %v13362_v36  ;;  %10194 = vmatmul.mubr.msk.bf16.gmra.mrb[80].mxu1 %vm262_vm1, %v13362_v36 }
 0x3ab   :  { %3409 = vmatprep.mubr.bf16.mxu0 %v13365_v1  ;;  %3682 = vmatprep.mubr.bf16.mxu1 %v13365_v1 }
 0x3b2   :  { %10170 = vmatmul.mubr.msk.bf16.gmra.mrb[84].mxu0 %vm262_vm1, %v13363_v37  ;;  %10195 = vmatmul.mubr.msk.bf16.gmra.mrb[84].mxu1 %vm262_vm1, %v13363_v37 }
 0x3b3   :  { %3419 = vmatprep.mubr.bf16.mxu0 %v13365_v1  ;;  %3692 = vmatprep.mubr.bf16.mxu1 %v13365_v1 }
 0x3ba   :  { %10171 = vmatmul.mubr.msk.bf16.gmra.mrb[88].mxu0 %vm262_vm1, %v13364_v38  ;;  %10196 = vmatmul.mubr.msk.bf16.gmra.mrb[88].mxu1 %vm262_vm1, %v13364_v38 }
 0x3bb   :  { %3429 = vmatprep.mubr.bf16.mxu0 %v13365_v1  ;;  %3702 = vmatprep.mubr.bf16.mxu1 %v13365_v1 }
 0x3c2   :  { %10172 = vmatmul.mubr.msk.bf16.gmra.mrb[92].mxu0 %vm262_vm1, %v12473_v41  ;;  %10197 = vmatmul.mubr.msk.bf16.gmra.mrb[92].mxu1 %vm262_vm1, %v12473_v41 }
 0x3dd   :  { %v3201_v43 = vpop.f32.mrb[0].mxu0  ;;  %v3474_v44 = vpop.f32.mrb[0].mxu1 }
 0x3de   :  { %v3203_v45 = vpop.f32.mrb[1].mxu0  ;;  %v3476_v46 = vpop.f32.mrb[1].mxu1 }
 0x3df   :  { %v3205_v48 = vpop.f32.mrb[2].mxu0  ;;  %v3478_v49 = vpop.f32.mrb[2].mxu1 }
 0x3e0   :  { %v3207_v1 = vpop.f32.mrb[3].mxu0  ;;  %v3480_v50 = vpop.f32.mrb[3].mxu1 }
 0x3e5   :  { %v3211_v54 = vpop.f32.mrb[4].mxu0  ;;  %v3484_v55 = vpop.f32.mrb[4].mxu1 }
 0x3e6   :  { %v3905_v56 = vmax.f32 %v3201_v43, %v3211_v54  ;;  %v3907_v57 = vmax.f32 %v3474_v44, %v3484_v55  ;;  %v3213_v59 = vpop.f32.mrb[5].mxu0  ;;  %v3486_v60 = vpop.f32.mrb[5].mxu1 }
 0x3e7   :  { %v3906_v61 = vmax.f32 %v3203_v45, %v3213_v59  ;;  %v3908_v62 = vmax.f32 %v3476_v46, %v3486_v60  ;;  %v3215_v0 = vpop.f32.mrb[6].mxu0  ;;  %v3488_v2 = vpop.f32.mrb[6].mxu1 }
 0x3e8   :  { %v4001_v3 = vmax.f32 %v3905_v56, %v3907_v57  ;;  %v3909_v4 = vmax.f32 %v3205_v48, %v3215_v0  ;;  %v3911_v5 = vmax.f32 %v3478_v49, %v3488_v2  ;;  %v3217_v6 = vpop.f32.mrb[7].mxu0  ;;  %v3490_v7 = vpop.f32.mrb[7].mxu1 }
 0x3e9   :  { %v4002_v8 = vmax.f32 %v3906_v61, %v3908_v62  ;;  %v3910_v9 = vmax.f32 %v3207_v1, %v3217_v6  ;;  %v3912_v10 = vmax.f32 %v3480_v50, %v3490_v7 }
 0x3ea   :  { %v4061_v11 = vadd.f32 %v14637_v58, %v4001_v3  ;;  %v4003_v12 = vmax.f32 %v3909_v4, %v3911_v5 }
 0x3eb   :  { %v4062_v13 = vadd.f32 %v14640_v63, %v4002_v8  ;;  %v4004_v14 = vmax.f32 %v3910_v9, %v3912_v10  ;;  %v12534_v10 = vld [vmem:[%s16593_s3] ss:$16 sps:$4 sm:$0xff]  }
 0x3ec   :  { %v4063_v15 = vadd.f32 %v14637_v58, %v4003_v12  ;;  %v4109_v19 = vmax.f32 %v4061_v11, 0.0  ;;  %v12537_v11 = vld [vmem:[%s16593_s3 + $0x8] ss:$16 sps:$4 sm:$0xff]   ;;  %v12542_v12 = vld [vmem:[%s16593_s3 + $0x24] ss:$16 sps:$4 sm:$0xff]  }
 0x3ed   :  { %v4064_v16 = vadd.f32 %v14640_v63, %v4004_v14  ;;  %v3221_v17 = vpop.f32.mrb[8].mxu0  ;;  %v3494_v18 = vpop.f32.mrb[8].mxu1  ;;  %v4110_v23 = vmax.f32 %v4062_v13, 0.0  ;;  %v12545_v13 = vld [vmem:[%s16593_s3 + $0x2c] ss:$16 sps:$4 sm:$0xff]  }
 0x3ee   :  { %v4111_v20 = vmax.f32 %v4063_v15, 0.0  ;;  %v3223_v21 = vpop.f32.mrb[9].mxu0  ;;  %v3496_v22 = vpop.f32.mrb[9].mxu1 }
 0x3ef   :  { %v4112_v24 = vmax.f32 %v4064_v16, 0.0  ;;  %v3225_v25 = vpop.f32.mrb[10].mxu0  ;;  %v3498_v26 = vpop.f32.mrb[10].mxu1  ;;  %v12540_v16 = vld [vmem:[%s16593_s3 + $0x20] ss:$16 sps:$4 sm:$0xff]  }
 0x3f0   :  { %v14646_v27 = vpack.c.bf16 %v4111_v20, %v4109_v19  ;;  %v3227_v28 = vpop.f32.mrb[11].mxu0  ;;  %v3500_v29 = vpop.f32.mrb[11].mxu1 }
 0x3f1   :  { %v14648_v30 = vpack.c.bf16 %v4112_v24, %v4110_v23  ;;  %v12551_v23 = vld [vmem:[%s16593_s3 + $0x4c] ss:$16 sps:$4 sm:$0xff]  }
 0x3f5   :  { %v3231_v31 = vpop.f32.mrb[12].mxu0  ;;  %v3504_v32 = vpop.f32.mrb[12].mxu1 }
 0x3f6   :  { %v3913_v33 = vmax.f32 %v3221_v17, %v3231_v31  ;;  %v3915_v34 = vmax.f32 %v3494_v18, %v3504_v32  ;;  %v3233_v35 = vpop.f32.mrb[13].mxu0  ;;  %v3506_v36 = vpop.f32.mrb[13].mxu1  ;;  %v12543_v17 = vld [vmem:[%s16593_s3 + $0x28] ss:$16 sps:$4 sm:$0xff]  }
 0x3f7   :  { %v3914_v37 = vmax.f32 %v3223_v21, %v3233_v35  ;;  %v3916_v38 = vmax.f32 %v3496_v22, %v3506_v36  ;;  %v3235_v39 = vpop.f32.mrb[14].mxu0  ;;  %v3508_v40 = vpop.f32.mrb[14].mxu1  ;;  %v12548_v22 = vld [vmem:[%s16593_s3 + $0x44] ss:$16 sps:$4 sm:$0xff]  }
 0x3f8   :  { %v4005_v41 = vmax.f32 %v3913_v33, %v3915_v34  ;;  %v3917_v42 = vmax.f32 %v3225_v25, %v3235_v39  ;;  %v3919_v43 = vmax.f32 %v3498_v26, %v3508_v40  ;;  %v3237_v44 = vpop.f32.mrb[15].mxu0  ;;  %v3510_v45 = vpop.f32.mrb[15].mxu1  ;;  %v12549_v39 = vld [vmem:[%s16593_s3 + $0x48] ss:$16 sps:$4 sm:$0xff]  }
 0x3f9   :  { %v4006_v46 = vmax.f32 %v3914_v37, %v3916_v38  ;;  %v3918_v48 = vmax.f32 %v3227_v28, %v3237_v44  ;;  %v3920_v49 = vmax.f32 %v3500_v29, %v3510_v45  ;;  %v12546_v38 = vld [vmem:[%s16593_s3 + $0x40] ss:$16 sps:$4 sm:$0xff]  }
 0x3fa   :  { %v4065_v1 = vadd.f32 %v14637_v58, %v4005_v41  ;;  %v4007_v50 = vmax.f32 %v3917_v42, %v3919_v43  ;;  %v12554_v42 = vld [vmem:[%s16593_s3 + $0x64] ss:$16 sps:$4 sm:$0xff]   ;;  %v12557_v43 = vld [vmem:[%s16593_s3 + $0x6c] ss:$16 sps:$4 sm:$0xff]  }
 0x3fb   :  { %v4066_v52 = vadd.f32 %v14640_v63, %v4006_v46  ;;  %v4008_v54 = vmax.f32 %v3918_v48, %v3920_v49  ;;  %v12552_v48 = vld [vmem:[%s16593_s3 + $0x60] ss:$16 sps:$4 sm:$0xff]  }
 0x3fc   :  { %v4067_v55 = vadd.f32 %v14637_v58, %v4007_v50  ;;  %v4113_v60 = vmax.f32 %v4065_v1, 0.0 }
 0x3fd   :  { %v4068_v56 = vadd.f32 %v14640_v63, %v4008_v54  ;;  %v3241_v57 = vpop.f32.mrb[16].mxu0  ;;  %v3514_v59 = vpop.f32.mrb[16].mxu1  ;;  %v4114_v2 = vmax.f32 %v4066_v52, 0.0  ;;  %v12555_v52 = vld [vmem:[%s16593_s3 + $0x68] ss:$16 sps:$4 sm:$0xff]  }
 0x3fe   :  { %v4115_v61 = vmax.f32 %v4067_v55, 0.0  ;;  %v3243_v62 = vpop.f32.mrb[17].mxu0  ;;  %v3516_v0 = vpop.f32.mrb[17].mxu1  ;;  %v12560_v54 = vld [vmem:[%s16593_s3 + $0x84] ss:$16 sps:$4 sm:$0xff]  }
 0x3ff   :  { %v4116_v3 = vmax.f32 %v4068_v56, 0.0  ;;  %v3245_v4 = vpop.f32.mrb[18].mxu0  ;;  %v3518_v5 = vpop.f32.mrb[18].mxu1 }
 0x400   :  { %v14654_v6 = vpack.c.bf16 %v4115_v61, %v4113_v60  ;;  %v3247_v7 = vpop.f32.mrb[19].mxu0  ;;  %v3520_v8 = vpop.f32.mrb[19].mxu1  ;;  %v12563_v60 = vld [vmem:[%s16593_s3 + $0x8c] ss:$16 sps:$4 sm:$0xff]  }
 0x401   :  { %v14656_v9 = vpack.c.bf16 %v4116_v3, %v4114_v2 }
 0x403   :  { %4662 = vmatprep.mubr.bf16.mxu0 %v14656_v9  ;;  %4775 = vmatprep.mubr.bf16.mxu1 %v14656_v9 }
 0x404   :  { %4663 = vmatmul.mubr.bf16.vlgmr.msra.gmra.mrb[96].mxu0 %v14654_v6  ;;  %4776 = vmatmul.mubr.bf16.vlgmr.msra.gmra.mrb[96].mxu1 %v14654_v6 }
 0x405   :  { %v3251_v14 = vpop.f32.mrb[20].mxu0  ;;  %v3524_v15 = vpop.f32.mrb[20].mxu1  ;;  %5177 = vmatpush1.bf16.msra.mxu0 %v12534_v10  ;;  %5290 = vmatpush1.bf16.msra.mxu1 %v12537_v11  ;;  %v12561_v10 = vld [vmem:[%s16593_s3 + $0x88] ss:$16 sps:$4 sm:$0xff]   ;;  %v12566_v11 = vld [vmem:[%s16593_s3 + $0xa4] ss:$16 sps:$4 sm:$0xff]  }
 0x406   :  { %v3921_v18 = vmax.f32 %v3241_v57, %v3251_v14  ;;  %v3923_v19 = vmax.f32 %v3514_v59, %v3524_v15  ;;  %v3253_v20 = vpop.f32.mrb[21].mxu0  ;;  %v3526_v21 = vpop.f32.mrb[21].mxu1  ;;  %5178 = vmatprep.subr.bf16.mxu0 %v12542_v12  ;;  %5291 = vmatprep.subr.bf16.mxu1 %v12545_v13  ;;  %v12569_v12 = vld [vmem:[%s16593_s3 + $0xac] ss:$16 sps:$4 sm:$0xff]   ;;  %v12564_v15 = vld [vmem:[%s16593_s3 + $0xa0] ss:$16 sps:$4 sm:$0xff]  }
 0x407   :  { %v3922_v24 = vmax.f32 %v3243_v62, %v3253_v20  ;;  %v3924_v25 = vmax.f32 %v3516_v0, %v3526_v21  ;;  %v3255_v26 = vpop.f32.mrb[22].mxu0  ;;  %v3528_v28 = vpop.f32.mrb[22].mxu1  ;;  %v12572_v21 = vld [vmem:[%s16593_s3 + $0xc4] ss:$16 sps:$4 sm:$0xff]  }
 0x408   :  { %v4009_v29 = vmax.f32 %v3921_v18, %v3923_v19  ;;  %v3925_v31 = vmax.f32 %v3245_v4, %v3255_v26  ;;  %v3927_v32 = vmax.f32 %v3518_v5, %v3528_v28  ;;  %v3257_v33 = vpop.f32.mrb[23].mxu0  ;;  %v3530_v34 = vpop.f32.mrb[23].mxu1 }
 0x409   :  { %v4010_v35 = vmax.f32 %v3922_v24, %v3924_v25  ;;  %v3926_v36 = vmax.f32 %v3247_v7, %v3257_v33  ;;  %v3928_v37 = vmax.f32 %v3520_v8, %v3530_v34  ;;  %5179 = vmatpush1.bf16.msra.mxu0 %v12540_v16  ;;  %5292 = vmatpush1.bf16.msra.mxu1 %v12543_v17  ;;  %v12558_v8 = vld [vmem:[%s16593_s3 + $0x80] ss:$16 sps:$4 sm:$0xff]   ;;  %v12567_v16 = vld [vmem:[%s16593_s3 + $0xa8] ss:$16 sps:$4 sm:$0xff]  }
 0x40a   :  { %v4069_v40 = vadd.f32 %v14637_v58, %v4009_v29  ;;  %v4011_v41 = vmax.f32 %v3925_v31, %v3927_v32  ;;  %5180 = vmatprep.subr.bf16.mxu0 %v12548_v22  ;;  %5293 = vmatprep.subr.bf16.mxu1 %v12551_v23  ;;  %v12575_v22 = vld [vmem:[%s16593_s3 + $0xcc] ss:$16 sps:$4 sm:$0xff]  }
 0x40b   :  { %v4070_v44 = vadd.f32 %v14640_v63, %v4010_v35  ;;  %v4012_v45 = vmax.f32 %v3926_v36, %v3928_v37  ;;  %v12570_v37 = vld [vmem:[%s16593_s3 + $0xc0] ss:$16 sps:$4 sm:$0xff]  }
 0x40c   :  { %v4071_v46 = vadd.f32 %v14637_v58, %v4011_v41  ;;  %v4117_v55 = vmax.f32 %v4069_v40, 0.0  ;;  %v12578_v41 = vld [vmem:[%s16593_s3 + $0xe4] ss:$16 sps:$4 sm:$0xff]  }
 0x40d   :  { %v4072_v49 = vadd.f32 %v14640_v63, %v4012_v45  ;;  %v3261_v1 = vpop.f32.mrb[24].mxu0  ;;  %v3534_v50 = vpop.f32.mrb[24].mxu1  ;;  %5181 = vmatpush1.bf16.msra.mxu0 %v12546_v38  ;;  %5294 = vmatpush1.bf16.msra.mxu1 %v12549_v39  ;;  %v4118_v61 = vmax.f32 %v4070_v44, 0.0  ;;  %v12573_v38 = vld [vmem:[%s16593_s3 + $0xc8] ss:$16 sps:$4 sm:$0xff]  }
 0x40e   :  { %v4119_v56 = vmax.f32 %v4071_v46, 0.0  ;;  %v3263_v57 = vpop.f32.mrb[25].mxu0  ;;  %v3536_v59 = vpop.f32.mrb[25].mxu1  ;;  %5182 = vmatprep.subr.bf16.mxu0 %v12554_v42  ;;  %5295 = vmatprep.subr.bf16.mxu1 %v12557_v43  ;;  %v12581_v42 = vld [vmem:[%s16593_s3 + $0xec] ss:$16 sps:$4 sm:$0xff]  }
 0x40f   :  { %v4120_v62 = vmax.f32 %v4072_v49, 0.0  ;;  %v3265_v0 = vpop.f32.mrb[26].mxu0  ;;  %v3538_v2 = vpop.f32.mrb[26].mxu1  ;;  %v12576_v46 = vld [vmem:[%s16593_s3 + $0xe0] ss:$16 sps:$4 sm:$0xff]  }
 0x410   :  { %v14714_v3 = vpack.c.bf16 %v4119_v56, %v4117_v55  ;;  %v3267_v4 = vpop.f32.mrb[27].mxu0  ;;  %v3540_v5 = vpop.f32.mrb[27].mxu1 }
 0x411   :  { %v14716_v7 = vpack.c.bf16 %v4120_v62, %v4118_v61  ;;  %5183 = vmatpush1.bf16.msra.mxu0 %v12552_v48  ;;  %5296 = vmatpush1.bf16.msra.mxu1 %v12555_v52  ;;  %v12584_v52 = vld [vmem:[%s16593_s3 + $0x104] ss:$16 sps:$4 sm:$0xff]  }
 0x412   :  { %5184 = vmatprep.subr.bf16.mxu0 %v12560_v54  ;;  %5297 = vmatprep.subr.bf16.mxu1 %v12563_v60 }
 0x413   :  { %4672 = vmatprep.mubr.bf16.mxu0 %v14716_v7  ;;  %4785 = vmatprep.mubr.bf16.mxu1 %v14716_v7 }
 0x414   :  { %4673 = vmatmul.mubr.bf16.gmra.mrb[100].mxu0 %v14714_v3  ;;  %4786 = vmatmul.mubr.bf16.gmra.mrb[100].mxu1 %v14714_v3 }
 0x415   :  { %v3271_v13 = vpop.f32.mrb[28].mxu0  ;;  %v3544_v14 = vpop.f32.mrb[28].mxu1  ;;  %5185 = vmatpush1.bf16.msra.mxu0 %v12558_v8  ;;  %5298 = vmatpush1.bf16.msra.mxu1 %v12561_v10  ;;  %v12582_v10 = vld [vmem:[%s16593_s3 + $0x100] ss:$16 sps:$4 sm:$0xff]  }
 0x416   :  { %v3929_v17 = vmax.f32 %v3261_v1, %v3271_v13  ;;  %v3931_v18 = vmax.f32 %v3534_v50, %v3544_v14  ;;  %v3273_v19 = vpop.f32.mrb[29].mxu0  ;;  %v3546_v20 = vpop.f32.mrb[29].mxu1  ;;  %5186 = vmatprep.subr.bf16.mxu0 %v12566_v11  ;;  %5299 = vmatprep.subr.bf16.mxu1 %v12569_v12  ;;  %v12579_v50 = vld [vmem:[%s16593_s3 + $0xe8] ss:$16 sps:$4 sm:$0xff]   ;;  %v12590_v12 = vld [vmem:[%s16593_s3 + $0x124] ss:$16 sps:$4 sm:$0xff]  }
 0x417   :  { %v3930_v23 = vmax.f32 %v3263_v57, %v3273_v19  ;;  %v3932_v24 = vmax.f32 %v3536_v59, %v3546_v20  ;;  %v3275_v25 = vpop.f32.mrb[30].mxu0  ;;  %v3548_v26 = vpop.f32.mrb[30].mxu1  ;;  %v12587_v59 = vld [vmem:[%s16593_s3 + $0x10c] ss:$16 sps:$4 sm:$0xff]   ;;  %v12585_v11 = vld [vmem:[%s16593_s3 + $0x108] ss:$16 sps:$4 sm:$0xff]  }
 0x418   :  { %v4013_v28 = vmax.f32 %v3929_v17, %v3931_v18  ;;  %v3933_v29 = vmax.f32 %v3265_v0, %v3275_v25  ;;  %v3935_v31 = vmax.f32 %v3538_v2, %v3548_v26  ;;  %v3277_v32 = vpop.f32.mrb[31].mxu0  ;;  %v3550_v33 = vpop.f32.mrb[31].mxu1  ;;  %v12593_v13 = vld [vmem:[%s16593_s3 + $0x12c] ss:$16 sps:$4 sm:$0xff]   ;;  %v12591_v17 = vld [vmem:[%s16593_s3 + $0x128] ss:$16 sps:$4 sm:$0xff]  }
 0x419   :  { %v4014_v34 = vmax.f32 %v3930_v23, %v3932_v24  ;;  %v3934_v35 = vmax.f32 %v3267_v4, %v3277_v32  ;;  %v3936_v36 = vmax.f32 %v3540_v5, %v3550_v33  ;;  %5187 = vmatpush1.bf16.msra.mxu0 %v12564_v15  ;;  %5300 = vmatpush1.bf16.msra.mxu1 %v12567_v16  ;;  %v12588_v16 = vld [vmem:[%s16593_s3 + $0x120] ss:$16 sps:$4 sm:$0xff]   ;;  %v12599_v23 = vld [vmem:[%s16593_s3 + $0x14c] ss:$16 sps:$4 sm:$0xff]  }
 0x41a   :  { %v4073_v39 = vadd.f32 %v14637_v58, %v4013_v28  ;;  %v4015_v40 = vmax.f32 %v3933_v29, %v3935_v31  ;;  %5188 = vmatprep.subr.bf16.mxu0 %v12572_v21  ;;  %5301 = vmatprep.subr.bf16.mxu1 %v12575_v22  ;;  %v12596_v22 = vld [vmem:[%s16593_s3 + $0x144] ss:$16 sps:$4 sm:$0xff]  }
 0x41b   :  { %v4074_v43 = vadd.f32 %v14640_v63, %v4014_v34  ;;  %v4016_v44 = vmax.f32 %v3934_v35, %v3936_v36 }
 0x41c   :  { %v4075_v45 = vadd.f32 %v14637_v58, %v4015_v40  ;;  %v4121_v54 = vmax.f32 %v4073_v39, 0.0  ;;  %v12597_v39 = vld [vmem:[%s16593_s3 + $0x148] ss:$16 sps:$4 sm:$0xff]  }
 0x41d   :  { %v4076_v48 = vadd.f32 %v14640_v63, %v4016_v44  ;;  %v3281_v49 = vpop.f32.mrb[32].mxu0  ;;  %v3554_v1 = vpop.f32.mrb[32].mxu1  ;;  %5189 = vmatpush1.bf16.msra.mxu0 %v12570_v37  ;;  %5302 = vmatpush1.bf16.msra.mxu1 %v12573_v38  ;;  %v4122_v60 = vmax.f32 %v4074_v43, 0.0  ;;  %v12594_v38 = vld [vmem:[%s16593_s3 + $0x140] ss:$16 sps:$4 sm:$0xff]  }
 0x41e   :  { %v4123_v55 = vmax.f32 %v4075_v45, 0.0  ;;  %v3283_v56 = vpop.f32.mrb[33].mxu0  ;;  %v3556_v57 = vpop.f32.mrb[33].mxu1  ;;  %5190 = vmatprep.subr.bf16.mxu0 %v12578_v41  ;;  %5303 = vmatprep.subr.bf16.mxu1 %v12581_v42  ;;  %v12602_v42 = vld [vmem:[%s16593_s3 + $0x164] ss:$16 sps:$4 sm:$0xff]  }
 0x41f   :  { %v4124_v61 = vmax.f32 %v4076_v48, 0.0  ;;  %v3285_v62 = vpop.f32.mrb[34].mxu0  ;;  %v3558_v0 = vpop.f32.mrb[34].mxu1  ;;  %v12605_v43 = vld [vmem:[%s16593_s3 + $0x16c] ss:$16 sps:$4 sm:$0xff]  }
 0x420   :  { %v14774_v2 = vpack.c.bf16 %v4123_v55, %v4121_v54  ;;  %v3287_v4 = vpop.f32.mrb[35].mxu0  ;;  %v3560_v5 = vpop.f32.mrb[35].mxu1  ;;  %v12600_v48 = vld [vmem:[%s16593_s3 + $0x160] ss:$16 sps:$4 sm:$0xff]   ;;  %v12608_v54 = vld [vmem:[%s16593_s3 + $0x184] ss:$16 sps:$4 sm:$0xff]  }
 0x421   :  { %v14776_v8 = vpack.c.bf16 %v4124_v61, %v4122_v60  ;;  %5191 = vmatpush1.bf16.msra.mxu0 %v12576_v46  ;;  %5304 = vmatpush1.bf16.msra.mxu1 %v12579_v50  ;;  %v12611_v60 = vld [vmem:[%s16593_s3 + $0x18c] ss:$16 sps:$4 sm:$0xff]  }
 0x422   :  { %5192 = vmatprep.subr.bf16.mxu0 %v12584_v52  ;;  %5305 = vmatprep.subr.bf16.mxu1 %v12587_v59  ;;  %v12603_v52 = vld [vmem:[%s16593_s3 + $0x168] ss:$16 sps:$4 sm:$0xff]  }
 0x423   :  { %4682 = vmatprep.mubr.bf16.mxu0 %v14776_v8  ;;  %4795 = vmatprep.mubr.bf16.mxu1 %v14776_v8 }
 0x424   :  { %4683 = vmatmul.mubr.bf16.gmra.mrb[104].mxu0 %v14774_v2  ;;  %4796 = vmatmul.mubr.bf16.gmra.mrb[104].mxu1 %v14774_v2 }
 0x425   :  { %v3291_v14 = vpop.f32.mrb[36].mxu0  ;;  %v3564_v15 = vpop.f32.mrb[36].mxu1  ;;  %5193 = vmatpush1.bf16.msra.mxu0 %v12582_v10  ;;  %5306 = vmatpush1.bf16.msra.mxu1 %v12585_v11 }
 0x426   :  { %v3937_v18 = vmax.f32 %v3281_v49, %v3291_v14  ;;  %v3939_v19 = vmax.f32 %v3554_v1, %v3564_v15  ;;  %v3293_v20 = vpop.f32.mrb[37].mxu0  ;;  %v3566_v21 = vpop.f32.mrb[37].mxu1  ;;  %5194 = vmatprep.subr.bf16.mxu0 %v12590_v12  ;;  %5307 = vmatprep.subr.bf16.mxu1 %v12593_v13  ;;  %v12606_v13 = vld [vmem:[%s16593_s3 + $0x180] ss:$16 sps:$4 sm:$0xff]   ;;  %v12609_v14 = vld [vmem:[%s16593_s3 + $0x188] ss:$16 sps:$4 sm:$0xff]  }
 0x427   :  { %v3938_v24 = vmax.f32 %v3283_v56, %v3293_v20  ;;  %v3940_v25 = vmax.f32 %v3556_v57, %v3566_v21  ;;  %v3295_v26 = vpop.f32.mrb[38].mxu0  ;;  %v3568_v28 = vpop.f32.mrb[38].mxu1  ;;  %v12614_v15 = vld [vmem:[%s16593_s3 + $0x1a4] ss:$16 sps:$4 sm:$0xff]   ;;  %v12615_v20 = vld [vmem:[%s16593_s3 + $0x1a8] ss:$16 sps:$4 sm:$0xff]  }
 0x428   :  { %v4017_v29 = vmax.f32 %v3937_v18, %v3939_v19  ;;  %v3941_v31 = vmax.f32 %v3285_v62, %v3295_v26  ;;  %v3943_v32 = vmax.f32 %v3558_v0, %v3568_v28  ;;  %v3297_v33 = vpop.f32.mrb[39].mxu0  ;;  %v3570_v34 = vpop.f32.mrb[39].mxu1  ;;  %v12612_v19 = vld [vmem:[%s16593_s3 + $0x1a0] ss:$16 sps:$4 sm:$0xff]   ;;  %v12623_v26 = vld [vmem:[%s16593_s3 + $0x1cc] ss:$16 sps:$4 sm:$0xff]  }
 0x429   :  { %v4018_v35 = vmax.f32 %v3938_v24, %v3940_v25  ;;  %v3942_v36 = vmax.f32 %v3287_v4, %v3297_v33  ;;  %v3944_v37 = vmax.f32 %v3560_v5, %v3570_v34  ;;  %5195 = vmatpush1.bf16.msra.mxu0 %v12588_v16  ;;  %5308 = vmatpush1.bf16.msra.mxu1 %v12591_v17  ;;  %v12617_v16 = vld [vmem:[%s16593_s3 + $0x1ac] ss:$16 sps:$4 sm:$0xff]   ;;  %v12620_v25 = vld [vmem:[%s16593_s3 + $0x1c4] ss:$16 sps:$4 sm:$0xff]  }
 0x42a   :  { %v4077_v40 = vadd.f32 %v14637_v58, %v4017_v29  ;;  %v4019_v41 = vmax.f32 %v3941_v31, %v3943_v32  ;;  %5196 = vmatprep.subr.bf16.mxu0 %v12596_v22  ;;  %5309 = vmatprep.subr.bf16.mxu1 %v12599_v23 }
 0x42b   :  { %v4078_v44 = vadd.f32 %v14640_v63, %v4018_v35  ;;  %v4020_v45 = vmax.f32 %v3942_v36, %v3944_v37 }
 0x42c   :  { %v4079_v46 = vadd.f32 %v14637_v58, %v4019_v41  ;;  %v4125_v55 = vmax.f32 %v4077_v40, 0.0  ;;  %v12618_v41 = vld [vmem:[%s16593_s3 + $0x1c0] ss:$16 sps:$4 sm:$0xff]  }
 0x42d   :  { %v4080_v49 = vadd.f32 %v14640_v63, %v4020_v45  ;;  %v3301_v1 = vpop.f32.mrb[40].mxu0  ;;  %v3574_v50 = vpop.f32.mrb[40].mxu1  ;;  %5197 = vmatpush1.bf16.msra.mxu0 %v12594_v38  ;;  %5310 = vmatpush1.bf16.msra.mxu1 %v12597_v39  ;;  %v4126_v61 = vmax.f32 %v4078_v44, 0.0  ;;  %v12626_v45 = vld [vmem:[%s16593_s3 + $0x1e4] ss:$16 sps:$4 sm:$0xff]  }
 0x42e   :  { %v4127_v56 = vmax.f32 %v4079_v46, 0.0  ;;  %v3303_v57 = vpop.f32.mrb[41].mxu0  ;;  %v3576_v59 = vpop.f32.mrb[41].mxu1  ;;  %5198 = vmatprep.subr.bf16.mxu0 %v12602_v42  ;;  %5311 = vmatprep.subr.bf16.mxu1 %v12605_v43  ;;  %v12621_v42 = vld [vmem:[%s16593_s3 + $0x1c8] ss:$16 sps:$4 sm:$0xff]  }
 0x42f   :  { %v4128_v62 = vmax.f32 %v4080_v49, 0.0  ;;  %v3305_v0 = vpop.f32.mrb[42].mxu0  ;;  %v3578_v4 = vpop.f32.mrb[42].mxu1  ;;  %v12629_v46 = vld [vmem:[%s16593_s3 + $0x1ec] ss:$16 sps:$4 sm:$0xff]  }
 0x430   :  { %v14834_v5 = vpack.c.bf16 %v4127_v56, %v4125_v55  ;;  %v3307_v10 = vpop.f32.mrb[43].mxu0  ;;  %v3580_v11 = vpop.f32.mrb[43].mxu1  ;;  %v12627_v56 = vld [vmem:[%s16593_s3 + $0x1e8] ss:$16 sps:$4 sm:$0xff]  }
 0x431   :  { %v14836_v12 = vpack.c.bf16 %v4128_v62, %v4126_v61  ;;  %5199 = vmatpush1.bf16.msra.mxu0 %v12600_v48  ;;  %5312 = vmatpush1.bf16.msra.mxu1 %v12603_v52 }
 0x432   :  { %5200 = vmatprep.subr.bf16.mxu0 %v12608_v54  ;;  %5313 = vmatprep.subr.bf16.mxu1 %v12611_v60 }
 0x433   :  { %4692 = vmatprep.mubr.bf16.mxu0 %v14836_v12  ;;  %4805 = vmatprep.mubr.bf16.mxu1 %v14836_v12 }
 0x434   :  { %4693 = vmatmul.mubr.bf16.gmra.mrb[108].mxu0 %v14834_v5  ;;  %4806 = vmatmul.mubr.bf16.gmra.mrb[108].mxu1 %v14834_v5 }
 0x435   :  { %v3311_v17 = vpop.f32.mrb[44].mxu0  ;;  %v3584_v18 = vpop.f32.mrb[44].mxu1  ;;  %5201 = vmatpush1.bf16.msra.mxu0 %v12606_v13  ;;  %5314 = vmatpush1.bf16.msra.mxu1 %v12609_v14 }
 0x436   :  { %v3945_v21 = vmax.f32 %v3301_v1, %v3311_v17  ;;  %v3947_v22 = vmax.f32 %v3574_v50, %v3584_v18  ;;  %v3313_v23 = vpop.f32.mrb[45].mxu0  ;;  %v3586_v24 = vpop.f32.mrb[45].mxu1  ;;  %5202 = vmatprep.subr.bf16.mxu0 %v12614_v15  ;;  %5315 = vmatprep.subr.bf16.mxu1 %v12617_v16  ;;  %v12624_v50 = vld [vmem:[%s16593_s3 + $0x1e0] ss:$16 sps:$4 sm:$0xff]  }
 0x437   :  { %v3946_v28 = vmax.f32 %v3303_v57, %v3313_v23  ;;  %v3948_v29 = vmax.f32 %v3576_v59, %v3586_v24  ;;  %v3315_v31 = vpop.f32.mrb[46].mxu0  ;;  %v3588_v32 = vpop.f32.mrb[46].mxu1  ;;  %v12632_v57 = vld [vmem:[%s16593_s3 + $0x404] ss:$16 sps:$4 sm:$0xff]  }
 0x438   :  { %v4021_v33 = vmax.f32 %v3945_v21, %v3947_v22  ;;  %v3949_v34 = vmax.f32 %v3305_v0, %v3315_v31  ;;  %v3951_v35 = vmax.f32 %v3578_v4, %v3588_v32  ;;  %v3317_v36 = vpop.f32.mrb[47].mxu0  ;;  %v3590_v37 = vpop.f32.mrb[47].mxu1  ;;  %v12635_v0 = vld [vmem:[%s16593_s3 + $0x40c] ss:$16 sps:$4 sm:$0xff]  }
 0x439   :  { %v4022_v38 = vmax.f32 %v3946_v28, %v3948_v29  ;;  %v3950_v39 = vmax.f32 %v3307_v10, %v3317_v36  ;;  %v3952_v40 = vmax.f32 %v3580_v11, %v3590_v37  ;;  %5203 = vmatpush1.bf16.msra.mxu0 %v12612_v19  ;;  %5316 = vmatpush1.bf16.msra.mxu1 %v12615_v20 }
 0x43a   :  { %v4081_v43 = vadd.f32 %v14637_v58, %v4021_v33  ;;  %v4023_v44 = vmax.f32 %v3949_v34, %v3951_v35  ;;  %5204 = vmatprep.subr.bf16.mxu0 %v12620_v25  ;;  %5317 = vmatprep.subr.bf16.mxu1 %v12623_v26 }
 0x43b   :  { %v4082_v48 = vadd.f32 %v14640_v63, %v4022_v38  ;;  %v4024_v49 = vmax.f32 %v3950_v39, %v3952_v40 }
 0x43c   :  { %v4083_v1 = vadd.f32 %v14637_v58, %v4023_v44  ;;  %v4129_v59 = vmax.f32 %v4081_v43, 0.0 }
 0x43d   :  { %v4084_v52 = vadd.f32 %v14640_v63, %v4024_v49  ;;  %v3321_v54 = vpop.f32.mrb[48].mxu0  ;;  %v3594_v55 = vpop.f32.mrb[48].mxu1  ;;  %5205 = vmatpush1.bf16.msra.mxu0 %v12618_v41  ;;  %5318 = vmatpush1.bf16.msra.mxu1 %v12621_v42  ;;  %v4130_v4 = vmax.f32 %v4082_v48, 0.0 }
 0x43e   :  { %v4131_v60 = vmax.f32 %v4083_v1, 0.0  ;;  %v3323_v61 = vpop.f32.mrb[49].mxu0  ;;  %v3596_v62 = vpop.f32.mrb[49].mxu1  ;;  %5206 = vmatprep.subr.bf16.mxu0 %v12626_v45  ;;  %5319 = vmatprep.subr.bf16.mxu1 %v12629_v46 }
 0x43f   :  { %v4132_v10 = vmax.f32 %v4084_v52, 0.0  ;;  %v3325_v11 = vpop.f32.mrb[50].mxu0  ;;  %v3598_v13 = vpop.f32.mrb[50].mxu1 }
 0x440   :  { %v14894_v14 = vpack.c.bf16 %v4131_v60, %v4129_v59  ;;  %v3327_v15 = vpop.f32.mrb[51].mxu0  ;;  %v3600_v16 = vpop.f32.mrb[51].mxu1 }
 0x441   :  { %v14896_v17 = vpack.c.bf16 %v4132_v10, %v4130_v4  ;;  %5207 = vmatpush1.bf16.msra.mxu0 %v12624_v50  ;;  %5320 = vmatpush1.bf16.msra.mxu1 %v12627_v56 }
 0x442   :  { %5787 = vmatprep.subr.bf16.mxu0 %v12632_v57  ;;  %5900 = vmatprep.subr.bf16.mxu1 %v12635_v0 }
 0x443   :  { %4702 = vmatprep.mubr.bf16.mxu0 %v14896_v17  ;;  %4815 = vmatprep.mubr.bf16.mxu1 %v14896_v17 }
 0x444   :  { %4703 = vmatmul.mubr.bf16.gmra.mrb[112].mxu0 %v14894_v14  ;;  %4816 = vmatmul.mubr.bf16.gmra.mrb[112].mxu1 %v14894_v14 }
 0x445   :  { %v3331_v18 = vpop.f32.mrb[52].mxu0  ;;  %v3604_v19 = vpop.f32.mrb[52].mxu1 }
 0x446   :  { %v3953_v20 = vmax.f32 %v3321_v54, %v3331_v18  ;;  %v3955_v21 = vmax.f32 %v3594_v55, %v3604_v19  ;;  %v3333_v22 = vpop.f32.mrb[53].mxu0  ;;  %v3606_v23 = vpop.f32.mrb[53].mxu1 }
 0x447   :  { %v3954_v24 = vmax.f32 %v3323_v61, %v3333_v22  ;;  %v3956_v25 = vmax.f32 %v3596_v62, %v3606_v23  ;;  %v3335_v26 = vpop.f32.mrb[54].mxu0  ;;  %v3608_v28 = vpop.f32.mrb[54].mxu1 }
 0x448   :  { %v4025_v29 = vmax.f32 %v3953_v20, %v3955_v21  ;;  %v3957_v31 = vmax.f32 %v3325_v11, %v3335_v26  ;;  %v3959_v32 = vmax.f32 %v3598_v13, %v3608_v28  ;;  %v3337_v33 = vpop.f32.mrb[55].mxu0  ;;  %v3610_v34 = vpop.f32.mrb[55].mxu1 }
 0x449   :  { %v4026_v35 = vmax.f32 %v3954_v24, %v3956_v25  ;;  %v3958_v36 = vmax.f32 %v3327_v15, %v3337_v33  ;;  %v3960_v37 = vmax.f32 %v3600_v16, %v3610_v34 }
 0x44a   :  { %v4085_v38 = vadd.f32 %v14637_v58, %v4025_v29  ;;  %v4027_v39 = vmax.f32 %v3957_v31, %v3959_v32 }
 0x44b   :  { %v4086_v40 = vadd.f32 %v14640_v63, %v4026_v35  ;;  %v4028_v41 = vmax.f32 %v3958_v36, %v3960_v37 }
 0x44c   :  { %v4087_v42 = vadd.f32 %v14637_v58, %v4027_v39  ;;  %v4133_v46 = vmax.f32 %v4085_v38, 0.0 }
 0x44d   :  { %v4088_v43 = vadd.f32 %v14640_v63, %v4028_v41  ;;  %v3341_v44 = vpop.f32.mrb[56].mxu0  ;;  %v3614_v45 = vpop.f32.mrb[56].mxu1  ;;  %v4134_v50 = vmax.f32 %v4086_v40, 0.0 }
 0x44e   :  { %v4135_v48 = vmax.f32 %v4087_v42, 0.0  ;;  %v3343_v49 = vpop.f32.mrb[57].mxu0  ;;  %v3616_v1 = vpop.f32.mrb[57].mxu1 }
 0x44f   :  { %v4136_v52 = vmax.f32 %v4088_v43, 0.0  ;;  %v3345_v54 = vpop.f32.mrb[58].mxu0  ;;  %v3618_v55 = vpop.f32.mrb[58].mxu1 }
 0x450   :  { %v14906_v56 = vpack.c.bf16 %v4135_v48, %v4133_v46  ;;  %v3347_v57 = vpop.f32.mrb[59].mxu0  ;;  %v3620_v59 = vpop.f32.mrb[59].mxu1 }
 0x451   :  { %v14908_v60 = vpack.c.bf16 %v4136_v52, %v4134_v50 }
 0x453   :  { %4712 = vmatprep.mubr.bf16.mxu0 %v14908_v60  ;;  %4825 = vmatprep.mubr.bf16.mxu1 %v14908_v60 }
 0x454   :  { %4713 = vmatmul.mubr.bf16.gmra.mrb[116].mxu0 %v14906_v56  ;;  %4826 = vmatmul.mubr.bf16.gmra.mrb[116].mxu1 %v14906_v56 }
 0x455   :  { %v3351_v61 = vpop.f32.mrb[60].mxu0  ;;  %v3624_v62 = vpop.f32.mrb[60].mxu1 }
 0x456   :  { %v3961_v0 = vmax.f32 %v3341_v44, %v3351_v61  ;;  %v3963_v4 = vmax.f32 %v3614_v45, %v3624_v62  ;;  %v3353_v10 = vpop.f32.mrb[61].mxu0  ;;  %v3626_v11 = vpop.f32.mrb[61].mxu1 }
 0x457   :  { %v3962_v13 = vmax.f32 %v3343_v49, %v3353_v10  ;;  %v3964_v15 = vmax.f32 %v3616_v1, %v3626_v11  ;;  %v3355_v16 = vpop.f32.mrb[62].mxu0  ;;  %v3628_v18 = vpop.f32.mrb[62].mxu1 }
 0x458   :  { %v4029_v19 = vmax.f32 %v3961_v0, %v3963_v4  ;;  %v3965_v20 = vmax.f32 %v3345_v54, %v3355_v16  ;;  %v3967_v21 = vmax.f32 %v3618_v55, %v3628_v18  ;;  %v3357_v22 = vpop.f32.mrb[63].mxu0  ;;  %v3630_v23 = vpop.f32.mrb[63].mxu1 }
 0x459   :  { %v4030_v24 = vmax.f32 %v3962_v13, %v3964_v15  ;;  %v3966_v25 = vmax.f32 %v3347_v57, %v3357_v22  ;;  %v3968_v26 = vmax.f32 %v3620_v59, %v3630_v23 }
 0x45a   :  { %v4089_v28 = vadd.f32 %v14637_v58, %v4029_v19  ;;  %v4031_v29 = vmax.f32 %v3965_v20, %v3967_v21 }
 0x45b   :  { %v4090_v31 = vadd.f32 %v14640_v63, %v4030_v24  ;;  %v4032_v32 = vmax.f32 %v3966_v25, %v3968_v26 }
 0x45c   :  { %v4091_v33 = vadd.f32 %v14637_v58, %v4031_v29  ;;  %v4137_v37 = vmax.f32 %v4089_v28, 0.0 }
 0x45d   :  { %v4092_v34 = vadd.f32 %v14640_v63, %v4032_v32  ;;  %v3361_v35 = vpop.f32.mrb[64].mxu0  ;;  %v3634_v36 = vpop.f32.mrb[64].mxu1  ;;  %v4138_v41 = vmax.f32 %v4090_v31, 0.0 }
 0x45e   :  { %v4139_v38 = vmax.f32 %v4091_v33, 0.0  ;;  %v3363_v39 = vpop.f32.mrb[65].mxu0  ;;  %v3636_v40 = vpop.f32.mrb[65].mxu1 }
 0x45f   :  { %v4140_v42 = vmax.f32 %v4092_v34, 0.0  ;;  %v3365_v43 = vpop.f32.mrb[66].mxu0  ;;  %v3638_v44 = vpop.f32.mrb[66].mxu1 }
 0x460   :  { %v14918_v45 = vpack.c.bf16 %v4139_v38, %v4137_v37  ;;  %v3367_v46 = vpop.f32.mrb[67].mxu0  ;;  %v3640_v48 = vpop.f32.mrb[67].mxu1 }
 0x461   :  { %v14920_v49 = vpack.c.bf16 %v4140_v42, %v4138_v41 }
 0x463   :  { %4722 = vmatprep.mubr.bf16.mxu0 %v14920_v49  ;;  %4835 = vmatprep.mubr.bf16.mxu1 %v14920_v49 }
 0x464   :  { %4723 = vmatmul.mubr.bf16.gmra.mrb[120].mxu0 %v14918_v45  ;;  %4836 = vmatmul.mubr.bf16.gmra.mrb[120].mxu1 %v14918_v45 }
 0x465   :  { %v3371_v1 = vpop.f32.mrb[68].mxu0  ;;  %v3644_v50 = vpop.f32.mrb[68].mxu1 }
 0x466   :  { %v3969_v52 = vmax.f32 %v3361_v35, %v3371_v1  ;;  %v3971_v54 = vmax.f32 %v3634_v36, %v3644_v50  ;;  %v3373_v55 = vpop.f32.mrb[69].mxu0  ;;  %v3646_v57 = vpop.f32.mrb[69].mxu1 }
 0x467   :  { %v3970_v59 = vmax.f32 %v3363_v39, %v3373_v55  ;;  %v3972_v61 = vmax.f32 %v3636_v40, %v3646_v57  ;;  %v3375_v62 = vpop.f32.mrb[70].mxu0  ;;  %v3648_v0 = vpop.f32.mrb[70].mxu1 }
 0x468   :  { %v4033_v4 = vmax.f32 %v3969_v52, %v3971_v54  ;;  %v3973_v10 = vmax.f32 %v3365_v43, %v3375_v62  ;;  %v3975_v11 = vmax.f32 %v3638_v44, %v3648_v0  ;;  %v3377_v13 = vpop.f32.mrb[71].mxu0  ;;  %v3650_v15 = vpop.f32.mrb[71].mxu1 }
 0x469   :  { %v4034_v16 = vmax.f32 %v3970_v59, %v3972_v61  ;;  %v3974_v18 = vmax.f32 %v3367_v46, %v3377_v13  ;;  %v3976_v19 = vmax.f32 %v3640_v48, %v3650_v15 }
 0x46a   :  { %v4093_v20 = vadd.f32 %v14637_v58, %v4033_v4  ;;  %v4035_v21 = vmax.f32 %v3973_v10, %v3975_v11 }
 0x46b   :  { %v4094_v22 = vadd.f32 %v14640_v63, %v4034_v16  ;;  %v4036_v23 = vmax.f32 %v3974_v18, %v3976_v19  ;;  %v12633_v16 = vld [vmem:[%s16593_s3 + $0x408] ss:$16 sps:$4 sm:$0xff]  }
 0x46c   :  { %v4095_v24 = vadd.f32 %v14637_v58, %v4035_v21  ;;  %v4141_v29 = vmax.f32 %v4093_v20, 0.0  ;;  %v12638_v20 = vld [vmem:[%s16593_s3 + $0x424] ss:$16 sps:$4 sm:$0xff]   ;;  %v12641_v21 = vld [vmem:[%s16593_s3 + $0x42c] ss:$16 sps:$4 sm:$0xff]  }
 0x46d   :  { %v4096_v25 = vadd.f32 %v14640_v63, %v4036_v23  ;;  %v3381_v26 = vpop.f32.mrb[72].mxu0  ;;  %v3654_v28 = vpop.f32.mrb[72].mxu1  ;;  %v4142_v34 = vmax.f32 %v4094_v22, 0.0 }
 0x46e   :  { %v4143_v31 = vmax.f32 %v4095_v24, 0.0  ;;  %v3383_v32 = vpop.f32.mrb[73].mxu0  ;;  %v3656_v33 = vpop.f32.mrb[73].mxu1 }
 0x46f   :  { %v4144_v35 = vmax.f32 %v4096_v25, 0.0  ;;  %v3385_v36 = vpop.f32.mrb[74].mxu0  ;;  %v3658_v37 = vpop.f32.mrb[74].mxu1 }
 0x470   :  { %v14930_v38 = vpack.c.bf16 %v4143_v31, %v4141_v29  ;;  %v3387_v39 = vpop.f32.mrb[75].mxu0  ;;  %v3660_v40 = vpop.f32.mrb[75].mxu1 }
 0x471   :  { %v14932_v41 = vpack.c.bf16 %v4144_v35, %v4142_v34 }
 0x473   :  { %4732 = vmatprep.mubr.bf16.mxu0 %v14932_v41  ;;  %4845 = vmatprep.mubr.bf16.mxu1 %v14932_v41 }
 0x474   :  { %4733 = vmatmul.mubr.bf16.gmra.mrb[124].mxu0 %v14930_v38  ;;  %4846 = vmatmul.mubr.bf16.gmra.mrb[124].mxu1 %v14930_v38 }
 0x475   :  { %v3391_v42 = vpop.f32.mrb[76].mxu0  ;;  %v3664_v43 = vpop.f32.mrb[76].mxu1  ;;  %5208 = vmatprep.mubr.bf16.mxu0 %v14648_v30  ;;  %5321 = vmatprep.mubr.bf16.mxu1 %v14648_v30  ;;  %v12630_v30 = vld [vmem:[%s16593_s3 + $0x400] ss:$16 sps:$4 sm:$0xff]  }
 0x476   :  { %v3977_v44 = vmax.f32 %v3381_v26, %v3391_v42  ;;  %v3979_v46 = vmax.f32 %v3654_v28, %v3664_v43  ;;  %v3393_v48 = vpop.f32.mrb[77].mxu0  ;;  %v3666_v1 = vpop.f32.mrb[77].mxu1  ;;  %v12636_v26 = vld [vmem:[%s16593_s3 + $0x420] ss:$16 sps:$4 sm:$0xff]   ;;  %v12639_v28 = vld [vmem:[%s16593_s3 + $0x428] ss:$16 sps:$4 sm:$0xff]  }
 0x477   :  { %v3978_v50 = vmax.f32 %v3383_v32, %v3393_v48  ;;  %v3980_v52 = vmax.f32 %v3656_v33, %v3666_v1  ;;  %v3395_v54 = vpop.f32.mrb[78].mxu0  ;;  %v3668_v55 = vpop.f32.mrb[78].mxu1  ;;  %v12644_v33 = vld [vmem:[%s16593_s3 + $0x444] ss:$16 sps:$4 sm:$0xff]   ;;  %v12653_v1 = vld [vmem:[%s16593_s3 + $0x46c] ss:$16 sps:$4 sm:$0xff]  }
 0x478   :  { %v4037_v57 = vmax.f32 %v3977_v44, %v3979_v46  ;;  %v3981_v59 = vmax.f32 %v3385_v36, %v3395_v54  ;;  %v3983_v61 = vmax.f32 %v3658_v37, %v3668_v55  ;;  %v3397_v62 = vpop.f32.mrb[79].mxu0  ;;  %v3670_v0 = vpop.f32.mrb[79].mxu1  ;;  %v12647_v37 = vld [vmem:[%s16593_s3 + $0x44c] ss:$16 sps:$4 sm:$0xff]   ;;  %v12642_v44 = vld [vmem:[%s16593_s3 + $0x440] ss:$16 sps:$4 sm:$0xff]  }
 0x479   :  { %v4038_v4 = vmax.f32 %v3978_v50, %v3980_v52  ;;  %v3982_v10 = vmax.f32 %v3387_v39, %v3397_v62  ;;  %v3984_v11 = vmax.f32 %v3660_v40, %v3670_v0  ;;  %v12645_v46 = vld [vmem:[%s16593_s3 + $0x448] ss:$16 sps:$4 sm:$0xff]   ;;  %v12650_v48 = vld [vmem:[%s16593_s3 + $0x464] ss:$16 sps:$4 sm:$0xff]  }
 0x47a   :  { %v4097_v13 = vadd.f32 %v14637_v58, %v4037_v57  ;;  %v4039_v15 = vmax.f32 %v3981_v59, %v3983_v61  ;;  %v12648_v61 = vld [vmem:[%s16593_s3 + $0x460] ss:$16 sps:$4 sm:$0xff]  }
 0x47b   :  { %v4098_v18 = vadd.f32 %v14640_v63, %v4038_v4  ;;  %v4040_v19 = vmax.f32 %v3982_v10, %v3984_v11  ;;  %v12656_v11 = vld [vmem:[%s16593_s3 + $0x484] ss:$16 sps:$4 sm:$0xff]  }
 0x47c   :  { %v4099_v22 = vadd.f32 %v14637_v58, %v4039_v15  ;;  %5209 = vmatmul.mubr.bf16.vlgmr.msra.gmra.mrb[96].mxu0 %v14646_v27  ;;  %5322 = vmatmul.mubr.bf16.vlgmr.msra.gmra.mrb[96].mxu1 %v14646_v27  ;;  %v4145_v29 = vmax.f32 %v4097_v13, 0.0  ;;  %v12659_v13 = vld [vmem:[%s16593_s3 + $0x48c] ss:$16 sps:$4 sm:$0xff]  }
 0x47d   :  { %v4100_v23 = vadd.f32 %v14640_v63, %v4040_v19  ;;  %v3401_v24 = vpop.f32.mrb[80].mxu0  ;;  %v3674_v25 = vpop.f32.mrb[80].mxu1  ;;  %5218 = vmatprep.mubr.bf16.mxu0 %v14656_v9  ;;  %5331 = vmatprep.mubr.bf16.mxu1 %v14656_v9  ;;  %v4146_v34 = vmax.f32 %v4098_v18, 0.0 }
 0x47e   :  { %v4147_v31 = vmax.f32 %v4099_v22, 0.0  ;;  %5788 = vmatpush1.bf16.msra.mxu0 %v12630_v30  ;;  %5901 = vmatpush1.bf16.msra.mxu1 %v12633_v16  ;;  %v3403_v27 = vpop.f32.mrb[81].mxu0  ;;  %v3676_v32 = vpop.f32.mrb[81].mxu1 }
 0x47f   :  { %v4148_v9 = vmax.f32 %v4100_v23, 0.0  ;;  %v3405_v35 = vpop.f32.mrb[82].mxu0  ;;  %v3678_v36 = vpop.f32.mrb[82].mxu1  ;;  %5789 = vmatprep.subr.bf16.mxu0 %v12638_v20  ;;  %5902 = vmatprep.subr.bf16.mxu1 %v12641_v21 }
 0x480   :  { %v14972_v39 = vpack.c.bf16 %v4147_v31, %v4145_v29  ;;  %v3407_v40 = vpop.f32.mrb[83].mxu0  ;;  %v3680_v42 = vpop.f32.mrb[83].mxu1  ;;  %v12662_v31 = vld [vmem:[%s16593_s3 + $0x4a4] ss:$16 sps:$4 sm:$0xff]  }
 0x481   :  { %v14974_v43 = vpack.c.bf16 %v4148_v9, %v4146_v34 }
 0x482   :  { %5790 = vmatpush1.bf16.msra.mxu0 %v12636_v26  ;;  %5903 = vmatpush1.bf16.msra.mxu1 %v12639_v28  ;;  %v12657_v26 = vld [vmem:[%s16593_s3 + $0x488] ss:$16 sps:$4 sm:$0xff]  }
 0x483   :  { %5791 = vmatprep.subr.bf16.mxu0 %v12644_v33  ;;  %5904 = vmatprep.subr.bf16.mxu1 %v12647_v37 }
 0x484   :  { %5219 = vmatmul.mubr.bf16.gmra.mrb[100].mxu0 %v14654_v6  ;;  %5332 = vmatmul.mubr.bf16.gmra.mrb[100].mxu1 %v14654_v6  ;;  %v12651_v6 = vld [vmem:[%s16593_s3 + $0x468] ss:$16 sps:$4 sm:$0xff]  }
 0x485   :  { %v3411_v50 = vpop.f32.mrb[84].mxu0  ;;  %v3684_v52 = vpop.f32.mrb[84].mxu1  ;;  %5228 = vmatprep.mubr.bf16.mxu0 %v14716_v7  ;;  %5341 = vmatprep.mubr.bf16.mxu1 %v14716_v7 }
 0x486   :  { %v3985_v54 = vmax.f32 %v3401_v24, %v3411_v50  ;;  %v3987_v55 = vmax.f32 %v3674_v25, %v3684_v52  ;;  %5792 = vmatpush1.bf16.msra.mxu0 %v12642_v44  ;;  %5905 = vmatpush1.bf16.msra.mxu1 %v12645_v46  ;;  %v3413_v57 = vpop.f32.mrb[85].mxu0  ;;  %v3686_v59 = vpop.f32.mrb[85].mxu1  ;;  %v12654_v25 = vld [vmem:[%s16593_s3 + $0x480] ss:$16 sps:$4 sm:$0xff]   ;;  %v12668_v46 = vld [vmem:[%s16593_s3 + $0x4c4] ss:$16 sps:$4 sm:$0xff]  }
 0x487   :  { %v3986_v62 = vmax.f32 %v3403_v27, %v3413_v57  ;;  %v3988_v0 = vmax.f32 %v3676_v32, %v3686_v59  ;;  %v3415_v4 = vpop.f32.mrb[86].mxu0  ;;  %v3688_v10 = vpop.f32.mrb[86].mxu1  ;;  %5793 = vmatprep.subr.bf16.mxu0 %v12650_v48  ;;  %5906 = vmatprep.subr.bf16.mxu1 %v12653_v1  ;;  %v12665_v27 = vld [vmem:[%s16593_s3 + $0x4ac] ss:$16 sps:$4 sm:$0xff]  }
 0x488   :  { %v4041_v15 = vmax.f32 %v3985_v54, %v3987_v55  ;;  %v3989_v30 = vmax.f32 %v3405_v35, %v3415_v4  ;;  %v3991_v16 = vmax.f32 %v3678_v36, %v3688_v10  ;;  %v3417_v18 = vpop.f32.mrb[87].mxu0  ;;  %v3690_v19 = vpop.f32.mrb[87].mxu1  ;;  %v12660_v35 = vld [vmem:[%s16593_s3 + $0x4a0] ss:$16 sps:$4 sm:$0xff]   ;;  %v12663_v36 = vld [vmem:[%s16593_s3 + $0x4a8] ss:$16 sps:$4 sm:$0xff]  }
 0x489   :  { %v4042_v20 = vmax.f32 %v3986_v62, %v3988_v0  ;;  %v3990_v21 = vmax.f32 %v3407_v40, %v3417_v18  ;;  %v3992_v22 = vmax.f32 %v3680_v42, %v3690_v19  ;;  %v12671_v54 = vld [vmem:[%s16593_s3 + $0x4cc] ss:$16 sps:$4 sm:$0xff]   ;;  %v12669_v62 = vld [vmem:[%s16593_s3 + $0x4c8] ss:$16 sps:$4 sm:$0xff]   ;;  %v12674_v0 = vld [vmem:[%s16593_s3 + $0x4e4] ss:$16 sps:$4 sm:$0xff]  }
 0x48a   :  { %v4101_v23 = vadd.f32 %v14637_v58, %v4041_v15  ;;  %v4043_v24 = vmax.f32 %v3989_v30, %v3991_v16  ;;  %5794 = vmatpush1.bf16.msra.mxu0 %v12648_v61  ;;  %5907 = vmatpush1.bf16.msra.mxu1 %v12651_v6  ;;  %v12666_v6 = vld [vmem:[%s16593_s3 + $0x4c0] ss:$16 sps:$4 sm:$0xff]   ;;  %v12677_v4 = vld [vmem:[%s16593_s3 + $0x4ec] ss:$16 sps:$4 sm:$0xff]   ;;  %v12675_v19 = vld [vmem:[%s16593_s3 + $0x4e8] ss:$16 sps:$4 sm:$0xff]  }
 0x48b   :  { %v4102_v28 = vadd.f32 %v14640_v63, %v4042_v20  ;;  %v4044_v29 = vmax.f32 %v3990_v21, %v3992_v22  ;;  %5795 = vmatprep.subr.bf16.mxu0 %v12656_v11  ;;  %5908 = vmatprep.subr.bf16.mxu1 %v12659_v13  ;;  %v12672_v18 = vld [vmem:[%s16593_s3 + $0x4e0] ss:$16 sps:$4 sm:$0xff]  }
 0x48c   :  { %v4103_v32 = vadd.f32 %v14637_v58, %v4043_v24  ;;  %5229 = vmatmul.mubr.bf16.gmra.mrb[104].mxu0 %v14714_v3  ;;  %5342 = vmatmul.mubr.bf16.gmra.mrb[104].mxu1 %v14714_v3  ;;  %v4149_v37 = vmax.f32 %v4101_v23, 0.0  ;;  %v12680_v24 = vld [vmem:[%s16593_s3 + $0x504] ss:$16 sps:$4 sm:$0xff]  }
 0x48d   :  { %v4104_v33 = vadd.f32 %v14640_v63, %v4044_v29  ;;  %v3421_v34 = vpop.f32.mrb[88].mxu0  ;;  %v3694_v9 = vpop.f32.mrb[88].mxu1  ;;  %5238 = vmatprep.mubr.bf16.mxu0 %v14776_v8  ;;  %5351 = vmatprep.mubr.bf16.mxu1 %v14776_v8  ;;  %v4150_v48 = vmax.f32 %v4102_v28, 0.0 }
 0x48e   :  { %v4151_v40 = vmax.f32 %v4103_v32, 0.0  ;;  %5796 = vmatpush1.bf16.msra.mxu0 %v12654_v25  ;;  %5909 = vmatpush1.bf16.msra.mxu1 %v12657_v26  ;;  %v3423_v42 = vpop.f32.mrb[89].mxu0  ;;  %v3696_v44 = vpop.f32.mrb[89].mxu1  ;;  %v12683_v25 = vld [vmem:[%s16593_s3 + $0x50c] ss:$16 sps:$4 sm:$0xff]  }
 0x48f   :  { %v4152_v1 = vmax.f32 %v4104_v33, 0.0  ;;  %v3425_v50 = vpop.f32.mrb[90].mxu0  ;;  %v3698_v52 = vpop.f32.mrb[90].mxu1  ;;  %5797 = vmatprep.subr.bf16.mxu0 %v12662_v31  ;;  %5910 = vmatprep.subr.bf16.mxu1 %v12665_v27 }
 0x490   :  { %v15036_v55 = vpack.c.bf16 %v4151_v40, %v4149_v37  ;;  %v3427_v57 = vpop.f32.mrb[91].mxu0  ;;  %v3700_v59 = vpop.f32.mrb[91].mxu1  ;;  %v12681_v37 = vld [vmem:[%s16593_s3 + $0x508] ss:$16 sps:$4 sm:$0xff]  }
 0x491   :  { %v15038_v61 = vpack.c.bf16 %v4152_v1, %v4150_v48 }
 0x492   :  { %5798 = vmatpush1.bf16.msra.mxu0 %v12660_v35  ;;  %5911 = vmatpush1.bf16.msra.mxu1 %v12663_v36  ;;  %v12678_v36 = vld [vmem:[%s16593_s3 + $0x500] ss:$16 sps:$4 sm:$0xff]  }
 0x493   :  { %5799 = vmatprep.subr.bf16.mxu0 %v12668_v46  ;;  %5912 = vmatprep.subr.bf16.mxu1 %v12671_v54  ;;  %v12689_v46 = vld [vmem:[%s16593_s3 + $0x52c] ss:$16 sps:$4 sm:$0xff]   ;;  %v12684_v54 = vld [vmem:[%s16593_s3 + $0x520] ss:$16 sps:$4 sm:$0xff]  }
 0x494   :  { %5239 = vmatmul.mubr.bf16.gmra.mrb[108].mxu0 %v14774_v2  ;;  %5352 = vmatmul.mubr.bf16.gmra.mrb[108].mxu1 %v14774_v2 }
 0x495   :  { %v3431_v10 = vpop.f32.mrb[92].mxu0  ;;  %v3704_v11 = vpop.f32.mrb[92].mxu1  ;;  %5248 = vmatprep.mubr.bf16.mxu0 %v14836_v12  ;;  %5361 = vmatprep.mubr.bf16.mxu1 %v14836_v12 }
 0x496   :  { %v3993_v13 = vmax.f32 %v3421_v34, %v3431_v10  ;;  %v3995_v15 = vmax.f32 %v3694_v9, %v3704_v11  ;;  %5800 = vmatpush1.bf16.msra.mxu0 %v12666_v6  ;;  %5913 = vmatpush1.bf16.msra.mxu1 %v12669_v62  ;;  %v3433_v30 = vpop.f32.mrb[93].mxu0  ;;  %v3706_v16 = vpop.f32.mrb[93].mxu1  ;;  %v12695_v6 = vld [vmem:[%s16593_s3 + $0x54c] ss:$16 sps:$4 sm:$0xff]   ;;  %v12693_v10 = vld [vmem:[%s16593_s3 + $0x548] ss:$16 sps:$4 sm:$0xff]  }
 0x497   :  { %v3994_v20 = vmax.f32 %v3423_v42, %v3433_v30  ;;  %v3996_v21 = vmax.f32 %v3696_v44, %v3706_v16  ;;  %v3435_v22 = vpop.f32.mrb[94].mxu0  ;;  %v3708_v23 = vpop.f32.mrb[94].mxu1  ;;  %5801 = vmatprep.subr.bf16.mxu0 %v12674_v0  ;;  %5914 = vmatprep.subr.bf16.mxu1 %v12677_v4  ;;  %v12686_v44 = vld [vmem:[%s16593_s3 + $0x524] ss:$16 sps:$4 sm:$0xff]   ;;  %v12690_v4 = vld [vmem:[%s16593_s3 + $0x540] ss:$16 sps:$4 sm:$0xff]  }
 0x498   :  { %v4045_v26 = vmax.f32 %v3993_v13, %v3995_v15  ;;  %v3997_v28 = vmax.f32 %v3425_v50, %v3435_v22  ;;  %v3999_v29 = vmax.f32 %v3698_v52, %v3708_v23  ;;  %v3437_v31 = vpop.f32.mrb[95].mxu0  ;;  %v3710_v27 = vpop.f32.mrb[95].mxu1  ;;  %v12698_v11 = vld [vmem:[%s16593_s3 + $0x564] ss:$16 sps:$4 sm:$0xff]   ;;  %v12701_v13 = vld [vmem:[%s16593_s3 + $0x56c] ss:$16 sps:$4 sm:$0xff]  }
 0x499   :  { %v4046_v32 = vmax.f32 %v3994_v20, %v3996_v21  ;;  %v3998_v33 = vmax.f32 %v3427_v57, %v3437_v31  ;;  %v4000_v34 = vmax.f32 %v3700_v59, %v3710_v27  ;;  %v12696_v15 = vld [vmem:[%s16593_s3 + $0x560] ss:$16 sps:$4 sm:$0xff]   ;;  %v12699_v30 = vld [vmem:[%s16593_s3 + $0x568] ss:$16 sps:$4 sm:$0xff]   ;;  %v12704_v16 = vld [vmem:[%s16593_s3 + $0x584] ss:$16 sps:$4 sm:$0xff]  }
 0x49a   :  { %v4105_v9 = vadd.f32 %v14637_v58, %v4045_v26  ;;  %v4047_v35 = vmax.f32 %v3997_v28, %v3999_v29  ;;  %5802 = vmatpush1.bf16.msra.mxu0 %v12672_v18  ;;  %5915 = vmatpush1.bf16.msra.mxu1 %v12675_v19  ;;  %v12707_v18 = vld [vmem:[%s16593_s3 + $0x58c] ss:$16 sps:$4 sm:$0xff]   ;;  %v12702_v19 = vld [vmem:[%s16593_s3 + $0x580] ss:$16 sps:$4 sm:$0xff]   ;;  %v12705_v20 = vld [vmem:[%s16593_s3 + $0x588] ss:$16 sps:$4 sm:$0xff]  }
 0x49b   :  { %v4106_v40 = vadd.f32 %v14640_v63, %v4046_v32  ;;  %v4048_v42 = vmax.f32 %v3998_v33, %v4000_v34  ;;  %5803 = vmatprep.subr.bf16.mxu0 %v12680_v24  ;;  %5916 = vmatprep.subr.bf16.mxu1 %v12683_v25  ;;  %v12710_v21 = vld [vmem:[%s16593_s3 + $0x5a4] ss:$16 sps:$4 sm:$0xff]   ;;  %v12713_v22 = vld [vmem:[%s16593_s3 + $0x5ac] ss:$16 sps:$4 sm:$0xff]   ;;  %v12708_v23 = vld [vmem:[%s16593_s3 + $0x5a0] ss:$16 sps:$4 sm:$0xff]  }
 0x49c   :  { %v4107_v48 = vadd.f32 %v14637_v58, %v4047_v35  ;;  %5249 = vmatmul.mubr.bf16.gmra.mrb[112].mxu0 %v14834_v5  ;;  %5362 = vmatmul.mubr.bf16.gmra.mrb[112].mxu1 %v14834_v5  ;;  %v4153_v50 = vmax.f32 %v4105_v9, 0.0  ;;  %v12687_v58 = vld [vmem:[%s16593_s3 + $0x528] ss:$16 sps:$4 sm:$0xff]   ;;  %v12716_v25 = vld [vmem:[%s16593_s3 + $0x5c4] ss:$16 sps:$4 sm:$0xff]  }
 0x49d   :  { %v4108_v1 = vadd.f32 %v14640_v63, %v4048_v42  ;;  %5258 = vmatprep.mubr.bf16.mxu0 %v14896_v17  ;;  %5371 = vmatprep.mubr.bf16.mxu1 %v14896_v17  ;;  %v4154_v57 = vmax.f32 %v4106_v40, 0.0  ;;  %v12692_v63 = vld [vmem:[%s16593_s3 + $0x544] ss:$16 sps:$4 sm:$0xff]   ;;  %v12711_v24 = vld [vmem:[%s16593_s3 + $0x5a8] ss:$16 sps:$4 sm:$0xff]  }
 0x49e   :  { %v4155_v52 = vmax.f32 %v4107_v48, 0.0  ;;  %5804 = vmatpush1.bf16.msra.mxu0 %v12678_v36  ;;  %5917 = vmatpush1.bf16.msra.mxu1 %v12681_v37  ;;  %v12719_v26 = vld [vmem:[%s16593_s3 + $0x5cc] ss:$16 sps:$4 sm:$0xff]   ;;  %v12714_v28 = vld [vmem:[%s16593_s3 + $0x5c0] ss:$16 sps:$4 sm:$0xff]  }
 0x49f   :  { %v4156_v59 = vmax.f32 %v4108_v1, 0.0  ;;  %5805 = vmatprep.subr.bf16.mxu0 %v12686_v44  ;;  %5918 = vmatprep.subr.bf16.mxu1 %v12689_v46  ;;  %v12717_v29 = vld [vmem:[%s16593_s3 + $0x5c8] ss:$16 sps:$4 sm:$0xff]   ;;  %v12722_v31 = vld [vmem:[%s16593_s3 + $0x5e4] ss:$16 sps:$4 sm:$0xff]  }
 0x4a0   :  { %v15100_v62 = vpack.c.bf16 %v4155_v52, %v4153_v50  ;;  %v12725_v27 = vld [vmem:[%s16593_s3 + $0x5ec] ss:$16 sps:$4 sm:$0xff]   ;;  %v12720_v32 = vld [vmem:[%s16593_s3 + $0x5e0] ss:$16 sps:$4 sm:$0xff]   ;;  %v12723_v33 = vld [vmem:[%s16593_s3 + $0x5e8] ss:$16 sps:$4 sm:$0xff]  }
 0x4a1   :  { %v15102_v0 = vpack.c.bf16 %v4156_v59, %v4154_v57  ;;  %v12728_v34 = vld [vmem:[%s16593_s3 + $0x604] ss:$16 sps:$4 sm:$0xff]   ;;  %v12726_v9 = vld [vmem:[%s16593_s3 + $0x600] ss:$16 sps:$4 sm:$0xff]   ;;  %v12729_v35 = vld [vmem:[%s16593_s3 + $0x608] ss:$16 sps:$4 sm:$0xff]  }
 0x4a2   :  { %5806 = vmatpush1.bf16.msra.mxu0 %v12684_v54  ;;  %5919 = vmatpush1.bf16.msra.mxu1 %v12687_v58  ;;  %v12734_v36 = vld [vmem:[%s16593_s3 + $0x624] ss:$16 sps:$4 sm:$0xff]   ;;  %v12737_v37 = vld [vmem:[%s16593_s3 + $0x62c] ss:$16 sps:$4 sm:$0xff]   ;;  %v12732_v40 = vld [vmem:[%s16593_s3 + $0x620] ss:$16 sps:$4 sm:$0xff]  }
 0x4a3   :  { %5807 = vmatprep.subr.bf16.mxu0 %v12692_v63  ;;  %5920 = vmatprep.subr.bf16.mxu1 %v12695_v6  ;;  %v12735_v42 = vld [vmem:[%s16593_s3 + $0x628] ss:$16 sps:$4 sm:$0xff]   ;;  %v12743_v44 = vld [vmem:[%s16593_s3 + $0x64c] ss:$16 sps:$4 sm:$0xff]   ;;  %v12738_v46 = vld [vmem:[%s16593_s3 + $0x640] ss:$16 sps:$4 sm:$0xff]  }
 0x4a4   :  { %5259 = vmatmul.mubr.bf16.gmra.mrb[116].mxu0 %v14894_v14  ;;  %5372 = vmatmul.mubr.bf16.gmra.mrb[116].mxu1 %v14894_v14  ;;  %v12741_v48 = vld [vmem:[%s16593_s3 + $0x648] ss:$16 sps:$4 sm:$0xff]   ;;  %v12746_v1 = vld [vmem:[%s16593_s3 + $0x664] ss:$16 sps:$4 sm:$0xff]   ;;  %v12749_v50 = vld [vmem:[%s16593_s3 + $0x66c] ss:$16 sps:$4 sm:$0xff]  }
 0x4a5   :  { %5268 = vmatprep.mubr.bf16.mxu0 %v14908_v60  ;;  %5381 = vmatprep.mubr.bf16.mxu1 %v14908_v60  ;;  %v12744_v52 = vld [vmem:[%s16593_s3 + $0x660] ss:$16 sps:$4 sm:$0xff]   ;;  %v12747_v54 = vld [vmem:[%s16593_s3 + $0x668] ss:$16 sps:$4 sm:$0xff]   ;;  %v12752_v58 = vld [vmem:[%s16593_s3 + $0x684] ss:$16 sps:$4 sm:$0xff]  }
 0x4a6   :  { %5808 = vmatpush1.bf16.msra.mxu0 %v12690_v4  ;;  %5921 = vmatpush1.bf16.msra.mxu1 %v12693_v10  ;;  %v12755_v57 = vld [vmem:[%s16593_s3 + $0x68c] ss:$16 sps:$4 sm:$0xff]   ;;  %v12750_v59 = vld [vmem:[%s16593_s3 + $0x680] ss:$16 sps:$4 sm:$0xff]   ;;  %v12753_v63 = vld [vmem:[%s16593_s3 + $0x688] ss:$16 sps:$4 sm:$0xff]  }
 0x4a7   :  { %5809 = vmatprep.subr.bf16.mxu0 %v12698_v11  ;;  %5922 = vmatprep.subr.bf16.mxu1 %v12701_v13  ;;  %v12758_v6 = vld [vmem:[%s16593_s3 + $0x6a4] ss:$16 sps:$4 sm:$0xff]   ;;  %v12761_v4 = vld [vmem:[%s16593_s3 + $0x6ac] ss:$16 sps:$4 sm:$0xff]   ;;  %v12756_v10 = vld [vmem:[%s16593_s3 + $0x6a0] ss:$16 sps:$4 sm:$0xff]  }
 0x4a8   :  { %v12759_v11 = vld [vmem:[%s16593_s3 + $0x6a8] ss:$16 sps:$4 sm:$0xff]   ;;  %v12764_v13 = vld [vmem:[%s16593_s3 + $0x6c4] ss:$16 sps:$4 sm:$0xff]  }
 0x4aa   :  { %5810 = vmatpush1.bf16.msra.mxu0 %v12696_v15  ;;  %5923 = vmatpush1.bf16.msra.mxu1 %v12699_v30  ;;  %v12767_v15 = vld [vmem:[%s16593_s3 + $0x6cc] ss:$16 sps:$4 sm:$0xff]   ;;  %v12762_v30 = vld [vmem:[%s16593_s3 + $0x6c0] ss:$16 sps:$4 sm:$0xff]  }
 0x4ab   :  { %5811 = vmatprep.subr.bf16.mxu0 %v12704_v16  ;;  %5924 = vmatprep.subr.bf16.mxu1 %v12707_v18  ;;  %v12765_v16 = vld [vmem:[%s16593_s3 + $0x6c8] ss:$16 sps:$4 sm:$0xff]   ;;  %v12770_v18 = vld [vmem:[%s16593_s3 + $0x6e4] ss:$16 sps:$4 sm:$0xff]  }
 0x4ac   :  { %5269 = vmatmul.mubr.bf16.gmra.mrb[120].mxu0 %v14906_v56  ;;  %5382 = vmatmul.mubr.bf16.gmra.mrb[120].mxu1 %v14906_v56 }
 0x4ad   :  { %5278 = vmatprep.mubr.bf16.mxu0 %v14920_v49  ;;  %5391 = vmatprep.mubr.bf16.mxu1 %v14920_v49 }
 0x4ae   :  { %5812 = vmatpush1.bf16.msra.mxu0 %v12702_v19  ;;  %5925 = vmatpush1.bf16.msra.mxu1 %v12705_v20  ;;  %v12773_v19 = vld [vmem:[%s16593_s3 + $0x6ec] ss:$16 sps:$4 sm:$0xff]   ;;  %v12768_v20 = vld [vmem:[%s16593_s3 + $0x6e0] ss:$16 sps:$4 sm:$0xff]  }
 0x4af   :  { %5813 = vmatprep.subr.bf16.mxu0 %v12710_v21  ;;  %5926 = vmatprep.subr.bf16.mxu1 %v12713_v22  ;;  %v12771_v21 = vld [vmem:[%s16593_s3 + $0x6e8] ss:$16 sps:$4 sm:$0xff]   ;;  %v12776_v22 = vld [vmem:[%s16593_s3 + $0x704] ss:$16 sps:$4 sm:$0xff]  }
 0x4b2   :  { %5814 = vmatpush1.bf16.msra.mxu0 %v12708_v23  ;;  %5927 = vmatpush1.bf16.msra.mxu1 %v12711_v24  ;;  %v12779_v23 = vld [vmem:[%s16593_s3 + $0x70c] ss:$16 sps:$4 sm:$0xff]   ;;  %v12774_v24 = vld [vmem:[%s16593_s3 + $0x700] ss:$16 sps:$4 sm:$0xff]  }
 0x4b3   :  { %5815 = vmatprep.subr.bf16.mxu0 %v12716_v25  ;;  %5928 = vmatprep.subr.bf16.mxu1 %v12719_v26  ;;  %v12777_v25 = vld [vmem:[%s16593_s3 + $0x708] ss:$16 sps:$4 sm:$0xff]   ;;  %v12782_v26 = vld [vmem:[%s16593_s3 + $0x724] ss:$16 sps:$4 sm:$0xff]  }
 0x4b4   :  { %5279 = vmatmul.mubr.bf16.gmra.mrb[124].mxu0 %v14918_v45  ;;  %5392 = vmatmul.mubr.bf16.gmra.mrb[124].mxu1 %v14918_v45 }
 0x4b5   :  { %5819 = vmatprep.mubr.bf16.mxu0 %v14716_v7  ;;  %5932 = vmatprep.mubr.bf16.mxu1 %v14716_v7  ;;  %v12731_v7 = vld [vmem:[%s16593_s3 + $0x60c] ss:$16 sps:$4 sm:$0xff]  }
 0x4b6   :  { %5816 = vmatpush1.bf16.msra.mxu0 %v12714_v28  ;;  %5929 = vmatpush1.bf16.msra.mxu1 %v12717_v29  ;;  %v12785_v28 = vld [vmem:[%s16593_s3 + $0x72c] ss:$16 sps:$4 sm:$0xff]   ;;  %v12780_v29 = vld [vmem:[%s16593_s3 + $0x720] ss:$16 sps:$4 sm:$0xff]  }
 0x4b7   :  { %5817 = vmatprep.subr.bf16.mxu0 %v12722_v31  ;;  %5930 = vmatprep.subr.bf16.mxu1 %v12725_v27  ;;  %v12783_v31 = vld [vmem:[%s16593_s3 + $0x728] ss:$16 sps:$4 sm:$0xff]   ;;  %v12788_v27 = vld [vmem:[%s16593_s3 + $0x744] ss:$16 sps:$4 sm:$0xff]  }
 0x4ba   :  { %5818 = vmatpush1.bf16.msra.mxu0 %v12720_v32  ;;  %5931 = vmatpush1.bf16.msra.mxu1 %v12723_v33  ;;  %v12791_v32 = vld [vmem:[%s16593_s3 + $0x74c] ss:$16 sps:$4 sm:$0xff]   ;;  %v12786_v33 = vld [vmem:[%s16593_s3 + $0x740] ss:$16 sps:$4 sm:$0xff]  }
 0x4bb   :  { %6462 = vmatprep.subr.bf16.mxu0 %v12728_v34  ;;  %6575 = vmatprep.subr.bf16.mxu1 %v12731_v7  ;;  %v12789_v34 = vld [vmem:[%s16593_s3 + $0x748] ss:$16 sps:$4 sm:$0xff]   ;;  %v12794_v7 = vld [vmem:[%s16593_s3 + $0x764] ss:$16 sps:$4 sm:$0xff]  }
 0x4bd   :  { %5820 = vmatmul.mubr.bf16.vlgmr.msra.gmra.mrb[96].mxu0 %v14714_v3  ;;  %5933 = vmatmul.mubr.bf16.vlgmr.msra.gmra.mrb[96].mxu1 %v14714_v3  ;;  %v12740_v3 = vld [vmem:[%s16593_s3 + $0x644] ss:$16 sps:$4 sm:$0xff]  }
 0x4be   :  { %5829 = vmatprep.mubr.bf16.mxu0 %v14776_v8  ;;  %5942 = vmatprep.mubr.bf16.mxu1 %v14776_v8 }
 0x4bf   :  { %6463 = vmatpush1.bf16.msra.mxu0 %v12726_v9  ;;  %6576 = vmatpush1.bf16.msra.mxu1 %v12729_v35  ;;  %v12797_v9 = vld [vmem:[%s16593_s3 + $0x76c] ss:$16 sps:$4 sm:$0xff]   ;;  %v12792_v35 = vld [vmem:[%s16593_s3 + $0x760] ss:$16 sps:$4 sm:$0xff]  }
 0x4c0   :  { %6464 = vmatprep.subr.bf16.mxu0 %v12734_v36  ;;  %6577 = vmatprep.subr.bf16.mxu1 %v12737_v37  ;;  %v12795_v36 = vld [vmem:[%s16593_s3 + $0x768] ss:$16 sps:$4 sm:$0xff]   ;;  %v12800_v37 = vld [vmem:[%s16593_s3 + $0x784] ss:$16 sps:$4 sm:$0xff]  }
 0x4c3   :  { %6465 = vmatpush1.bf16.msra.mxu0 %v12732_v40  ;;  %6578 = vmatpush1.bf16.msra.mxu1 %v12735_v42  ;;  %v12803_v40 = vld [vmem:[%s16593_s3 + $0x78c] ss:$16 sps:$4 sm:$0xff]   ;;  %v12798_v42 = vld [vmem:[%s16593_s3 + $0x780] ss:$16 sps:$4 sm:$0xff]  }
 0x4c4   :  { %6466 = vmatprep.subr.bf16.mxu0 %v12740_v3  ;;  %6579 = vmatprep.subr.bf16.mxu1 %v12743_v44  ;;  %v12801_v3 = vld [vmem:[%s16593_s3 + $0x788] ss:$16 sps:$4 sm:$0xff]   ;;  %v12806_v44 = vld [vmem:[%s16593_s3 + $0x7a4] ss:$16 sps:$4 sm:$0xff]  }
 0x4c5   :  { %5830 = vmatmul.mubr.bf16.gmra.mrb[100].mxu0 %v14774_v2  ;;  %5943 = vmatmul.mubr.bf16.gmra.mrb[100].mxu1 %v14774_v2 }
 0x4c6   :  { %5839 = vmatprep.mubr.bf16.mxu0 %v14836_v12  ;;  %5952 = vmatprep.mubr.bf16.mxu1 %v14836_v12 }
 0x4c7   :  { %6467 = vmatpush1.bf16.msra.mxu0 %v12738_v46  ;;  %6580 = vmatpush1.bf16.msra.mxu1 %v12741_v48  ;;  %v12809_v46 = vld [vmem:[%s16593_s3 + $0x7ac] ss:$16 sps:$4 sm:$0xff]   ;;  %v12804_v48 = vld [vmem:[%s16593_s3 + $0x7a0] ss:$16 sps:$4 sm:$0xff]  }
 0x4c8   :  { %6468 = vmatprep.subr.bf16.mxu0 %v12746_v1  ;;  %6581 = vmatprep.subr.bf16.mxu1 %v12749_v50  ;;  %v12807_v1 = vld [vmem:[%s16593_s3 + $0x7a8] ss:$16 sps:$4 sm:$0xff]   ;;  %v12812_v50 = vld [vmem:[%s16593_s3 + $0x7c4] ss:$16 sps:$4 sm:$0xff]  }
 0x4cb   :  { %6469 = vmatpush1.bf16.msra.mxu0 %v12744_v52  ;;  %6582 = vmatpush1.bf16.msra.mxu1 %v12747_v54  ;;  %v12815_v52 = vld [vmem:[%s16593_s3 + $0x7cc] ss:$16 sps:$4 sm:$0xff]   ;;  %v12810_v54 = vld [vmem:[%s16593_s3 + $0x7c0] ss:$16 sps:$4 sm:$0xff]  }
 0x4cc   :  { %6470 = vmatprep.subr.bf16.mxu0 %v12752_v58  ;;  %6583 = vmatprep.subr.bf16.mxu1 %v12755_v57  ;;  %v12813_v58 = vld [vmem:[%s16593_s3 + $0x7c8] ss:$16 sps:$4 sm:$0xff]   ;;  %v12818_v57 = vld [vmem:[%s16593_s3 + $0x7e4] ss:$16 sps:$4 sm:$0xff]  }
 0x4cd   :  { %5840 = vmatmul.mubr.bf16.gmra.mrb[104].mxu0 %v14834_v5  ;;  %5953 = vmatmul.mubr.bf16.gmra.mrb[104].mxu1 %v14834_v5 }
 0x4ce   :  { %5849 = vmatprep.mubr.bf16.mxu0 %v14896_v17  ;;  %5962 = vmatprep.mubr.bf16.mxu1 %v14896_v17 }
 0x4cf   :  { %6471 = vmatpush1.bf16.msra.mxu0 %v12750_v59  ;;  %6584 = vmatpush1.bf16.msra.mxu1 %v12753_v63  ;;  %v12821_v59 = vld [vmem:[%s16593_s3 + $0x7ec] ss:$16 sps:$4 sm:$0xff]   ;;  %v12816_v63 = vld [vmem:[%s16593_s3 + $0x7e0] ss:$16 sps:$4 sm:$0xff]  }
 0x4d0   :  { %6472 = vmatprep.subr.bf16.mxu0 %v12758_v6  ;;  %6585 = vmatprep.subr.bf16.mxu1 %v12761_v4  ;;  %v12819_v6 = vld [vmem:[%s16593_s3 + $0x7e8] ss:$16 sps:$4 sm:$0xff]   ;;  %v12824_v4 = vld [vmem:[%s16593_s3 + $0x804] ss:$16 sps:$4 sm:$0xff]  }
 0x4d3   :  { %6473 = vmatpush1.bf16.msra.mxu0 %v12756_v10  ;;  %6586 = vmatpush1.bf16.msra.mxu1 %v12759_v11  ;;  %v12822_v10 = vld [vmem:[%s16593_s3 + $0x800] ss:$16 sps:$4 sm:$0xff]   ;;  %v12825_v11 = vld [vmem:[%s16593_s3 + $0x808] ss:$16 sps:$4 sm:$0xff]  }
 0x4d4   :  { %6474 = vmatprep.subr.bf16.mxu0 %v12764_v13  ;;  %6587 = vmatprep.subr.bf16.mxu1 %v12767_v15  ;;  %v12830_v13 = vld [vmem:[%s16593_s3 + $0x824] ss:$16 sps:$4 sm:$0xff]   ;;  %v12833_v15 = vld [vmem:[%s16593_s3 + $0x82c] ss:$16 sps:$4 sm:$0xff]  }
 0x4d5   :  { %5850 = vmatmul.mubr.bf16.gmra.mrb[108].mxu0 %v14894_v14  ;;  %5963 = vmatmul.mubr.bf16.gmra.mrb[108].mxu1 %v14894_v14 }
 0x4d6   :  { %5859 = vmatprep.mubr.bf16.mxu0 %v14908_v60  ;;  %5972 = vmatprep.mubr.bf16.mxu1 %v14908_v60 }
 0x4d7   :  { %6475 = vmatpush1.bf16.msra.mxu0 %v12762_v30  ;;  %6588 = vmatpush1.bf16.msra.mxu1 %v12765_v16  ;;  %v12828_v30 = vld [vmem:[%s16593_s3 + $0x820] ss:$16 sps:$4 sm:$0xff]   ;;  %v12831_v16 = vld [vmem:[%s16593_s3 + $0x828] ss:$16 sps:$4 sm:$0xff]  }
 0x4d8   :  { %6476 = vmatprep.subr.bf16.mxu0 %v12770_v18  ;;  %6589 = vmatprep.subr.bf16.mxu1 %v12773_v19  ;;  %v12836_v18 = vld [vmem:[%s16593_s3 + $0x844] ss:$16 sps:$4 sm:$0xff]   ;;  %v12834_v19 = vld [vmem:[%s16593_s3 + $0x840] ss:$16 sps:$4 sm:$0xff]  }
 0x4db   :  { %6477 = vmatpush1.bf16.msra.mxu0 %v12768_v20  ;;  %6590 = vmatpush1.bf16.msra.mxu1 %v12771_v21  ;;  %v12837_v20 = vld [vmem:[%s16593_s3 + $0x848] ss:$16 sps:$4 sm:$0xff]   ;;  %v12842_v21 = vld [vmem:[%s16593_s3 + $0x864] ss:$16 sps:$4 sm:$0xff]  }
 0x4dc   :  { %6478 = vmatprep.subr.bf16.mxu0 %v12776_v22  ;;  %6591 = vmatprep.subr.bf16.mxu1 %v12779_v23  ;;  %v12845_v22 = vld [vmem:[%s16593_s3 + $0x86c] ss:$16 sps:$4 sm:$0xff]   ;;  %v12840_v23 = vld [vmem:[%s16593_s3 + $0x860] ss:$16 sps:$4 sm:$0xff]  }
 0x4dd   :  { %5860 = vmatmul.mubr.bf16.gmra.mrb[112].mxu0 %v14906_v56  ;;  %5973 = vmatmul.mubr.bf16.gmra.mrb[112].mxu1 %v14906_v56 }
 0x4de   :  { %5869 = vmatprep.mubr.bf16.mxu0 %v14920_v49  ;;  %5982 = vmatprep.mubr.bf16.mxu1 %v14920_v49 }
 0x4df   :  { %6479 = vmatpush1.bf16.msra.mxu0 %v12774_v24  ;;  %6592 = vmatpush1.bf16.msra.mxu1 %v12777_v25  ;;  %v12843_v24 = vld [vmem:[%s16593_s3 + $0x868] ss:$16 sps:$4 sm:$0xff]   ;;  %v12848_v25 = vld [vmem:[%s16593_s3 + $0x884] ss:$16 sps:$4 sm:$0xff]  }
 0x4e0   :  { %6480 = vmatprep.subr.bf16.mxu0 %v12782_v26  ;;  %6593 = vmatprep.subr.bf16.mxu1 %v12785_v28  ;;  %v12851_v26 = vld [vmem:[%s16593_s3 + $0x88c] ss:$16 sps:$4 sm:$0xff]   ;;  %v12846_v28 = vld [vmem:[%s16593_s3 + $0x880] ss:$16 sps:$4 sm:$0xff]  }
 0x4e3   :  { %6481 = vmatpush1.bf16.msra.mxu0 %v12780_v29  ;;  %6594 = vmatpush1.bf16.msra.mxu1 %v12783_v31  ;;  %v12849_v29 = vld [vmem:[%s16593_s3 + $0x888] ss:$16 sps:$4 sm:$0xff]   ;;  %v12854_v31 = vld [vmem:[%s16593_s3 + $0x8a4] ss:$16 sps:$4 sm:$0xff]  }
 0x4e4   :  { %6482 = vmatprep.subr.bf16.mxu0 %v12788_v27  ;;  %6595 = vmatprep.subr.bf16.mxu1 %v12791_v32  ;;  %v12857_v27 = vld [vmem:[%s16593_s3 + $0x8ac] ss:$16 sps:$4 sm:$0xff]   ;;  %v12852_v32 = vld [vmem:[%s16593_s3 + $0x8a0] ss:$16 sps:$4 sm:$0xff]  }
 0x4e5   :  { %5870 = vmatmul.mubr.bf16.gmra.mrb[116].mxu0 %v14918_v45  ;;  %5983 = vmatmul.mubr.bf16.gmra.mrb[116].mxu1 %v14918_v45 }
 0x4e6   :  { %5879 = vmatprep.mubr.bf16.mxu0 %v14932_v41  ;;  %5992 = vmatprep.mubr.bf16.mxu1 %v14932_v41 }
 0x4e7   :  { %6483 = vmatpush1.bf16.msra.mxu0 %v12786_v33  ;;  %6596 = vmatpush1.bf16.msra.mxu1 %v12789_v34  ;;  %v12855_v33 = vld [vmem:[%s16593_s3 + $0x8a8] ss:$16 sps:$4 sm:$0xff]   ;;  %v12860_v34 = vld [vmem:[%s16593_s3 + $0x8c4] ss:$16 sps:$4 sm:$0xff]  }
 0x4e8   :  { %6484 = vmatprep.subr.bf16.mxu0 %v12794_v7  ;;  %6597 = vmatprep.subr.bf16.mxu1 %v12797_v9  ;;  %v12863_v7 = vld [vmem:[%s16593_s3 + $0x8cc] ss:$16 sps:$4 sm:$0xff]   ;;  %v12858_v9 = vld [vmem:[%s16593_s3 + $0x8c0] ss:$16 sps:$4 sm:$0xff]  }
 0x4eb   :  { %6485 = vmatpush1.bf16.msra.mxu0 %v12792_v35  ;;  %6598 = vmatpush1.bf16.msra.mxu1 %v12795_v36  ;;  %v12861_v35 = vld [vmem:[%s16593_s3 + $0x8c8] ss:$16 sps:$4 sm:$0xff]   ;;  %v12866_v36 = vld [vmem:[%s16593_s3 + $0x8e4] ss:$16 sps:$4 sm:$0xff]  }
 0x4ec   :  { %6486 = vmatprep.subr.bf16.mxu0 %v12800_v37  ;;  %6599 = vmatprep.subr.bf16.mxu1 %v12803_v40  ;;  %v12869_v37 = vld [vmem:[%s16593_s3 + $0x8ec] ss:$16 sps:$4 sm:$0xff]   ;;  %v12864_v40 = vld [vmem:[%s16593_s3 + $0x8e0] ss:$16 sps:$4 sm:$0xff]  }
 0x4ed   :  { %5880 = vmatmul.mubr.bf16.gmra.mrb[120].mxu0 %v14930_v38  ;;  %5993 = vmatmul.mubr.bf16.gmra.mrb[120].mxu1 %v14930_v38 }
 0x4ee   :  { %5889 = vmatprep.mubr.bf16.mxu0 %v14974_v43  ;;  %6002 = vmatprep.mubr.bf16.mxu1 %v14974_v43 }
 0x4ef   :  { %6487 = vmatpush1.bf16.msra.mxu0 %v12798_v42  ;;  %6600 = vmatpush1.bf16.msra.mxu1 %v12801_v3  ;;  %v12867_v42 = vld [vmem:[%s16593_s3 + $0x8e8] ss:$16 sps:$4 sm:$0xff]   ;;  %v12872_v3 = vld [vmem:[%s16593_s3 + $0x904] ss:$16 sps:$4 sm:$0xff]  }
 0x4f0   :  { %6488 = vmatprep.subr.bf16.mxu0 %v12806_v44  ;;  %6601 = vmatprep.subr.bf16.mxu1 %v12809_v46  ;;  %v12875_v44 = vld [vmem:[%s16593_s3 + $0x90c] ss:$16 sps:$4 sm:$0xff]   ;;  %v12870_v46 = vld [vmem:[%s16593_s3 + $0x900] ss:$16 sps:$4 sm:$0xff]  }
 0x4f3   :  { %6489 = vmatpush1.bf16.msra.mxu0 %v12804_v48  ;;  %6602 = vmatpush1.bf16.msra.mxu1 %v12807_v1  ;;  %v12873_v48 = vld [vmem:[%s16593_s3 + $0x908] ss:$16 sps:$4 sm:$0xff]   ;;  %v12878_v1 = vld [vmem:[%s16593_s3 + $0x924] ss:$16 sps:$4 sm:$0xff]  }
 0x4f4   :  { %6490 = vmatprep.subr.bf16.mxu0 %v12812_v50  ;;  %6603 = vmatprep.subr.bf16.mxu1 %v12815_v52  ;;  %v12881_v50 = vld [vmem:[%s16593_s3 + $0x92c] ss:$16 sps:$4 sm:$0xff]   ;;  %v12876_v52 = vld [vmem:[%s16593_s3 + $0x920] ss:$16 sps:$4 sm:$0xff]  }
 0x4f5   :  { %5890 = vmatmul.mubr.bf16.gmra.mrb[124].mxu0 %v14972_v39  ;;  %6003 = vmatmul.mubr.bf16.gmra.mrb[124].mxu1 %v14972_v39 }
 0x4f6   :  { %6494 = vmatprep.mubr.bf16.mxu0 %v14776_v8  ;;  %6607 = vmatprep.mubr.bf16.mxu1 %v14776_v8  ;;  %v12827_v8 = vld [vmem:[%s16593_s3 + $0x80c] ss:$16 sps:$4 sm:$0xff]  }
 0x4f7   :  { %6491 = vmatpush1.bf16.msra.mxu0 %v12810_v54  ;;  %6604 = vmatpush1.bf16.msra.mxu1 %v12813_v58  ;;  %v12879_v54 = vld [vmem:[%s16593_s3 + $0x928] ss:$16 sps:$4 sm:$0xff]   ;;  %v12884_v58 = vld [vmem:[%s16593_s3 + $0x944] ss:$16 sps:$4 sm:$0xff]  }
 0x4f8   :  { %6492 = vmatprep.subr.bf16.mxu0 %v12818_v57  ;;  %6605 = vmatprep.subr.bf16.mxu1 %v12821_v59  ;;  %v12887_v57 = vld [vmem:[%s16593_s3 + $0x94c] ss:$16 sps:$4 sm:$0xff]   ;;  %v12882_v59 = vld [vmem:[%s16593_s3 + $0x940] ss:$16 sps:$4 sm:$0xff]  }
 0x4fb   :  { %6493 = vmatpush1.bf16.msra.mxu0 %v12816_v63  ;;  %6606 = vmatpush1.bf16.msra.mxu1 %v12819_v6  ;;  %v12885_v63 = vld [vmem:[%s16593_s3 + $0x948] ss:$16 sps:$4 sm:$0xff]   ;;  %v12890_v6 = vld [vmem:[%s16593_s3 + $0x964] ss:$16 sps:$4 sm:$0xff]  }
 0x4fc   :  { %7137 = vmatprep.subr.bf16.mxu0 %v12824_v4  ;;  %7250 = vmatprep.subr.bf16.mxu1 %v12827_v8  ;;  %v12893_v4 = vld [vmem:[%s16593_s3 + $0x96c] ss:$16 sps:$4 sm:$0xff]   ;;  %v12888_v8 = vld [vmem:[%s16593_s3 + $0x960] ss:$16 sps:$4 sm:$0xff]  }
 0x4fe   :  { %6495 = vmatmul.mubr.bf16.vlgmr.msra.gmra.mrb[96].mxu0 %v14774_v2  ;;  %6608 = vmatmul.mubr.bf16.vlgmr.msra.gmra.mrb[96].mxu1 %v14774_v2  ;;  %v12839_v2 = vld [vmem:[%s16593_s3 + $0x84c] ss:$16 sps:$4 sm:$0xff]  }
 0x4ff   :  { %6504 = vmatprep.mubr.bf16.mxu0 %v14836_v12  ;;  %6617 = vmatprep.mubr.bf16.mxu1 %v14836_v12 }
 0x500   :  { %7138 = vmatpush1.bf16.msra.mxu0 %v12822_v10  ;;  %7251 = vmatpush1.bf16.msra.mxu1 %v12825_v11  ;;  %v12891_v10 = vld [vmem:[%s16593_s3 + $0x968] ss:$16 sps:$4 sm:$0xff]   ;;  %v12896_v11 = vld [vmem:[%s16593_s3 + $0x984] ss:$16 sps:$4 sm:$0xff]  }
 0x501   :  { %7139 = vmatprep.subr.bf16.mxu0 %v12830_v13  ;;  %7252 = vmatprep.subr.bf16.mxu1 %v12833_v15  ;;  %v12899_v13 = vld [vmem:[%s16593_s3 + $0x98c] ss:$16 sps:$4 sm:$0xff]   ;;  %v12894_v15 = vld [vmem:[%s16593_s3 + $0x980] ss:$16 sps:$4 sm:$0xff]  }
 0x504   :  { %7140 = vmatpush1.bf16.msra.mxu0 %v12828_v30  ;;  %7253 = vmatpush1.bf16.msra.mxu1 %v12831_v16  ;;  %v12897_v30 = vld [vmem:[%s16593_s3 + $0x988] ss:$16 sps:$4 sm:$0xff]   ;;  %v12902_v16 = vld [vmem:[%s16593_s3 + $0x9a4] ss:$16 sps:$4 sm:$0xff]  }
 0x505   :  { %7141 = vmatprep.subr.bf16.mxu0 %v12836_v18  ;;  %7254 = vmatprep.subr.bf16.mxu1 %v12839_v2  ;;  %v12905_v18 = vld [vmem:[%s16593_s3 + $0x9ac] ss:$16 sps:$4 sm:$0xff]   ;;  %v12900_v2 = vld [vmem:[%s16593_s3 + $0x9a0] ss:$16 sps:$4 sm:$0xff]  }
 0x506   :  { %6505 = vmatmul.mubr.bf16.gmra.mrb[100].mxu0 %v14834_v5  ;;  %6618 = vmatmul.mubr.bf16.gmra.mrb[100].mxu1 %v14834_v5 }
 0x507   :  { %6514 = vmatprep.mubr.bf16.mxu0 %v14896_v17  ;;  %6627 = vmatprep.mubr.bf16.mxu1 %v14896_v17 }
 0x508   :  { %7142 = vmatpush1.bf16.msra.mxu0 %v12834_v19  ;;  %7255 = vmatpush1.bf16.msra.mxu1 %v12837_v20  ;;  %v12903_v19 = vld [vmem:[%s16593_s3 + $0x9a8] ss:$16 sps:$4 sm:$0xff]   ;;  %v12908_v20 = vld [vmem:[%s16593_s3 + $0x9c4] ss:$16 sps:$4 sm:$0xff]  }
 0x509   :  { %7143 = vmatprep.subr.bf16.mxu0 %v12842_v21  ;;  %7256 = vmatprep.subr.bf16.mxu1 %v12845_v22  ;;  %v12911_v21 = vld [vmem:[%s16593_s3 + $0x9cc] ss:$16 sps:$4 sm:$0xff]   ;;  %v12906_v22 = vld [vmem:[%s16593_s3 + $0x9c0] ss:$16 sps:$4 sm:$0xff]  }
 0x50c   :  { %7144 = vmatpush1.bf16.msra.mxu0 %v12840_v23  ;;  %7257 = vmatpush1.bf16.msra.mxu1 %v12843_v24  ;;  %v12909_v23 = vld [vmem:[%s16593_s3 + $0x9c8] ss:$16 sps:$4 sm:$0xff]   ;;  %v12914_v24 = vld [vmem:[%s16593_s3 + $0x9e4] ss:$16 sps:$4 sm:$0xff]  }
 0x50d   :  { %7145 = vmatprep.subr.bf16.mxu0 %v12848_v25  ;;  %7258 = vmatprep.subr.bf16.mxu1 %v12851_v26  ;;  %v12917_v25 = vld [vmem:[%s16593_s3 + $0x9ec] ss:$16 sps:$4 sm:$0xff]   ;;  %v12912_v26 = vld [vmem:[%s16593_s3 + $0x9e0] ss:$16 sps:$4 sm:$0xff]  }
 0x50e   :  { %6515 = vmatmul.mubr.bf16.gmra.mrb[104].mxu0 %v14894_v14  ;;  %6628 = vmatmul.mubr.bf16.gmra.mrb[104].mxu1 %v14894_v14 }
 0x50f   :  { %6524 = vmatprep.mubr.bf16.mxu0 %v14908_v60  ;;  %6637 = vmatprep.mubr.bf16.mxu1 %v14908_v60 }
 0x510   :  { %7146 = vmatpush1.bf16.msra.mxu0 %v12846_v28  ;;  %7259 = vmatpush1.bf16.msra.mxu1 %v12849_v29  ;;  %v12915_v28 = vld [vmem:[%s16593_s3 + $0x9e8] ss:$16 sps:$4 sm:$0xff]   ;;  %v12920_v29 = vld [vmem:[%s16595_s5 + $0x204] ss:$16 sps:$4 sm:$0xff]  }
 0x511   :  { %7147 = vmatprep.subr.bf16.mxu0 %v12854_v31  ;;  %7260 = vmatprep.subr.bf16.mxu1 %v12857_v27  ;;  %v12923_v31 = vld [vmem:[%s16595_s5 + $0x20c] ss:$16 sps:$4 sm:$0xff]   ;;  %v12918_v27 = vld [vmem:[%s16595_s5 + $0x200] ss:$16 sps:$4 sm:$0xff]  }
 0x514   :  { %7148 = vmatpush1.bf16.msra.mxu0 %v12852_v32  ;;  %7261 = vmatpush1.bf16.msra.mxu1 %v12855_v33  ;;  %v12926_v32 = vld [vmem:[%s16595_s5 + $0x224] ss:$16 sps:$4 sm:$0xff]   ;;  %v12929_v33 = vld [vmem:[%s16595_s5 + $0x22c] ss:$16 sps:$4 sm:$0xff]  }
 0x515   :  { %7149 = vmatprep.subr.bf16.mxu0 %v12860_v34  ;;  %7262 = vmatprep.subr.bf16.mxu1 %v12863_v7  ;;  %v12924_v34 = vld [vmem:[%s16595_s5 + $0x220] ss:$16 sps:$4 sm:$0xff]   ;;  %v12927_v7 = vld [vmem:[%s16595_s5 + $0x228] ss:$16 sps:$4 sm:$0xff]  }
 0x516   :  { %6525 = vmatmul.mubr.bf16.gmra.mrb[108].mxu0 %v14906_v56  ;;  %6638 = vmatmul.mubr.bf16.gmra.mrb[108].mxu1 %v14906_v56 }
 0x517   :  { %6534 = vmatprep.mubr.bf16.mxu0 %v14920_v49  ;;  %6647 = vmatprep.mubr.bf16.mxu1 %v14920_v49 }
 0x518   :  { %7150 = vmatpush1.bf16.msra.mxu0 %v12858_v9  ;;  %7263 = vmatpush1.bf16.msra.mxu1 %v12861_v35  ;;  %v12932_v9 = vld [vmem:[%s16595_s5 + $0x244] ss:$16 sps:$4 sm:$0xff]   ;;  %v12930_v35 = vld [vmem:[%s16595_s5 + $0x240] ss:$16 sps:$4 sm:$0xff]  }
 0x519   :  { %7151 = vmatprep.subr.bf16.mxu0 %v12866_v36  ;;  %7264 = vmatprep.subr.bf16.mxu1 %v12869_v37  ;;  %v12938_v36 = vld [vmem:[%s16595_s5 + $0x264] ss:$16 sps:$4 sm:$0xff]   ;;  %v12941_v37 = vld [vmem:[%s16595_s5 + $0x26c] ss:$16 sps:$4 sm:$0xff]  }
 0x51c   :  { %7152 = vmatpush1.bf16.msra.mxu0 %v12864_v40  ;;  %7265 = vmatpush1.bf16.msra.mxu1 %v12867_v42  ;;  %v12936_v40 = vld [vmem:[%s16595_s5 + $0x260] ss:$16 sps:$4 sm:$0xff]   ;;  %v12939_v42 = vld [vmem:[%s16595_s5 + $0x268] ss:$16 sps:$4 sm:$0xff]  }
 0x51d   :  { %7153 = vmatprep.subr.bf16.mxu0 %v12872_v3  ;;  %7266 = vmatprep.subr.bf16.mxu1 %v12875_v44  ;;  %v12944_v3 = vld [vmem:[%s16595_s5 + $0x284] ss:$16 sps:$4 sm:$0xff]   ;;  %v12942_v44 = vld [vmem:[%s16595_s5 + $0x280] ss:$16 sps:$4 sm:$0xff]  }
 0x51e   :  { %6535 = vmatmul.mubr.bf16.gmra.mrb[112].mxu0 %v14918_v45  ;;  %6648 = vmatmul.mubr.bf16.gmra.mrb[112].mxu1 %v14918_v45 }
 0x51f   :  { %6544 = vmatprep.mubr.bf16.mxu0 %v14932_v41  ;;  %6657 = vmatprep.mubr.bf16.mxu1 %v14932_v41 }
 0x520   :  { %7154 = vmatpush1.bf16.msra.mxu0 %v12870_v46  ;;  %7267 = vmatpush1.bf16.msra.mxu1 %v12873_v48  ;;  %v12950_v46 = vld [vmem:[%s16595_s5 + $0x2a4] ss:$16 sps:$4 sm:$0xff]   ;;  %v12953_v48 = vld [vmem:[%s16595_s5 + $0x2ac] ss:$16 sps:$4 sm:$0xff]  }
 0x521   :  { %7155 = vmatprep.subr.bf16.mxu0 %v12878_v1  ;;  %7268 = vmatprep.subr.bf16.mxu1 %v12881_v50  ;;  %v12948_v1 = vld [vmem:[%s16595_s5 + $0x2a0] ss:$16 sps:$4 sm:$0xff]   ;;  %v12951_v50 = vld [vmem:[%s16595_s5 + $0x2a8] ss:$16 sps:$4 sm:$0xff]  }
 0x524   :  { %7156 = vmatpush1.bf16.msra.mxu0 %v12876_v52  ;;  %7269 = vmatpush1.bf16.msra.mxu1 %v12879_v54  ;;  %v12956_v52 = vld [vmem:[%s16595_s5 + $0x2c4] ss:$16 sps:$4 sm:$0xff]   ;;  %v12954_v54 = vld [vmem:[%s16595_s5 + $0x2c0] ss:$16 sps:$4 sm:$0xff]  }
 0x525   :  { %7157 = vmatprep.subr.bf16.mxu0 %v12884_v58  ;;  %7270 = vmatprep.subr.bf16.mxu1 %v12887_v57  ;;  %v12977_v58 = vld [vmem:[%s16595_s5 + $0x32c] ss:$16 sps:$4 sm:$0xff]   ;;  %v12972_v57 = vld [vmem:[%s16595_s5 + $0x320] ss:$16 sps:$4 sm:$0xff]  }
 0x526   :  { %6545 = vmatmul.mubr.bf16.gmra.mrb[116].mxu0 %v14930_v38  ;;  %6658 = vmatmul.mubr.bf16.gmra.mrb[116].mxu1 %v14930_v38 }
 0x527   :  { %6554 = vmatprep.mubr.bf16.mxu0 %v14974_v43  ;;  %6667 = vmatprep.mubr.bf16.mxu1 %v14974_v43 }
 0x528   :  { %7158 = vmatpush1.bf16.msra.mxu0 %v12882_v59  ;;  %7271 = vmatpush1.bf16.msra.mxu1 %v12885_v63  ;;  %v12975_v59 = vld [vmem:[%s16595_s5 + $0x328] ss:$16 sps:$4 sm:$0xff]   ;;  %v12980_v63 = vld [vmem:[%s16595_s5 + $0x344] ss:$16 sps:$4 sm:$0xff]  }
 0x529   :  { %7159 = vmatprep.subr.bf16.mxu0 %v12890_v6  ;;  %7272 = vmatprep.subr.bf16.mxu1 %v12893_v4  ;;  %v12983_v6 = vld [vmem:[%s16595_s5 + $0x34c] ss:$16 sps:$4 sm:$0xff]   ;;  %v12978_v4 = vld [vmem:[%s16595_s5 + $0x340] ss:$16 sps:$4 sm:$0xff]  }
 0x52c   :  { %7160 = vmatpush1.bf16.msra.mxu0 %v12888_v8  ;;  %7273 = vmatpush1.bf16.msra.mxu1 %v12891_v10  ;;  %v12981_v8 = vld [vmem:[%s16595_s5 + $0x348] ss:$16 sps:$4 sm:$0xff]   ;;  %v12986_v10 = vld [vmem:[%s16595_s5 + $0x364] ss:$16 sps:$4 sm:$0xff]  }
 0x52d   :  { %7161 = vmatprep.subr.bf16.mxu0 %v12896_v11  ;;  %7274 = vmatprep.subr.bf16.mxu1 %v12899_v13  ;;  %v12989_v11 = vld [vmem:[%s16595_s5 + $0x36c] ss:$16 sps:$4 sm:$0xff]   ;;  %v12984_v13 = vld [vmem:[%s16595_s5 + $0x360] ss:$16 sps:$4 sm:$0xff]  }
 0x52e   :  { %6555 = vmatmul.mubr.bf16.gmra.mrb[120].mxu0 %v14972_v39  ;;  %6668 = vmatmul.mubr.bf16.gmra.mrb[120].mxu1 %v14972_v39 }
 0x52f   :  { %6564 = vmatprep.mubr.bf16.mxu0 %v15038_v61  ;;  %6677 = vmatprep.mubr.bf16.mxu1 %v15038_v61 }
 0x530   :  { %7162 = vmatpush1.bf16.msra.mxu0 %v12894_v15  ;;  %7275 = vmatpush1.bf16.msra.mxu1 %v12897_v30  ;;  %v12987_v15 = vld [vmem:[%s16595_s5 + $0x368] ss:$16 sps:$4 sm:$0xff]   ;;  %v12990_v30 = vld [vmem:[%s16595_s5 + $0x380] ss:$16 sps:$4 sm:$0xff]  }
 0x531   :  { %7163 = vmatprep.subr.bf16.mxu0 %v12902_v16  ;;  %7276 = vmatprep.subr.bf16.mxu1 %v12905_v18  ;;  %v12992_v16 = vld [vmem:[%s16595_s5 + $0x384] ss:$16 sps:$4 sm:$0xff]   ;;  %v12993_v18 = vld [vmem:[%s16595_s5 + $0x388] ss:$16 sps:$4 sm:$0xff]  }
 0x534   :  { %7164 = vmatpush1.bf16.msra.mxu0 %v12900_v2  ;;  %7277 = vmatpush1.bf16.msra.mxu1 %v12903_v19  ;;  %v12995_v2 = vld [vmem:[%s16595_s5 + $0x38c] ss:$16 sps:$4 sm:$0xff]   ;;  %v12998_v19 = vld [vmem:[%s16595_s5 + $0x3a4] ss:$16 sps:$4 sm:$0xff]  }
 0x535   :  { %7165 = vmatprep.subr.bf16.mxu0 %v12908_v20  ;;  %7278 = vmatprep.subr.bf16.mxu1 %v12911_v21  ;;  %v13001_v20 = vld [vmem:[%s16595_s5 + $0x3ac] ss:$16 sps:$4 sm:$0xff]   ;;  %v12996_v21 = vld [vmem:[%s16595_s5 + $0x3a0] ss:$16 sps:$4 sm:$0xff]  }
 0x536   :  { %6565 = vmatmul.mubr.bf16.gmra.mrb[124].mxu0 %v15036_v55  ;;  %6678 = vmatmul.mubr.bf16.gmra.mrb[124].mxu1 %v15036_v55 }
 0x537   :  { %7169 = vmatprep.mubr.bf16.mxu0 %v14836_v12  ;;  %7282 = vmatprep.mubr.bf16.mxu1 %v14836_v12  ;;  %v12921_v12 = vld [vmem:[%s16595_s5 + $0x208] ss:$16 sps:$4 sm:$0xff]  }
 0x538   :  { %7166 = vmatpush1.bf16.msra.mxu0 %v12906_v22  ;;  %7279 = vmatpush1.bf16.msra.mxu1 %v12909_v23  ;;  %v12999_v22 = vld [vmem:[%s16595_s5 + $0x3a8] ss:$16 sps:$4 sm:$0xff]   ;;  %v13004_v23 = vld [vmem:[%s16595_s5 + $0x3c4] ss:$16 sps:$4 sm:$0xff]  }
 0x539   :  { %7167 = vmatprep.subr.bf16.mxu0 %v12914_v24  ;;  %7280 = vmatprep.subr.bf16.mxu1 %v12917_v25  ;;  %v13007_v24 = vld [vmem:[%s16595_s5 + $0x3cc] ss:$16 sps:$4 sm:$0xff]   ;;  %v13002_v25 = vld [vmem:[%s16595_s5 + $0x3c0] ss:$16 sps:$4 sm:$0xff]  }
 0x53c   :  { %7168 = vmatpush1.bf16.msra.mxu0 %v12912_v26  ;;  %7281 = vmatpush1.bf16.msra.mxu1 %v12915_v28  ;;  %v13005_v26 = vld [vmem:[%s16595_s5 + $0x3c8] ss:$16 sps:$4 sm:$0xff]   ;;  %v13010_v28 = vld [vmem:[%s16595_s5 + $0x3e4] ss:$16 sps:$4 sm:$0xff]  }
 0x53d   :  { %7976 = vmatprep.subr.bf16.mxu0 %v12920_v29  ;;  %8019 = vmatprep.subr.bf16.mxu1 %v12923_v31  ;;  %v13013_v29 = vld [vmem:[%s16595_s5 + $0x3ec] ss:$16 sps:$4 sm:$0xff]   ;;  %v13008_v31 = vld [vmem:[%s16595_s5 + $0x3e0] ss:$16 sps:$4 sm:$0xff]  }
 0x53f   :  { %7170 = vmatmul.mubr.bf16.vlgmr.msra.gmra.mrb[96].mxu0 %v14834_v5  ;;  %7283 = vmatmul.mubr.bf16.vlgmr.msra.gmra.mrb[96].mxu1 %v14834_v5  ;;  %v12935_v5 = vld [vmem:[%s16595_s5 + $0x24c] ss:$16 sps:$4 sm:$0xff]  }
 0x540   :  { %7179 = vmatprep.mubr.bf16.mxu0 %v14896_v17  ;;  %7292 = vmatprep.mubr.bf16.mxu1 %v14896_v17  ;;  %v12933_v17 = vld [vmem:[%s16595_s5 + $0x248] ss:$16 sps:$4 sm:$0xff]  }
 0x541   :  { %7977 = vmatpush1.bf16.msra.mxu0 %v12918_v27  ;;  %8020 = vmatpush1.bf16.msra.mxu1 %v12921_v12  ;;  %v13011_v27 = vld [vmem:[%s16595_s5 + $0x3e8] ss:$16 sps:$4 sm:$0xff]   ;;  %v13016_v12 = vld [vmem:[%s16595_s5 + $0x4] ss:$16 sps:$4 sm:$0xff]  }
 0x542   :  { %7978 = vmatprep.subr.bf16.mxu0 %v12926_v32  ;;  %8021 = vmatprep.subr.bf16.mxu1 %v12929_v33  ;;  %v13019_v32 = vld [vmem:[%s16595_s5 + $0xc] ss:$16 sps:$4 sm:$0xff]  }
 0x545   :  { %7979 = vmatpush1.bf16.msra.mxu0 %v12924_v34  ;;  %8022 = vmatpush1.bf16.msra.mxu1 %v12927_v7 }
 0x546   :  { %7980 = vmatprep.subr.bf16.mxu0 %v12932_v9  ;;  %8023 = vmatprep.subr.bf16.mxu1 %v12935_v5 }
 0x547   :  { %7180 = vmatmul.mubr.bf16.gmra.mrb[100].mxu0 %v14894_v14  ;;  %7293 = vmatmul.mubr.bf16.gmra.mrb[100].mxu1 %v14894_v14  ;;  %v12947_v14 = vld [vmem:[%s16595_s5 + $0x28c] ss:$16 sps:$4 sm:$0xff]  }
 0x548   :  { %7189 = vmatprep.mubr.bf16.mxu0 %v14908_v60  ;;  %7302 = vmatprep.mubr.bf16.mxu1 %v14908_v60  ;;  %v12945_v60 = vld [vmem:[%s16595_s5 + $0x288] ss:$16 sps:$4 sm:$0xff]  }
 0x549   :  { %7981 = vmatpush1.bf16.msra.mxu0 %v12930_v35  ;;  %8024 = vmatpush1.bf16.msra.mxu1 %v12933_v17 }
 0x54a   :  { %7982 = vmatprep.subr.bf16.mxu0 %v12938_v36  ;;  %8025 = vmatprep.subr.bf16.mxu1 %v12941_v37  ;;  %v7475_v37 = vld [vmem:[%s16596_s4] sm:$0x3] }
 0x54d   :  { %7983 = vmatpush1.bf16.msra.mxu0 %v12936_v40  ;;  %8026 = vmatpush1.bf16.msra.mxu1 %v12939_v42 }
 0x54e   :  { %7984 = vmatprep.subr.bf16.mxu0 %v12944_v3  ;;  %8027 = vmatprep.subr.bf16.mxu1 %v12947_v14 }
 0x54f   :  { %7190 = vmatmul.mubr.bf16.gmra.mrb[104].mxu0 %v14906_v56  ;;  %7303 = vmatmul.mubr.bf16.gmra.mrb[104].mxu1 %v14906_v56  ;;  %v12959_v56 = vld [vmem:[%s16595_s5 + $0x2cc] ss:$16 sps:$4 sm:$0xff]  }
 0x550   :  { %7199 = vmatprep.mubr.bf16.mxu0 %v14920_v49  ;;  %7312 = vmatprep.mubr.bf16.mxu1 %v14920_v49  ;;  %v12957_v49 = vld [vmem:[%s16595_s5 + $0x2c8] ss:$16 sps:$4 sm:$0xff]  }
 0x551   :  { %7985 = vmatpush1.bf16.msra.mxu0 %v12942_v44  ;;  %8028 = vmatpush1.bf16.msra.mxu1 %v12945_v60  ;;  %v15862_v44 = vrot.slane %v7475_v37, %v14628_v51 }
 0x552   :  { %7986 = vmatprep.subr.bf16.mxu0 %v12950_v46  ;;  %8029 = vmatprep.subr.bf16.mxu1 %v12953_v48 }
 0x555   :  { %7987 = vmatpush1.bf16.msra.mxu0 %v12948_v1  ;;  %8030 = vmatpush1.bf16.msra.mxu1 %v12951_v50  ;;  %v15865_v50 = vrot.slane %v7475_v37, %v14634_v53 }
 0x556   :  { %7988 = vmatprep.subr.bf16.mxu0 %v12956_v52  ;;  %8031 = vmatprep.subr.bf16.mxu1 %v12959_v56 }
 0x557   :  { %7200 = vmatmul.mubr.bf16.gmra.mrb[108].mxu0 %v14918_v45  ;;  %7313 = vmatmul.mubr.bf16.gmra.mrb[108].mxu1 %v14918_v45  ;;  %v12962_v45 = vld [vmem:[%s16595_s5 + $0x2e4] ss:$16 sps:$4 sm:$0xff]  }
 0x558   :  { %7209 = vmatprep.mubr.bf16.mxu0 %v14932_v41  ;;  %7322 = vmatprep.mubr.bf16.mxu1 %v14932_v41  ;;  %v12960_v41 = vld [vmem:[%s16595_s5 + $0x2e0] ss:$16 sps:$4 sm:$0xff]  }
 0x559   :  { %7989 = vmatpush1.bf16.msra.mxu0 %v12954_v54  ;;  %8032 = vmatpush1.bf16.msra.mxu1 %v12957_v49 }
 0x55a   :  { %7990 = vmatprep.subr.bf16.mxu0 %v12962_v45 }
 0x55d   :  { %7991 = vmatpush1.bf16.msra.mxu0 %v12960_v41 }
 0x55f   :  { %7210 = vmatmul.mubr.bf16.gmra.mrb[112].mxu0 %v14930_v38  ;;  %7323 = vmatmul.mubr.bf16.gmra.mrb[112].mxu1 %v14930_v38  ;;  %v12965_v38 = vld [vmem:[%s16595_s5 + $0x2ec] ss:$16 sps:$4 sm:$0xff]  }
 0x560   :  { %7219 = vmatprep.mubr.bf16.mxu0 %v14974_v43  ;;  %7332 = vmatprep.mubr.bf16.mxu1 %v14974_v43  ;;  %v12966_v43 = vld [vmem:[%s16595_s5 + $0x300] ss:$16 sps:$4 sm:$0xff]  }
 0x561   :  { %8033 = vmatprep.subr.bf16.mxu1 %v12965_v38 }
 0x567   :  { %7220 = vmatmul.mubr.bf16.gmra.mrb[116].mxu0 %v14972_v39  ;;  %7333 = vmatmul.mubr.bf16.gmra.mrb[116].mxu1 %v14972_v39  ;;  %v12963_v39 = vld [vmem:[%s16595_s5 + $0x2e8] ss:$16 sps:$4 sm:$0xff]  }
 0x568   :  { %7229 = vmatprep.mubr.bf16.mxu0 %v15038_v61  ;;  %7342 = vmatprep.mubr.bf16.mxu1 %v15038_v61  ;;  %v12969_v61 = vld [vmem:[%s16595_s5 + $0x308] ss:$16 sps:$4 sm:$0xff]  }
 0x569   :  { %8034 = vmatpush1.bf16.msra.mxu1 %v12963_v39 }
 0x56f   :  { %7230 = vmatmul.mubr.bf16.gmra.mrb[120].mxu0 %v15036_v55  ;;  %7343 = vmatmul.mubr.bf16.gmra.mrb[120].mxu1 %v15036_v55  ;;  %v12968_v55 = vld [vmem:[%s16595_s5 + $0x304] ss:$16 sps:$4 sm:$0xff]  }
 0x570   :  { %7239 = vmatprep.mubr.bf16.mxu0 %v15102_v0  ;;  %7352 = vmatprep.mubr.bf16.mxu1 %v15102_v0  ;;  %v12974_v0 = vld [vmem:[%s16595_s5 + $0x324] ss:$16 sps:$4 sm:$0xff]  }
 0x571   :  { %7992 = vmatprep.subr.bf16.mxu0 %v12968_v55 }
 0x572   :  { %7993 = vmatpush1.bf16.msra.mxu0 %v12966_v43 }
 0x573   :  { %7994 = vmatprep.subr.bf16.mxu0 %v12974_v0 }
 0x576   :  { %7995 = vmatpush1.bf16.msra.mxu0 %v12972_v57 }
 0x577   :  { %7240 = vmatmul.mubr.bf16.gmra.mrb[124].mxu0 %v15100_v62  ;;  %7353 = vmatmul.mubr.bf16.gmra.mrb[124].mxu1 %v15100_v62  ;;  %v12971_v62 = vld [vmem:[%s16595_s5 + $0x30c] ss:$16 sps:$4 sm:$0xff]  }
 0x578   :  { %8035 = vmatprep.subr.bf16.mxu1 %v12971_v62  ;;  %7996 = vmatprep.subr.bf16.mxu0 %v12980_v63 }
 0x579   :  { %8036 = vmatpush1.bf16.msra.mxu1 %v12969_v61 }
 0x57a   :  { %8037 = vmatprep.subr.bf16.mxu1 %v12977_v58  ;;  %7997 = vmatpush1.bf16.msra.mxu0 %v12978_v4 }
 0x57b   :  { %7998 = vmatprep.subr.bf16.mxu0 %v12986_v10 }
 0x57d   :  { %8038 = vmatpush1.bf16.msra.mxu1 %v12975_v59 }
 0x57e   :  { %8039 = vmatprep.subr.bf16.mxu1 %v12983_v6  ;;  %7999 = vmatpush1.bf16.msra.mxu0 %v12984_v13 }
 0x57f   :  { %8000 = vmatprep.subr.bf16.mxu0 %v12992_v16 }
 0x581   :  { %8040 = vmatpush1.bf16.msra.mxu1 %v12981_v8 }
 0x582   :  { %8041 = vmatprep.subr.bf16.mxu1 %v12989_v11  ;;  %8001 = vmatpush1.bf16.msra.mxu0 %v12990_v30 }
 0x583   :  { %8002 = vmatprep.subr.bf16.mxu0 %v12998_v19 }
 0x585   :  { %8042 = vmatpush1.bf16.msra.mxu1 %v12987_v15 }
 0x586   :  { %8043 = vmatprep.subr.bf16.mxu1 %v12995_v2  ;;  %8003 = vmatpush1.bf16.msra.mxu0 %v12996_v21 }
 0x587   :  { %8004 = vmatprep.subr.bf16.mxu0 %v13004_v23 }
 0x589   :  { %8044 = vmatpush1.bf16.msra.mxu1 %v12993_v18 }
 0x58a   :  { %8045 = vmatprep.subr.bf16.mxu1 %v13001_v20  ;;  %8005 = vmatpush1.bf16.msra.mxu0 %v13002_v25 }
 0x58b   :  { %8006 = vmatprep.subr.bf16.mxu0 %v13010_v28 }
 0x58d   :  { %8046 = vmatpush1.bf16.msra.mxu1 %v12999_v22 }
 0x58e   :  { %8047 = vmatprep.subr.bf16.mxu1 %v13007_v24  ;;  %8007 = vmatpush1.bf16.msra.mxu0 %v13008_v31 }
 0x58f   :  { %8382 = vmatprep.subr.bf16.mxu0 %v13016_v12 }
 0x591   :  { %8048 = vmatpush1.bf16.msra.mxu1 %v13005_v26 }
 0x592   :  { %8049 = vmatprep.subr.bf16.mxu1 %v13013_v29 }
 0x595   :  { %8050 = vmatpush1.bf16.msra.mxu1 %v13011_v27 }
 0x596   :  { %8425 = vmatprep.subr.bf16.mxu1 %v13019_v32 }
 0x612   :  { %v7171_v33 = vpop.f32.mrb[96].mxu0  ;;  %v7284_v34 = vpop.f32.mrb[96].mxu1 }
 0x613   :  { %v7173_v7 = vpop.f32.mrb[97].mxu0  ;;  %v7286_v9 = vpop.f32.mrb[97].mxu1 }
 0x614   :  { %v7175_v5 = vpop.f32.mrb[98].mxu0  ;;  %v7288_v35 = vpop.f32.mrb[98].mxu1 }
 0x615   :  { %v7177_v17 = vpop.f32.mrb[99].mxu0  ;;  %v7290_v36 = vpop.f32.mrb[99].mxu1 }
 0x61a   :  { %v7181_v40 = vpop.f32.mrb[100].mxu0  ;;  %v7294_v42 = vpop.f32.mrb[100].mxu1 }
 0x61b   :  { %v7427_v3 = vmax.f32 %v7171_v33, %v7181_v40  ;;  %v7429_v14 = vmax.f32 %v7284_v34, %v7294_v42  ;;  %v7183_v60 = vpop.f32.mrb[101].mxu0  ;;  %v7296_v46 = vpop.f32.mrb[101].mxu1 }
 0x61c   :  { %v7428_v48 = vmax.f32 %v7173_v7, %v7183_v60  ;;  %v7430_v1 = vmax.f32 %v7286_v9, %v7296_v46  ;;  %v7185_v52 = vpop.f32.mrb[102].mxu0  ;;  %v7298_v56 = vpop.f32.mrb[102].mxu1 }
 0x61d   :  { %v7459_v54 = vmax.f32 %v7427_v3, %v7429_v14  ;;  %v7431_v49 = vmax.f32 %v7175_v5, %v7185_v52  ;;  %v7433_v45 = vmax.f32 %v7288_v35, %v7298_v56  ;;  %v7187_v38 = vpop.f32.mrb[103].mxu0  ;;  %v7300_v41 = vpop.f32.mrb[103].mxu1 }
 0x61e   :  { %v7460_v39 = vmax.f32 %v7428_v48, %v7430_v1  ;;  %v7432_v43 = vmax.f32 %v7177_v17, %v7187_v38  ;;  %v7434_v55 = vmax.f32 %v7290_v36, %v7300_v41 }
 0x61f   :  { %v7487_v61 = vadd.f32 %v15862_v44, %v7459_v54  ;;  %v7461_v62 = vmax.f32 %v7431_v49, %v7433_v45 }
 0x620   :  { %v7488_v0 = vadd.f32 %v15865_v50, %v7460_v39  ;;  %v7462_v58 = vmax.f32 %v7432_v43, %v7434_v55  ;;  %v13014_v55 = vld [vmem:[%s16595_s5] ss:$16 sps:$4 sm:$0xff]  }
 0x621   :  { %v7489_v57 = vadd.f32 %v15862_v44, %v7461_v62  ;;  %v7503_v4 = vmax.f32 %v7487_v61, 0.0  ;;  %v13017_v61 = vld [vmem:[%s16595_s5 + $0x8] ss:$16 sps:$4 sm:$0xff]   ;;  %v13022_v62 = vld [vmem:[%s16595_s5 + $0x24] ss:$16 sps:$4 sm:$0xff]  }
 0x622   :  { %v7490_v59 = vadd.f32 %v15865_v50, %v7462_v58  ;;  %v7191_v63 = vpop.f32.mrb[104].mxu0  ;;  %v7304_v6 = vpop.f32.mrb[104].mxu1  ;;  %v7504_v13 = vmax.f32 %v7488_v0, 0.0  ;;  %v13025_v0 = vld [vmem:[%s16595_s5 + $0x2c] ss:$16 sps:$4 sm:$0xff]  }
 0x623   :  { %v7505_v8 = vmax.f32 %v7489_v57, 0.0  ;;  %v7193_v10 = vpop.f32.mrb[105].mxu0  ;;  %v7306_v11 = vpop.f32.mrb[105].mxu1 }
 0x624   :  { %v7506_v15 = vmax.f32 %v7490_v59, 0.0  ;;  %v7195_v30 = vpop.f32.mrb[106].mxu0  ;;  %v7308_v16 = vpop.f32.mrb[106].mxu1  ;;  %v13020_v59 = vld [vmem:[%s16595_s5 + $0x20] ss:$16 sps:$4 sm:$0xff]  }
 0x625   :  { %v15871_v18 = vpack.c.bf16 %v7505_v8, %v7503_v4  ;;  %v7197_v2 = vpop.f32.mrb[107].mxu0  ;;  %v7310_v19 = vpop.f32.mrb[107].mxu1 }
 0x626   :  { %v7520_v20 = vpack.c.bf16 %v7506_v15, %v7504_v13  ;;  %v13031_v13 = vld [vmem:[%s16595_s5 + $0x4c] ss:$16 sps:$4 sm:$0xff]  }
 0x62a   :  { %v7201_v21 = vpop.f32.mrb[108].mxu0  ;;  %v7314_v22 = vpop.f32.mrb[108].mxu1 }
 0x62b   :  { %v7435_v23 = vmax.f32 %v7191_v63, %v7201_v21  ;;  %v7437_v24 = vmax.f32 %v7304_v6, %v7314_v22  ;;  %v7203_v25 = vpop.f32.mrb[109].mxu0  ;;  %v7316_v26 = vpop.f32.mrb[109].mxu1  ;;  %v13023_v63 = vld [vmem:[%s16595_s5 + $0x28] ss:$16 sps:$4 sm:$0xff]  }
 0x62c   :  { %v7436_v28 = vmax.f32 %v7193_v10, %v7203_v25  ;;  %v7438_v29 = vmax.f32 %v7306_v11, %v7316_v26  ;;  %v7205_v31 = vpop.f32.mrb[110].mxu0  ;;  %v7318_v27 = vpop.f32.mrb[110].mxu1  ;;  %v13028_v11 = vld [vmem:[%s16595_s5 + $0x44] ss:$16 sps:$4 sm:$0xff]  }
 0x62d   :  { %v7463_v12 = vmax.f32 %v7435_v23, %v7437_v24  ;;  %v7439_v32 = vmax.f32 %v7195_v30, %v7205_v31  ;;  %v7441_v33 = vmax.f32 %v7308_v16, %v7318_v27  ;;  %v7207_v34 = vpop.f32.mrb[111].mxu0  ;;  %v7320_v7 = vpop.f32.mrb[111].mxu1 }
 0x62e   :  { %v7464_v9 = vmax.f32 %v7436_v28, %v7438_v29  ;;  %v7440_v5 = vmax.f32 %v7197_v2, %v7207_v34  ;;  %v7442_v35 = vmax.f32 %v7310_v19, %v7320_v7  ;;  %v13026_v28 = vld [vmem:[%s16595_s5 + $0x40] ss:$16 sps:$4 sm:$0xff]   ;;  %v13029_v29 = vld [vmem:[%s16595_s5 + $0x48] ss:$16 sps:$4 sm:$0xff]  }
 0x62f   :  { %v7491_v17 = vadd.f32 %v15862_v44, %v7463_v12  ;;  %v7465_v36 = vmax.f32 %v7439_v32, %v7441_v33  ;;  %v13034_v12 = vld [vmem:[%s16595_s5 + $0x64] ss:$16 sps:$4 sm:$0xff]   ;;  %v13037_v32 = vld [vmem:[%s16595_s5 + $0x6c] ss:$16 sps:$4 sm:$0xff]  }
 0x630   :  { %v7492_v37 = vadd.f32 %v15865_v50, %v7464_v9  ;;  %v7466_v40 = vmax.f32 %v7440_v5, %v7442_v35  ;;  %v13032_v9 = vld [vmem:[%s16595_s5 + $0x60] ss:$16 sps:$4 sm:$0xff]  }
 0x631   :  { %v7493_v42 = vadd.f32 %v15862_v44, %v7465_v36  ;;  %v7507_v46 = vmax.f32 %v7491_v17, 0.0  ;;  %v13035_v36 = vld [vmem:[%s16595_s5 + $0x68] ss:$16 sps:$4 sm:$0xff]  }
 0x632   :  { %v7494_v3 = vadd.f32 %v15865_v50, %v7466_v40  ;;  %v7211_v14 = vpop.f32.mrb[112].mxu0  ;;  %v7324_v60 = vpop.f32.mrb[112].mxu1  ;;  %v7508_v56 = vmax.f32 %v7492_v37, 0.0  ;;  %v13040_v37 = vld [vmem:[%s16595_s5 + $0x84] ss:$16 sps:$4 sm:$0xff]  }
 0x633   :  { %v7509_v48 = vmax.f32 %v7493_v42, 0.0  ;;  %v7213_v1 = vpop.f32.mrb[113].mxu0  ;;  %v7326_v52 = vpop.f32.mrb[113].mxu1 }
 0x634   :  { %v7510_v54 = vmax.f32 %v7494_v3, 0.0  ;;  %v7215_v49 = vpop.f32.mrb[114].mxu0  ;;  %v7328_v45 = vpop.f32.mrb[114].mxu1 }
 0x635   :  { %v7521_v38 = vpack.c.bf16 %v7509_v48, %v7507_v46  ;;  %v7217_v41 = vpop.f32.mrb[115].mxu0  ;;  %v7330_v39 = vpop.f32.mrb[115].mxu1 }
 0x636   :  { %v7522_v43 = vpack.c.bf16 %v7510_v54, %v7508_v56 }
 0x638   :  { %8008 = vmatprep.mubr.bf16.mxu0 %v7522_v43  ;;  %8051 = vmatprep.mubr.bf16.mxu1 %v7522_v43  ;;  %v13049_v43 = vld [vmem:[%s16595_s5 + $0xac] ss:$16 sps:$4 sm:$0xff]  }
 0x639   :  { %8009 = vmatmul.mubr.bf16.vlgmr.msra.gmra.mrb[128].mxu0 %v7521_v38  ;;  %8052 = vmatmul.mubr.bf16.vlgmr.msra.gmra.mrb[128].mxu1 %v7521_v38  ;;  %v13041_v38 = vld [vmem:[%s16595_s5 + $0x88] ss:$16 sps:$4 sm:$0xff]  }
 0x63a   :  { %8383 = vmatpush1.bf16.msra.mxu0 %v13014_v55  ;;  %8426 = vmatpush1.bf16.msra.mxu1 %v13017_v61  ;;  %v7221_v58 = vpop.f32.mrb[116].mxu0  ;;  %v7334_v57 = vpop.f32.mrb[116].mxu1 }
 0x63b   :  { %v7443_v6 = vmax.f32 %v7211_v14, %v7221_v58  ;;  %v7445_v4 = vmax.f32 %v7324_v60, %v7334_v57  ;;  %8414 = vmatprep.mubr.bf16.mxu0 %v7520_v20  ;;  %8457 = vmatprep.mubr.bf16.mxu1 %v7520_v20  ;;  %v7223_v8 = vpop.f32.mrb[117].mxu0  ;;  %v7336_v10 = vpop.f32.mrb[117].mxu1  ;;  %v13043_v60 = vld [vmem:[%s16595_s5 + $0x8c] ss:$16 sps:$4 sm:$0xff]  }
 0x63c   :  { %v7444_v15 = vmax.f32 %v7213_v1, %v7223_v8  ;;  %v7446_v30 = vmax.f32 %v7326_v52, %v7336_v10  ;;  %v7225_v16 = vpop.f32.mrb[118].mxu0  ;;  %v7338_v2 = vpop.f32.mrb[118].mxu1  ;;  %8384 = vmatprep.subr.bf16.mxu0 %v13022_v62  ;;  %8427 = vmatprep.subr.bf16.mxu1 %v13025_v0  ;;  %v13044_v62 = vld [vmem:[%s16595_s5 + $0xa0] ss:$16 sps:$4 sm:$0xff]   ;;  %v13047_v0 = vld [vmem:[%s16595_s5 + $0xa8] ss:$16 sps:$4 sm:$0xff]  }
 0x63d   :  { %v7467_v19 = vmax.f32 %v7443_v6, %v7445_v4  ;;  %v7447_v21 = vmax.f32 %v7215_v49, %v7225_v16  ;;  %v7449_v22 = vmax.f32 %v7328_v45, %v7338_v2  ;;  %v7227_v20 = vpop.f32.mrb[119].mxu0  ;;  %v7340_v23 = vpop.f32.mrb[119].mxu1  ;;  %v13038_v45 = vld [vmem:[%s16595_s5 + $0x80] ss:$16 sps:$4 sm:$0xff]   ;;  %v13052_v6 = vld [vmem:[%s16595_s5 + $0xc4] ss:$16 sps:$4 sm:$0xff]  }
 0x63e   :  { %v7468_v24 = vmax.f32 %v7444_v15, %v7446_v30  ;;  %v7448_v25 = vmax.f32 %v7217_v41, %v7227_v20  ;;  %v7450_v26 = vmax.f32 %v7330_v39, %v7340_v23  ;;  %8385 = vmatpush1.bf16.msra.mxu0 %v13020_v59  ;;  %8428 = vmatpush1.bf16.msra.mxu1 %v13023_v63  ;;  %v13046_v39 = vld [vmem:[%s16595_s5 + $0xa4] ss:$16 sps:$4 sm:$0xff]   ;;  %v13055_v4 = vld [vmem:[%s16595_s5 + $0xcc] ss:$16 sps:$4 sm:$0xff]   ;;  %v13050_v23 = vld [vmem:[%s16595_s5 + $0xc0] ss:$16 sps:$4 sm:$0xff]  }
 0x63f   :  { %v7495_v31 = vadd.f32 %v15862_v44, %v7467_v19  ;;  %v7469_v27 = vmax.f32 %v7447_v21, %v7449_v22  ;;  %8386 = vmatprep.subr.bf16.mxu0 %v13028_v11  ;;  %8429 = vmatprep.subr.bf16.mxu1 %v13031_v13 }
 0x640   :  { %v7496_v33 = vadd.f32 %v15865_v50, %v7468_v24  ;;  %v7470_v34 = vmax.f32 %v7448_v25, %v7450_v26  ;;  %v13053_v24 = vld [vmem:[%s16595_s5 + $0xc8] ss:$16 sps:$4 sm:$0xff]  }
 0x641   :  { %v7497_v7 = vadd.f32 %v15862_v44, %v7469_v27  ;;  %v7511_v40 = vmax.f32 %v7495_v31, 0.0 }
 0x642   :  { %v7498_v5 = vadd.f32 %v15865_v50, %v7470_v34  ;;  %8387 = vmatpush1.bf16.msra.mxu0 %v13026_v28  ;;  %8430 = vmatpush1.bf16.msra.mxu1 %v13029_v29  ;;  %v7231_v35 = vpop.f32.mrb[120].mxu0  ;;  %v7344_v17 = vpop.f32.mrb[120].mxu1  ;;  %v7512_v46 = vmax.f32 %v7496_v33, 0.0  ;;  %v13058_v28 = vld [vmem:[%s16595_s5 + $0xe4] ss:$16 sps:$4 sm:$0xff]  }
 0x643   :  { %v7513_v42 = vmax.f32 %v7497_v7, 0.0  ;;  %v7233_v3 = vpop.f32.mrb[121].mxu0  ;;  %v7346_v14 = vpop.f32.mrb[121].mxu1  ;;  %8388 = vmatprep.subr.bf16.mxu0 %v13034_v12  ;;  %8431 = vmatprep.subr.bf16.mxu1 %v13037_v32  ;;  %v13061_v29 = vld [vmem:[%s16595_s5 + $0xec] ss:$16 sps:$4 sm:$0xff]  }
 0x644   :  { %v7514_v48 = vmax.f32 %v7498_v5, 0.0  ;;  %v7235_v1 = vpop.f32.mrb[122].mxu0  ;;  %v7348_v52 = vpop.f32.mrb[122].mxu1  ;;  %v13056_v33 = vld [vmem:[%s16595_s5 + $0xe0] ss:$16 sps:$4 sm:$0xff]  }
 0x645   :  { %v15929_v56 = vpack.c.bf16 %v7513_v42, %v7511_v40  ;;  %v7237_v54 = vpop.f32.mrb[123].mxu0  ;;  %v7350_v49 = vpop.f32.mrb[123].mxu1  ;;  %v13059_v34 = vld [vmem:[%s16595_s5 + $0xe8] ss:$16 sps:$4 sm:$0xff]   ;;  %v13070_v42 = vld [vmem:[%s16595_s5 + $0x124] ss:$16 sps:$4 sm:$0xff]  }
 0x646   :  { %8389 = vmatpush1.bf16.msra.mxu0 %v13032_v9  ;;  %8432 = vmatpush1.bf16.msra.mxu1 %v13035_v36  ;;  %v15937_v41 = vpack.c.bf16 %v7514_v48, %v7512_v46  ;;  %v13062_v36 = vld [vmem:[%s16595_s5 + $0x100] ss:$16 sps:$4 sm:$0xff]   ;;  %v13076_v46 = vld [vmem:[%s16595_s5 + $0x144] ss:$16 sps:$4 sm:$0xff]   ;;  %v13079_v48 = vld [vmem:[%s16595_s5 + $0x14c] ss:$16 sps:$4 sm:$0xff]  }
 0x647   :  { %8390 = vmatprep.subr.bf16.mxu0 %v13040_v37  ;;  %8433 = vmatprep.subr.bf16.mxu1 %v13043_v60  ;;  %v13065_v37 = vld [vmem:[%s16595_s5 + $0x108] ss:$16 sps:$4 sm:$0xff]  }
 0x648   :  { %v13071_v60 = vld [vmem:[%s16595_s5 + $0x128] ss:$16 sps:$4 sm:$0xff]  }
 0x64a   :  { %8391 = vmatpush1.bf16.msra.mxu0 %v13038_v45  ;;  %8434 = vmatpush1.bf16.msra.mxu1 %v13041_v38  ;;  %v7241_v55 = vpop.f32.mrb[124].mxu0  ;;  %v7354_v61 = vpop.f32.mrb[124].mxu1  ;;  %v13080_v45 = vld [vmem:[%s16595_s5 + $0x160] ss:$16 sps:$4 sm:$0xff]   ;;  %v13083_v38 = vld [vmem:[%s16595_s5 + $0x168] ss:$16 sps:$4 sm:$0xff]  }
 0x64b   :  { %v7451_v58 = vmax.f32 %v7231_v35, %v7241_v55  ;;  %v7453_v57 = vmax.f32 %v7344_v17, %v7354_v61  ;;  %v7243_v59 = vpop.f32.mrb[125].mxu0  ;;  %v7356_v63 = vpop.f32.mrb[125].mxu1  ;;  %8392 = vmatprep.subr.bf16.mxu0 %v13046_v39  ;;  %8435 = vmatprep.subr.bf16.mxu1 %v13049_v43  ;;  %v13088_v39 = vld [vmem:[%s16595_s5 + $0x184] ss:$16 sps:$4 sm:$0xff]   ;;  %v13091_v43 = vld [vmem:[%s16595_s5 + $0x18c] ss:$16 sps:$4 sm:$0xff]  }
 0x64c   :  { %v7452_v8 = vmax.f32 %v7233_v3, %v7243_v59  ;;  %v7454_v10 = vmax.f32 %v7346_v14, %v7356_v63  ;;  %v7245_v11 = vpop.f32.mrb[126].mxu0  ;;  %v7358_v13 = vpop.f32.mrb[126].mxu1  ;;  %v13073_v3 = vld [vmem:[%s16595_s5 + $0x12c] ss:$16 sps:$4 sm:$0xff]   ;;  %v13068_v14 = vld [vmem:[%s16595_s5 + $0x120] ss:$16 sps:$4 sm:$0xff]  }
 0x64d   :  { %v7471_v15 = vmax.f32 %v7451_v58, %v7453_v57  ;;  %v7455_v30 = vmax.f32 %v7235_v1, %v7245_v11  ;;  %v7457_v16 = vmax.f32 %v7348_v52, %v7358_v13  ;;  %v7247_v2 = vpop.f32.mrb[127].mxu0  ;;  %v7360_v19 = vpop.f32.mrb[127].mxu1  ;;  %v13074_v1 = vld [vmem:[%s16595_s5 + $0x140] ss:$16 sps:$4 sm:$0xff]   ;;  %v13077_v52 = vld [vmem:[%s16595_s5 + $0x148] ss:$16 sps:$4 sm:$0xff]  }
 0x64e   :  { %v7472_v21 = vmax.f32 %v7452_v8, %v7454_v10  ;;  %v7456_v22 = vmax.f32 %v7237_v54, %v7247_v2  ;;  %v7458_v20 = vmax.f32 %v7350_v49, %v7360_v19  ;;  %8393 = vmatpush1.bf16.msra.mxu0 %v13044_v62  ;;  %8436 = vmatpush1.bf16.msra.mxu1 %v13047_v0  ;;  %v13082_v54 = vld [vmem:[%s16595_s5 + $0x164] ss:$16 sps:$4 sm:$0xff]   ;;  %v13085_v49 = vld [vmem:[%s16595_s5 + $0x16c] ss:$16 sps:$4 sm:$0xff]   ;;  %v13086_v55 = vld [vmem:[%s16595_s5 + $0x180] ss:$16 sps:$4 sm:$0xff]  }
 0x64f   :  { %v7499_v25 = vadd.f32 %v15862_v44, %v7471_v15  ;;  %v7473_v26 = vmax.f32 %v7455_v30, %v7457_v16  ;;  %8394 = vmatprep.subr.bf16.mxu0 %v13052_v6  ;;  %8437 = vmatprep.subr.bf16.mxu1 %v13055_v4  ;;  %v13089_v61 = vld [vmem:[%s16595_s5 + $0x188] ss:$16 sps:$4 sm:$0xff]   ;;  %v13094_v62 = vld [vmem:[%s16595_s5 + $0x1a4] ss:$16 sps:$4 sm:$0xff]   ;;  %v13097_v0 = vld [vmem:[%s16595_s5 + $0x1ac] ss:$16 sps:$4 sm:$0xff]  }
 0x650   :  { %v7500_v31 = vadd.f32 %v15865_v50, %v7472_v21  ;;  %v7474_v27 = vmax.f32 %v7456_v22, %v7458_v20  ;;  %v13092_v58 = vld [vmem:[%s16595_s5 + $0x1a0] ss:$16 sps:$4 sm:$0xff]   ;;  %v13095_v57 = vld [vmem:[%s16595_s5 + $0x1a8] ss:$16 sps:$4 sm:$0xff]   ;;  %v13100_v59 = vld [vmem:[%s16595_s5 + $0x1c4] ss:$16 sps:$4 sm:$0xff]  }
 0x651   :  { %v7501_v12 = vadd.f32 %v15862_v44, %v7473_v26  ;;  %v7515_v7 = vmax.f32 %v7499_v25, 0.0  ;;  %v13064_v44 = vld [vmem:[%s16595_s5 + $0x104] ss:$16 sps:$4 sm:$0xff]   ;;  %v13103_v63 = vld [vmem:[%s16595_s5 + $0x1cc] ss:$16 sps:$4 sm:$0xff]  }
 0x652   :  { %v7502_v32 = vadd.f32 %v15865_v50, %v7474_v27  ;;  %8395 = vmatpush1.bf16.msra.mxu0 %v13050_v23  ;;  %8438 = vmatpush1.bf16.msra.mxu1 %v13053_v24  ;;  %v13067_v50 = vld [vmem:[%s16595_s5 + $0x10c] ss:$16 sps:$4 sm:$0xff]   ;;  %v7516_v5 = vmax.f32 %v7500_v31, 0.0  ;;  %v13098_v6 = vld [vmem:[%s16595_s5 + $0x1c0] ss:$16 sps:$4 sm:$0xff]  }
 0x653   :  { %v7517_v9 = vmax.f32 %v7501_v12, 0.0  ;;  %8396 = vmatprep.subr.bf16.mxu0 %v13058_v28  ;;  %8439 = vmatprep.subr.bf16.mxu1 %v13061_v29  ;;  %v13101_v4 = vld [vmem:[%s16595_s5 + $0x1c8] ss:$16 sps:$4 sm:$0xff]   ;;  %v13106_v8 = vld [vmem:[%s16595_s5 + $0x1e4] ss:$16 sps:$4 sm:$0xff]  }
 0x654   :  { %v7518_v35 = vmax.f32 %v7502_v32, 0.0  ;;  %v13109_v10 = vld [vmem:[%s16595_s5 + $0x1ec] ss:$16 sps:$4 sm:$0xff]   ;;  %v13104_v11 = vld [vmem:[%s16595_s5 + $0x1e0] ss:$16 sps:$4 sm:$0xff]  }
 0x655   :  { %v15985_v17 = vpack.c.bf16 %v7517_v9, %v7515_v7  ;;  %v13107_v13 = vld [vmem:[%s16595_s5 + $0x1e8] ss:$16 sps:$4 sm:$0xff]   ;;  %v13112_v15 = vld [vmem:[%s16595_s5 + $0x404] ss:$16 sps:$4 sm:$0xff]   ;;  %v13115_v30 = vld [vmem:[%s16595_s5 + $0x40c] ss:$16 sps:$4 sm:$0xff]  }
 0x656   :  { %8397 = vmatpush1.bf16.msra.mxu0 %v13056_v33  ;;  %8440 = vmatpush1.bf16.msra.mxu1 %v13059_v34  ;;  %v15993_v40 = vpack.c.bf16 %v7518_v35, %v7516_v5  ;;  %v13110_v16 = vld [vmem:[%s16595_s5 + $0x400] ss:$16 sps:$4 sm:$0xff]   ;;  %v13113_v2 = vld [vmem:[%s16595_s5 + $0x408] ss:$16 sps:$4 sm:$0xff]   ;;  %v13118_v19 = vld [vmem:[%s16595_s5 + $0x424] ss:$16 sps:$4 sm:$0xff]  }
 0x657   :  { %8398 = vmatprep.subr.bf16.mxu0 %v13064_v44  ;;  %8441 = vmatprep.subr.bf16.mxu1 %v13067_v50  ;;  %v13121_v21 = vld [vmem:[%s16595_s5 + $0x42c] ss:$16 sps:$4 sm:$0xff]   ;;  %v13116_v22 = vld [vmem:[%s16595_s5 + $0x420] ss:$16 sps:$4 sm:$0xff]   ;;  %v13119_v20 = vld [vmem:[%s16595_s5 + $0x428] ss:$16 sps:$4 sm:$0xff]  }
 0x658   :  { %v13124_v23 = vld [vmem:[%s16595_s5 + $0x444] ss:$16 sps:$4 sm:$0xff]   ;;  %v13122_v24 = vld [vmem:[%s16595_s5 + $0x440] ss:$16 sps:$4 sm:$0xff]   ;;  %v13125_v25 = vld [vmem:[%s16595_s5 + $0x448] ss:$16 sps:$4 sm:$0xff]  }
 0x659   :  { %v13133_v26 = vld [vmem:[%s16595_s5 + $0x46c] ss:$16 sps:$4 sm:$0xff]   ;;  %v13128_v28 = vld [vmem:[%s16595_s5 + $0x460] ss:$16 sps:$4 sm:$0xff]   ;;  %v13131_v29 = vld [vmem:[%s16595_s5 + $0x468] ss:$16 sps:$4 sm:$0xff]  }
 0x65a   :  { %8399 = vmatpush1.bf16.msra.mxu0 %v13062_v36  ;;  %8442 = vmatpush1.bf16.msra.mxu1 %v13065_v37  ;;  %v13136_v31 = vld [vmem:[%s16595_s5 + $0x484] ss:$16 sps:$4 sm:$0xff]   ;;  %v13139_v27 = vld [vmem:[%s16595_s5 + $0x48c] ss:$16 sps:$4 sm:$0xff]   ;;  %v13134_v12 = vld [vmem:[%s16595_s5 + $0x480] ss:$16 sps:$4 sm:$0xff]  }
 0x65b   :  { %8400 = vmatprep.subr.bf16.mxu0 %v13070_v42  ;;  %8443 = vmatprep.subr.bf16.mxu1 %v13073_v3  ;;  %v13137_v32 = vld [vmem:[%s16595_s5 + $0x488] ss:$16 sps:$4 sm:$0xff]   ;;  %v13142_v33 = vld [vmem:[%s16595_s5 + $0x4a4] ss:$16 sps:$4 sm:$0xff]   ;;  %v13145_v34 = vld [vmem:[%s16595_s5 + $0x4ac] ss:$16 sps:$4 sm:$0xff]  }
 0x65c   :  { %v13140_v7 = vld [vmem:[%s16595_s5 + $0x4a0] ss:$16 sps:$4 sm:$0xff]   ;;  %v13143_v9 = vld [vmem:[%s16595_s5 + $0x4a8] ss:$16 sps:$4 sm:$0xff]   ;;  %v13148_v44 = vld [vmem:[%s16595_s5 + $0x4c4] ss:$16 sps:$4 sm:$0xff]  }
 0x65d   :  { %v13151_v50 = vld [vmem:[%s16595_s5 + $0x4cc] ss:$16 sps:$4 sm:$0xff]   ;;  %v13146_v5 = vld [vmem:[%s16595_s5 + $0x4c0] ss:$16 sps:$4 sm:$0xff]   ;;  %v13149_v35 = vld [vmem:[%s16595_s5 + $0x4c8] ss:$16 sps:$4 sm:$0xff]  }
 0x65e   :  { %8401 = vmatpush1.bf16.msra.mxu0 %v13068_v14  ;;  %8444 = vmatpush1.bf16.msra.mxu1 %v13071_v60  ;;  %v13154_v36 = vld [vmem:[%s16595_s5 + $0x4e4] ss:$16 sps:$4 sm:$0xff]   ;;  %v13152_v37 = vld [vmem:[%s16595_s5 + $0x4e0] ss:$16 sps:$4 sm:$0xff]   ;;  %v13157_v42 = vld [vmem:[%s16595_s5 + $0x4ec] ss:$16 sps:$4 sm:$0xff]  }
 0x65f   :  { %8402 = vmatprep.subr.bf16.mxu0 %v13076_v46  ;;  %8445 = vmatprep.subr.bf16.mxu1 %v13079_v48  ;;  %v13155_v3 = vld [vmem:[%s16595_s5 + $0x4e8] ss:$16 sps:$4 sm:$0xff]   ;;  %v13160_v14 = vld [vmem:[%s16595_s5 + $0x504] ss:$16 sps:$4 sm:$0xff]   ;;  %v13163_v60 = vld [vmem:[%s16595_s5 + $0x50c] ss:$16 sps:$4 sm:$0xff]  }
 0x660   :  { %v13158_v46 = vld [vmem:[%s16595_s5 + $0x500] ss:$16 sps:$4 sm:$0xff]   ;;  %v13161_v48 = vld [vmem:[%s16595_s5 + $0x508] ss:$16 sps:$4 sm:$0xff]  }
 0x662   :  { %8403 = vmatpush1.bf16.msra.mxu0 %v13074_v1  ;;  %8446 = vmatpush1.bf16.msra.mxu1 %v13077_v52  ;;  %v13166_v1 = vld [vmem:[%s16595_s5 + $0x524] ss:$16 sps:$4 sm:$0xff]   ;;  %v13169_v52 = vld [vmem:[%s16595_s5 + $0x52c] ss:$16 sps:$4 sm:$0xff]  }
 0x663   :  { %8404 = vmatprep.subr.bf16.mxu0 %v13082_v54  ;;  %8447 = vmatprep.subr.bf16.mxu1 %v13085_v49  ;;  %v13164_v54 = vld [vmem:[%s16595_s5 + $0x520] ss:$16 sps:$4 sm:$0xff]   ;;  %v13167_v49 = vld [vmem:[%s16595_s5 + $0x528] ss:$16 sps:$4 sm:$0xff]  }
 0x666   :  { %8405 = vmatpush1.bf16.msra.mxu0 %v13080_v45  ;;  %8448 = vmatpush1.bf16.msra.mxu1 %v13083_v38  ;;  %v13172_v45 = vld [vmem:[%s16595_s5 + $0x544] ss:$16 sps:$4 sm:$0xff]   ;;  %v13175_v38 = vld [vmem:[%s16595_s5 + $0x54c] ss:$16 sps:$4 sm:$0xff]  }
 0x667   :  { %8406 = vmatprep.subr.bf16.mxu0 %v13088_v39  ;;  %8449 = vmatprep.subr.bf16.mxu1 %v13091_v43  ;;  %v13170_v39 = vld [vmem:[%s16595_s5 + $0x540] ss:$16 sps:$4 sm:$0xff]   ;;  %v13173_v43 = vld [vmem:[%s16595_s5 + $0x548] ss:$16 sps:$4 sm:$0xff]  }
 0x66a   :  { %8407 = vmatpush1.bf16.msra.mxu0 %v13086_v55  ;;  %8450 = vmatpush1.bf16.msra.mxu1 %v13089_v61  ;;  %v13178_v55 = vld [vmem:[%s16595_s5 + $0x564] ss:$16 sps:$4 sm:$0xff]   ;;  %v13181_v61 = vld [vmem:[%s16595_s5 + $0x56c] ss:$16 sps:$4 sm:$0xff]  }
 0x66b   :  { %8408 = vmatprep.subr.bf16.mxu0 %v13094_v62  ;;  %8451 = vmatprep.subr.bf16.mxu1 %v13097_v0  ;;  %v13176_v62 = vld [vmem:[%s16595_s5 + $0x560] ss:$16 sps:$4 sm:$0xff]   ;;  %v13179_v0 = vld [vmem:[%s16595_s5 + $0x568] ss:$16 sps:$4 sm:$0xff]  }
 0x66e   :  { %8409 = vmatpush1.bf16.msra.mxu0 %v13092_v58  ;;  %8452 = vmatpush1.bf16.msra.mxu1 %v13095_v57  ;;  %v13184_v58 = vld [vmem:[%s16595_s5 + $0x584] ss:$16 sps:$4 sm:$0xff]   ;;  %v13187_v57 = vld [vmem:[%s16595_s5 + $0x58c] ss:$16 sps:$4 sm:$0xff]  }
 0x66f   :  { %8410 = vmatprep.subr.bf16.mxu0 %v13100_v59  ;;  %8453 = vmatprep.subr.bf16.mxu1 %v13103_v63  ;;  %v13182_v59 = vld [vmem:[%s16595_s5 + $0x580] ss:$16 sps:$4 sm:$0xff]   ;;  %v13185_v63 = vld [vmem:[%s16595_s5 + $0x588] ss:$16 sps:$4 sm:$0xff]  }
 0x672   :  { %8411 = vmatpush1.bf16.msra.mxu0 %v13098_v6  ;;  %8454 = vmatpush1.bf16.msra.mxu1 %v13101_v4  ;;  %v13190_v6 = vld [vmem:[%s16595_s5 + $0x5a4] ss:$16 sps:$4 sm:$0xff]   ;;  %v13193_v4 = vld [vmem:[%s16595_s5 + $0x5ac] ss:$16 sps:$4 sm:$0xff]  }
 0x673   :  { %8412 = vmatprep.subr.bf16.mxu0 %v13106_v8  ;;  %8455 = vmatprep.subr.bf16.mxu1 %v13109_v10  ;;  %v13188_v8 = vld [vmem:[%s16595_s5 + $0x5a0] ss:$16 sps:$4 sm:$0xff]   ;;  %v13191_v10 = vld [vmem:[%s16595_s5 + $0x5a8] ss:$16 sps:$4 sm:$0xff]  }
 0x676   :  { %8413 = vmatpush1.bf16.msra.mxu0 %v13104_v11  ;;  %8456 = vmatpush1.bf16.msra.mxu1 %v13107_v13  ;;  %v13196_v11 = vld [vmem:[%s16595_s5 + $0x5c4] ss:$16 sps:$4 sm:$0xff]   ;;  %v13199_v13 = vld [vmem:[%s16595_s5 + $0x5cc] ss:$16 sps:$4 sm:$0xff]  }
 0x677   :  { %8853 = vmatprep.subr.bf16.mxu0 %v13112_v15  ;;  %8896 = vmatprep.subr.bf16.mxu1 %v13115_v30  ;;  %v13194_v15 = vld [vmem:[%s16595_s5 + $0x5c0] ss:$16 sps:$4 sm:$0xff]   ;;  %v13197_v30 = vld [vmem:[%s16595_s5 + $0x5c8] ss:$16 sps:$4 sm:$0xff]  }
 0x679   :  { %8415 = vmatmul.mubr.bf16.vlgmr.msra.gmra.mrb[128].mxu0 %v15871_v18  ;;  %8458 = vmatmul.mubr.bf16.vlgmr.msra.gmra.mrb[128].mxu1 %v15871_v18  ;;  %v13127_v18 = vld [vmem:[%s16595_s5 + $0x44c] ss:$16 sps:$4 sm:$0xff]  }
 0x67a   :  { %8854 = vmatpush1.bf16.msra.mxu0 %v13110_v16  ;;  %8885 = vmatprep.mubr.bf16.mxu0 %v15937_v41  ;;  %v13202_v16 = vld [vmem:[%s16595_s5 + $0x5e4] ss:$16 sps:$4 sm:$0xff]  }
 0x67b   :  { %8897 = vmatpush1.bf16.msra.mxu1 %v13113_v2  ;;  %8928 = vmatprep.mubr.bf16.mxu1 %v15937_v41  ;;  %v13130_v41 = vld [vmem:[%s16595_s5 + $0x464] ss:$16 sps:$4 sm:$0xff]   ;;  %v13205_v2 = vld [vmem:[%s16595_s5 + $0x5ec] ss:$16 sps:$4 sm:$0xff]  }
 0x67c   :  { %8855 = vmatprep.subr.bf16.mxu0 %v13118_v19  ;;  %8898 = vmatprep.subr.bf16.mxu1 %v13121_v21  ;;  %v13200_v19 = vld [vmem:[%s16595_s5 + $0x5e0] ss:$16 sps:$4 sm:$0xff]   ;;  %v13203_v21 = vld [vmem:[%s16595_s5 + $0x5e8] ss:$16 sps:$4 sm:$0xff]  }
 0x67e   :  { %8856 = vmatpush1.bf16.msra.mxu0 %v13116_v22  ;;  %v13208_v22 = vld [vmem:[%s16595_s5 + $0x604] ss:$16 sps:$4 sm:$0xff]  }
 0x67f   :  { %8899 = vmatpush1.bf16.msra.mxu1 %v13119_v20  ;;  %8857 = vmatprep.subr.bf16.mxu0 %v13124_v23  ;;  %v13211_v20 = vld [vmem:[%s16595_s5 + $0x60c] ss:$16 sps:$4 sm:$0xff]   ;;  %v13206_v23 = vld [vmem:[%s16595_s5 + $0x600] ss:$16 sps:$4 sm:$0xff]  }
 0x680   :  { %8900 = vmatprep.subr.bf16.mxu1 %v13127_v18  ;;  %v13209_v18 = vld [vmem:[%s16595_s5 + $0x608] ss:$16 sps:$4 sm:$0xff]  }
 0x682   :  { %8858 = vmatpush1.bf16.msra.mxu0 %v13122_v24  ;;  %v13214_v24 = vld [vmem:[%s16595_s5 + $0x624] ss:$16 sps:$4 sm:$0xff]  }
 0x683   :  { %8901 = vmatpush1.bf16.msra.mxu1 %v13125_v25  ;;  %8859 = vmatprep.subr.bf16.mxu0 %v13130_v41  ;;  %v13217_v25 = vld [vmem:[%s16595_s5 + $0x62c] ss:$16 sps:$4 sm:$0xff]   ;;  %v13212_v41 = vld [vmem:[%s16595_s5 + $0x620] ss:$16 sps:$4 sm:$0xff]  }
 0x684   :  { %8902 = vmatprep.subr.bf16.mxu1 %v13133_v26  ;;  %v13215_v26 = vld [vmem:[%s16595_s5 + $0x628] ss:$16 sps:$4 sm:$0xff]  }
 0x686   :  { %8860 = vmatpush1.bf16.msra.mxu0 %v13128_v28  ;;  %v13220_v28 = vld [vmem:[%s16595_s5 + $0x644] ss:$16 sps:$4 sm:$0xff]  }
 0x687   :  { %8903 = vmatpush1.bf16.msra.mxu1 %v13131_v29  ;;  %8861 = vmatprep.subr.bf16.mxu0 %v13136_v31  ;;  %v13218_v29 = vld [vmem:[%s16595_s5 + $0x640] ss:$16 sps:$4 sm:$0xff]   ;;  %v13221_v31 = vld [vmem:[%s16595_s5 + $0x648] ss:$16 sps:$4 sm:$0xff]  }
 0x688   :  { %8904 = vmatprep.subr.bf16.mxu1 %v13139_v27  ;;  %v13229_v27 = vld [vmem:[%s16595_s5 + $0x66c] ss:$16 sps:$4 sm:$0xff]  }
 0x68a   :  { %8862 = vmatpush1.bf16.msra.mxu0 %v13134_v12  ;;  %v13224_v12 = vld [vmem:[%s16595_s5 + $0x660] ss:$16 sps:$4 sm:$0xff]  }
 0x68b   :  { %8905 = vmatpush1.bf16.msra.mxu1 %v13137_v32  ;;  %8863 = vmatprep.subr.bf16.mxu0 %v13142_v33  ;;  %v13227_v32 = vld [vmem:[%s16595_s5 + $0x668] ss:$16 sps:$4 sm:$0xff]   ;;  %v13232_v33 = vld [vmem:[%s16595_s5 + $0x684] ss:$16 sps:$4 sm:$0xff]  }
 0x68c   :  { %8906 = vmatprep.subr.bf16.mxu1 %v13145_v34  ;;  %v13235_v34 = vld [vmem:[%s16595_s5 + $0x68c] ss:$16 sps:$4 sm:$0xff]  }
 0x68e   :  { %8864 = vmatpush1.bf16.msra.mxu0 %v13140_v7  ;;  %v13230_v7 = vld [vmem:[%s16595_s5 + $0x680] ss:$16 sps:$4 sm:$0xff]  }
 0x68f   :  { %8907 = vmatpush1.bf16.msra.mxu1 %v13143_v9  ;;  %8865 = vmatprep.subr.bf16.mxu0 %v13148_v44  ;;  %v13233_v9 = vld [vmem:[%s16595_s5 + $0x688] ss:$16 sps:$4 sm:$0xff]   ;;  %v13238_v44 = vld [vmem:[%s16595_s5 + $0x6a4] ss:$16 sps:$4 sm:$0xff]  }
 0x690   :  { %8908 = vmatprep.subr.bf16.mxu1 %v13151_v50  ;;  %v13241_v50 = vld [vmem:[%s16595_s5 + $0x6ac] ss:$16 sps:$4 sm:$0xff]  }
 0x692   :  { %8866 = vmatpush1.bf16.msra.mxu0 %v13146_v5  ;;  %v13236_v5 = vld [vmem:[%s16595_s5 + $0x6a0] ss:$16 sps:$4 sm:$0xff]  }
 0x693   :  { %8909 = vmatpush1.bf16.msra.mxu1 %v13149_v35  ;;  %8867 = vmatprep.subr.bf16.mxu0 %v13154_v36  ;;  %v13239_v35 = vld [vmem:[%s16595_s5 + $0x6a8] ss:$16 sps:$4 sm:$0xff]   ;;  %v13244_v36 = vld [vmem:[%s16595_s5 + $0x6c4] ss:$16 sps:$4 sm:$0xff]  }
 0x694   :  { %8910 = vmatprep.subr.bf16.mxu1 %v13157_v42  ;;  %v13242_v42 = vld [vmem:[%s16595_s5 + $0x6c0] ss:$16 sps:$4 sm:$0xff]  }
 0x696   :  { %8868 = vmatpush1.bf16.msra.mxu0 %v13152_v37  ;;  %v13247_v37 = vld [vmem:[%s16595_s5 + $0x6cc] ss:$16 sps:$4 sm:$0xff]  }
 0x697   :  { %8911 = vmatpush1.bf16.msra.mxu1 %v13155_v3  ;;  %8869 = vmatprep.subr.bf16.mxu0 %v13160_v14  ;;  %v13245_v3 = vld [vmem:[%s16595_s5 + $0x6c8] ss:$16 sps:$4 sm:$0xff]   ;;  %v13250_v14 = vld [vmem:[%s16595_s5 + $0x6e4] ss:$16 sps:$4 sm:$0xff]  }
 0x698   :  { %8912 = vmatprep.subr.bf16.mxu1 %v13163_v60  ;;  %v13253_v60 = vld [vmem:[%s16595_s5 + $0x6ec] ss:$16 sps:$4 sm:$0xff]  }
 0x69a   :  { %8870 = vmatpush1.bf16.msra.mxu0 %v13158_v46  ;;  %v13248_v46 = vld [vmem:[%s16595_s5 + $0x6e0] ss:$16 sps:$4 sm:$0xff]  }
 0x69b   :  { %8913 = vmatpush1.bf16.msra.mxu1 %v13161_v48  ;;  %8871 = vmatprep.subr.bf16.mxu0 %v13166_v1  ;;  %v13251_v48 = vld [vmem:[%s16595_s5 + $0x6e8] ss:$16 sps:$4 sm:$0xff]   ;;  %v13256_v1 = vld [vmem:[%s16595_s5 + $0x704] ss:$16 sps:$4 sm:$0xff]  }
 0x69c   :  { %8914 = vmatprep.subr.bf16.mxu1 %v13169_v52  ;;  %v13259_v52 = vld [vmem:[%s16595_s5 + $0x70c] ss:$16 sps:$4 sm:$0xff]  }
 0x69e   :  { %8872 = vmatpush1.bf16.msra.mxu0 %v13164_v54  ;;  %v13254_v54 = vld [vmem:[%s16595_s5 + $0x700] ss:$16 sps:$4 sm:$0xff]  }
 0x69f   :  { %8915 = vmatpush1.bf16.msra.mxu1 %v13167_v49  ;;  %8873 = vmatprep.subr.bf16.mxu0 %v13172_v45  ;;  %v13257_v49 = vld [vmem:[%s16595_s5 + $0x708] ss:$16 sps:$4 sm:$0xff]   ;;  %v13262_v45 = vld [vmem:[%s16595_s5 + $0x724] ss:$16 sps:$4 sm:$0xff]  }
 0x6a0   :  { %8916 = vmatprep.subr.bf16.mxu1 %v13175_v38  ;;  %v13265_v38 = vld [vmem:[%s16595_s5 + $0x72c] ss:$16 sps:$4 sm:$0xff]  }
 0x6a2   :  { %8874 = vmatpush1.bf16.msra.mxu0 %v13170_v39  ;;  %v13260_v39 = vld [vmem:[%s16595_s5 + $0x720] ss:$16 sps:$4 sm:$0xff]  }
 0x6a3   :  { %8917 = vmatpush1.bf16.msra.mxu1 %v13173_v43  ;;  %8875 = vmatprep.subr.bf16.mxu0 %v13178_v55  ;;  %v13263_v43 = vld [vmem:[%s16595_s5 + $0x728] ss:$16 sps:$4 sm:$0xff]   ;;  %v13268_v55 = vld [vmem:[%s16595_s5 + $0x744] ss:$16 sps:$4 sm:$0xff]  }
 0x6a4   :  { %8918 = vmatprep.subr.bf16.mxu1 %v13181_v61  ;;  %v13271_v61 = vld [vmem:[%s16595_s5 + $0x74c] ss:$16 sps:$4 sm:$0xff]  }
 0x6a6   :  { %8876 = vmatpush1.bf16.msra.mxu0 %v13176_v62  ;;  %v13266_v62 = vld [vmem:[%s16595_s5 + $0x740] ss:$16 sps:$4 sm:$0xff]  }
 0x6a7   :  { %8919 = vmatpush1.bf16.msra.mxu1 %v13179_v0  ;;  %8877 = vmatprep.subr.bf16.mxu0 %v13184_v58  ;;  %v13269_v0 = vld [vmem:[%s16595_s5 + $0x748] ss:$16 sps:$4 sm:$0xff]   ;;  %v13274_v58 = vld [vmem:[%s16595_s5 + $0x764] ss:$16 sps:$4 sm:$0xff]  }
 0x6a8   :  { %8920 = vmatprep.subr.bf16.mxu1 %v13187_v57  ;;  %v13277_v57 = vld [vmem:[%s16595_s5 + $0x76c] ss:$16 sps:$4 sm:$0xff]  }
 0x6aa   :  { %8878 = vmatpush1.bf16.msra.mxu0 %v13182_v59  ;;  %v13272_v59 = vld [vmem:[%s16595_s5 + $0x760] ss:$16 sps:$4 sm:$0xff]  }
 0x6ab   :  { %8921 = vmatpush1.bf16.msra.mxu1 %v13185_v63  ;;  %8879 = vmatprep.subr.bf16.mxu0 %v13190_v6  ;;  %v13275_v63 = vld [vmem:[%s16595_s5 + $0x768] ss:$16 sps:$4 sm:$0xff]   ;;  %v13280_v6 = vld [vmem:[%s16595_s5 + $0x784] ss:$16 sps:$4 sm:$0xff]  }
 0x6ac   :  { %8922 = vmatprep.subr.bf16.mxu1 %v13193_v4  ;;  %v13283_v4 = vld [vmem:[%s16595_s5 + $0x78c] ss:$16 sps:$4 sm:$0xff]  }
 0x6ae   :  { %8880 = vmatpush1.bf16.msra.mxu0 %v13188_v8  ;;  %v13278_v8 = vld [vmem:[%s16595_s5 + $0x780] ss:$16 sps:$4 sm:$0xff]  }
 0x6af   :  { %8923 = vmatpush1.bf16.msra.mxu1 %v13191_v10  ;;  %8881 = vmatprep.subr.bf16.mxu0 %v13196_v11  ;;  %v13281_v10 = vld [vmem:[%s16595_s5 + $0x788] ss:$16 sps:$4 sm:$0xff]   ;;  %v13286_v11 = vld [vmem:[%s16595_s5 + $0x7a4] ss:$16 sps:$4 sm:$0xff]  }
 0x6b0   :  { %8924 = vmatprep.subr.bf16.mxu1 %v13199_v13  ;;  %v13289_v13 = vld [vmem:[%s16595_s5 + $0x7ac] ss:$16 sps:$4 sm:$0xff]  }
 0x6b2   :  { %8882 = vmatpush1.bf16.msra.mxu0 %v13194_v15  ;;  %v13284_v15 = vld [vmem:[%s16595_s5 + $0x7a0] ss:$16 sps:$4 sm:$0xff]  }
 0x6b3   :  { %8925 = vmatpush1.bf16.msra.mxu1 %v13197_v30  ;;  %8883 = vmatprep.subr.bf16.mxu0 %v13202_v16  ;;  %v13287_v30 = vld [vmem:[%s16595_s5 + $0x7a8] ss:$16 sps:$4 sm:$0xff]   ;;  %v13292_v16 = vld [vmem:[%s16595_s5 + $0x7c4] ss:$16 sps:$4 sm:$0xff]  }
 0x6b4   :  { %8926 = vmatprep.subr.bf16.mxu1 %v13205_v2  ;;  %v13295_v2 = vld [vmem:[%s16595_s5 + $0x7cc] ss:$16 sps:$4 sm:$0xff]  }
 0x6b6   :  { %8884 = vmatpush1.bf16.msra.mxu0 %v13200_v19  ;;  %v13290_v19 = vld [vmem:[%s16595_s5 + $0x7c0] ss:$16 sps:$4 sm:$0xff]  }
 0x6b7   :  { %8927 = vmatpush1.bf16.msra.mxu1 %v13203_v21  ;;  %9332 = vmatprep.subr.bf16.mxu0 %v13208_v22  ;;  %v13293_v21 = vld [vmem:[%s16595_s5 + $0x7c8] ss:$16 sps:$4 sm:$0xff]   ;;  %v13298_v22 = vld [vmem:[%s16595_s5 + $0x7e4] ss:$16 sps:$4 sm:$0xff]  }
 0x6b8   :  { %9375 = vmatprep.subr.bf16.mxu1 %v13211_v20  ;;  %v13301_v20 = vld [vmem:[%s16595_s5 + $0x7ec] ss:$16 sps:$4 sm:$0xff]  }
 0x6b9   :  { %8886 = vmatmul.mubr.bf16.vlgmr.msra.gmra.mrb[128].mxu0 %v15929_v56 }
 0x6ba   :  { %8929 = vmatmul.mubr.bf16.vlgmr.msra.gmra.mrb[128].mxu1 %v15929_v56  ;;  %9333 = vmatpush1.bf16.msra.mxu0 %v13206_v23  ;;  %v13223_v56 = vld [vmem:[%s16595_s5 + $0x64c] ss:$16 sps:$4 sm:$0xff]   ;;  %v13296_v23 = vld [vmem:[%s16595_s5 + $0x7e0] ss:$16 sps:$4 sm:$0xff]  }
 0x6bb   :  { %9364 = vmatprep.mubr.bf16.mxu0 %v15993_v40  ;;  %9376 = vmatpush1.bf16.msra.mxu1 %v13209_v18  ;;  %v13299_v18 = vld [vmem:[%s16595_s5 + $0x7e8] ss:$16 sps:$4 sm:$0xff]  }
 0x6bc   :  { %9407 = vmatprep.mubr.bf16.mxu1 %v15993_v40  ;;  %9334 = vmatprep.subr.bf16.mxu0 %v13214_v24  ;;  %v13226_v40 = vld [vmem:[%s16595_s5 + $0x664] ss:$16 sps:$4 sm:$0xff]  }
 0x6bd   :  { %9377 = vmatprep.subr.bf16.mxu1 %v13217_v25  ;;  %v13302_v24 = vld [vmem:[%s16597_s7 + $0x40] sm:$0xff]  }
 0x6be   :  { %9335 = vmatpush1.bf16.msra.mxu0 %v13212_v41  ;;  %v13303_v25 = vld [vmem:[%s16597_s7 + $0xc0] sm:$0xff]  }
 0x6bf   :  { %9378 = vmatpush1.bf16.msra.mxu1 %v13215_v26  ;;  %9336 = vmatprep.subr.bf16.mxu0 %v13220_v28  ;;  %v13304_v41 = vld [vmem:[%s16597_s7] sm:$0xff]   ;;  %v13306_v28 = vld [vmem:[%s16597_s7 + $0x48] sm:$0xff]  }
 0x6c0   :  { %9379 = vmatprep.subr.bf16.mxu1 %v13223_v56  ;;  %v13305_v26 = vld [vmem:[%s16597_s7 + $0x80] sm:$0xff]   ;;  %v13307_v56 = vld [vmem:[%s16597_s7 + $0xc8] sm:$0xff]  }
 0x6c2   :  { %9337 = vmatpush1.bf16.msra.mxu0 %v13218_v29  ;;  %v13308_v29 = vld [vmem:[%s16597_s7 + $0x8] sm:$0xff]  }
 0x6c3   :  { %9380 = vmatpush1.bf16.msra.mxu1 %v13221_v31  ;;  %9338 = vmatprep.subr.bf16.mxu0 %v13226_v40  ;;  %v13309_v31 = vld [vmem:[%s16597_s7 + $0x88] sm:$0xff]   ;;  %v13310_v40 = vld [vmem:[%s16597_s7 + $0x50] sm:$0xff]  }
 0x6c4   :  { %9381 = vmatprep.subr.bf16.mxu1 %v13229_v27  ;;  %v13312_v27 = vld [vmem:[%s16597_s7 + $0x10] sm:$0xff]  }
 0x6c6   :  { %9339 = vmatpush1.bf16.msra.mxu0 %v13224_v12  ;;  %v13313_v12 = vld [vmem:[%s16597_s7 + $0x90] sm:$0xff]  }
 0x6c7   :  { %9382 = vmatpush1.bf16.msra.mxu1 %v13227_v32  ;;  %9340 = vmatprep.subr.bf16.mxu0 %v13232_v33  ;;  %v13314_v32 = vld [vmem:[%s16597_s7 + $0x58] sm:$0xff]  }
 0x6c8   :  { %9383 = vmatprep.subr.bf16.mxu1 %v13235_v34  ;;  %v13315_v33 = vld [vmem:[%s16597_s7 + $0xd8] sm:$0xff]  }
 0x6c9   :  { %v13316_v34 = vld [vmem:[%s16597_s7 + $0x18] sm:$0xff]  }
 0x6ca   :  { %9341 = vmatpush1.bf16.msra.mxu0 %v13230_v7  ;;  %v13317_v7 = vld [vmem:[%s16597_s7 + $0x98] sm:$0xff]  }
 0x6cb   :  { %9384 = vmatpush1.bf16.msra.mxu1 %v13233_v9  ;;  %9342 = vmatprep.subr.bf16.mxu0 %v13238_v44  ;;  %v13318_v9 = vld [vmem:[%s16597_s7 + $0x60] sm:$0xff]  }
 0x6cc   :  { %9385 = vmatprep.subr.bf16.mxu1 %v13241_v50  ;;  %v13319_v44 = vld [vmem:[%s16597_s7 + $0xe0] sm:$0xff]  }
 0x6cd   :  { %v13320_v50 = vld [vmem:[%s16597_s7 + $0x20] sm:$0xff]  }
 0x6ce   :  { %9343 = vmatpush1.bf16.msra.mxu0 %v13236_v5  ;;  %v13321_v5 = vld [vmem:[%s16597_s7 + $0xa0] sm:$0xff]  }
 0x6cf   :  { %9386 = vmatpush1.bf16.msra.mxu1 %v13239_v35  ;;  %9344 = vmatprep.subr.bf16.mxu0 %v13244_v36  ;;  %v13322_v35 = vld [vmem:[%s16597_s7 + $0x68] sm:$0xff]  }
 0x6d0   :  { %9387 = vmatprep.subr.bf16.mxu1 %v13247_v37  ;;  %v13323_v36 = vld [vmem:[%s16597_s7 + $0xe8] sm:$0xff]  }
 0x6d1   :  { %v13324_v37 = vld [vmem:[%s16597_s7 + $0x28] sm:$0xff]  }
 0x6d2   :  { %9345 = vmatpush1.bf16.msra.mxu0 %v13242_v42  ;;  %v13325_v42 = vld [vmem:[%s16597_s7 + $0xa8] sm:$0xff]  }
 0x6d3   :  { %9388 = vmatpush1.bf16.msra.mxu1 %v13245_v3  ;;  %9346 = vmatprep.subr.bf16.mxu0 %v13250_v14  ;;  %v13326_v3 = vld [vmem:[%s16597_s7 + $0x70] sm:$0xff]  }
 0x6d4   :  { %9389 = vmatprep.subr.bf16.mxu1 %v13253_v60  ;;  %v13327_v14 = vld [vmem:[%s16597_s7 + $0xf0] sm:$0xff]  }
 0x6d5   :  { %v13328_v60 = vld [vmem:[%s16597_s7 + $0x30] sm:$0xff]  }
 0x6d6   :  { %9347 = vmatpush1.bf16.msra.mxu0 %v13248_v46  ;;  %v13329_v46 = vld [vmem:[%s16597_s7 + $0xb0] sm:$0xff]  }
 0x6d7   :  { %9390 = vmatpush1.bf16.msra.mxu1 %v13251_v48  ;;  %9348 = vmatprep.subr.bf16.mxu0 %v13256_v1  ;;  %v13330_v48 = vld [vmem:[%s16597_s7 + $0x78] sm:$0xff]  }
 0x6d8   :  { %9391 = vmatprep.subr.bf16.mxu1 %v13259_v52  ;;  %v13331_v1 = vld [vmem:[%s16597_s7 + $0xf8] ss:$0 sps:$4 sm:$0x33]  }
 0x6d9   :  { %v13332_v52 = vld [vmem:[%s16597_s7 + $0x38] sm:$0xff]  }
 0x6da   :  { %9349 = vmatpush1.bf16.msra.mxu0 %v13254_v54  ;;  %v13333_v54 = vld [vmem:[%s16597_s7 + $0xb8] sm:$0xff]  }
 0x6db   :  { %9392 = vmatpush1.bf16.msra.mxu1 %v13257_v49  ;;  %9350 = vmatprep.subr.bf16.mxu0 %v13262_v45  ;;  %v9426_v49 = vld [vmem:[%s16598_s6] sm:$0xf]  ;;  %v9438_v45 = vsub.s32 2, %v14625_v47 }
 0x6dc   :  { %9393 = vmatprep.subr.bf16.mxu1 %v13265_v38  ;;  %v9442_v38 = vsub.s32 3, %v14625_v47 }
 0x6de   :  { %9351 = vmatpush1.bf16.msra.mxu0 %v13260_v39  ;;  %v9431_v39 = vrot.slane %v9426_v49, %v14628_v51 }
 0x6df   :  { %9394 = vmatpush1.bf16.msra.mxu1 %v13263_v43  ;;  %9352 = vmatprep.subr.bf16.mxu0 %v13268_v55  ;;  %v9439_v43 = vrot.slane %v9426_v49, %v9438_v45  ;;  %v9435_v55 = vrot.slane %v9426_v49, %v14634_v53 }
 0x6e0   :  { %9395 = vmatprep.subr.bf16.mxu1 %v13271_v61  ;;  %v9443_v61 = vrot.slane %v9426_v49, %v9442_v38 }
 0x6e2   :  { %9353 = vmatpush1.bf16.msra.mxu0 %v13266_v62 }
 0x6e3   :  { %9396 = vmatpush1.bf16.msra.mxu1 %v13269_v0  ;;  %9354 = vmatprep.subr.bf16.mxu0 %v13274_v58 }
 0x6e4   :  { %9397 = vmatprep.subr.bf16.mxu1 %v13277_v57 }
 0x6e6   :  { %9355 = vmatpush1.bf16.msra.mxu0 %v13272_v59 }
 0x6e7   :  { %9398 = vmatpush1.bf16.msra.mxu1 %v13275_v63  ;;  %9356 = vmatprep.subr.bf16.mxu0 %v13280_v6 }
 0x6e8   :  { %9399 = vmatprep.subr.bf16.mxu1 %v13283_v4 }
 0x6ea   :  { %9357 = vmatpush1.bf16.msra.mxu0 %v13278_v8 }
 0x6eb   :  { %9400 = vmatpush1.bf16.msra.mxu1 %v13281_v10  ;;  %9358 = vmatprep.subr.bf16.mxu0 %v13286_v11 }
 0x6ec   :  { %9401 = vmatprep.subr.bf16.mxu1 %v13289_v13 }
 0x6ee   :  { %9359 = vmatpush1.bf16.msra.mxu0 %v13284_v15 }
 0x6ef   :  { %9402 = vmatpush1.bf16.msra.mxu1 %v13287_v30  ;;  %9360 = vmatprep.subr.bf16.mxu0 %v13292_v16 }
 0x6f0   :  { %9403 = vmatprep.subr.bf16.mxu1 %v13295_v2 }
 0x6f2   :  { %9361 = vmatpush1.bf16.msra.mxu0 %v13290_v19 }
 0x6f3   :  { %9404 = vmatpush1.bf16.msra.mxu1 %v13293_v21  ;;  %9362 = vmatprep.subr.bf16.mxu0 %v13298_v22 }
 0x6f4   :  { %9405 = vmatprep.subr.bf16.mxu1 %v13301_v20 }
 0x6f6   :  { %9363 = vmatpush1.bf16.msra.mxu0 %v13296_v23 }
 0x6f7   :  { %9406 = vmatpush1.bf16.msra.mxu1 %v13299_v18  ;;  %11256 = vmatprep.subr.bf16.mxu0 %v13302_v24 }
 0x6f8   :  { %11278 = vmatprep.subr.bf16.mxu1 %v13303_v25 }
 0x6f9   :  { %9365 = vmatmul.mubr.bf16.vlgmr.msra.gmra.mrb[128].mxu0 %v15985_v17 }
 0x6fa   :  { %9408 = vmatmul.mubr.bf16.vlgmr.msra.gmra.mrb[128].mxu1 %v15985_v17  ;;  %11257 = vmatpush3.bf16.msra.mxu0 %v13304_v41  ;;  %v13311_v17 = vld [vmem:[%s16597_s7 + $0xd0] sm:$0xff]  }
 0x6fb   :  { %11279 = vmatpush3.bf16.msra.mxu1 %v13305_v26  ;;  %11258 = vmatprep.subr.bf16.mxu0 %v13306_v28 }
 0x6fc   :  { %11280 = vmatprep.subr.bf16.mxu1 %v13307_v56  ;;  %v11222_v56 = vld [vmem:[%s16599_s8] ss:$0 sm:$0xff] }
 0x6fe   :  { %11259 = vmatpush3.bf16.msra.mxu0 %v13308_v29 }
 0x6ff   :  { %11281 = vmatpush3.bf16.msra.mxu1 %v13309_v31  ;;  %11260 = vmatprep.subr.bf16.mxu0 %v13310_v40 }
 0x700   :  { %11282 = vmatprep.subr.bf16.mxu1 %v13311_v17 }
 0x702   :  { %11261 = vmatpush3.bf16.msra.mxu0 %v13312_v27 }
 0x703   :  { %11283 = vmatpush3.bf16.msra.mxu1 %v13313_v12  ;;  %11262 = vmatprep.subr.bf16.mxu0 %v13314_v32 }
 0x704   :  { %11284 = vmatprep.subr.bf16.mxu1 %v13315_v33 }
 0x706   :  { %11263 = vmatpush3.bf16.msra.mxu0 %v13316_v34 }
 0x707   :  { %11285 = vmatpush3.bf16.msra.mxu1 %v13317_v7  ;;  %11264 = vmatprep.subr.bf16.mxu0 %v13318_v9 }
 0x708   :  { %11286 = vmatprep.subr.bf16.mxu1 %v13319_v44 }
 0x70a   :  { %11265 = vmatpush3.bf16.msra.mxu0 %v13320_v50 }
 0x70b   :  { %11287 = vmatpush3.bf16.msra.mxu1 %v13321_v5  ;;  %11266 = vmatprep.subr.bf16.mxu0 %v13322_v35 }
 0x70c   :  { %11288 = vmatprep.subr.bf16.mxu1 %v13323_v36 }
 0x70e   :  { %11267 = vmatpush3.bf16.msra.mxu0 %v13324_v37 }
 0x70f   :  { %11289 = vmatpush3.bf16.msra.mxu1 %v13325_v42  ;;  %11268 = vmatprep.subr.bf16.mxu0 %v13326_v3 }
 0x710   :  { %11290 = vmatprep.subr.bf16.mxu1 %v13327_v14 }
 0x712   :  { %11269 = vmatpush3.bf16.msra.mxu0 %v13328_v60 }
 0x713   :  { %11291 = vmatpush3.bf16.msra.mxu1 %v13329_v46  ;;  %11270 = vmatprep.subr.bf16.mxu0 %v13330_v48 }
 0x714   :  { %12348 = vmatprep.subr.msk.bf16.mxu1 %vm9731_vm2, %v13331_v1 }
 0x716   :  { %11271 = vmatpush3.bf16.msra.mxu0 %v13332_v52 }
 0x717   :  { %11293 = vmatpush3.bf16.msra.mxu1 %v13333_v54 }
 0x7cc   :  { %v9366_v62 = vpop.f32.mrb[128].mxu0 }
 0x7cd   :  { %v9448_v0 = vadd.f32 %v9431_v39, %v9366_v62  ;;  %v9409_v58 = vpop.f32.mrb[128].mxu1  ;;  %v9368_v57 = vpop.f32.mrb[129].mxu0 }
 0x7ce   :  { %v9450_v59 = vadd.f32 %v9439_v43, %v9409_v58  ;;  %v9449_v63 = vadd.f32 %v9435_v55, %v9368_v57  ;;  %v9411_v6 = vpop.f32.mrb[129].mxu1  ;;  %v9370_v4 = vpop.f32.mrb[130].mxu0 }
 0x7cf   :  { %v9451_v8 = vadd.f32 %v9443_v61, %v9411_v6  ;;  %v9452_v10 = vadd.f32 %v9431_v39, %v9370_v4  ;;  %v9413_v11 = vpop.f32.mrb[130].mxu1  ;;  %v9372_v13 = vpop.f32.mrb[131].mxu0  ;;  %v9456_v51 = vmax.f32 %v9448_v0, 0.0 }
 0x7d0   :  { %v9454_v15 = vadd.f32 %v9439_v43, %v9413_v11  ;;  %v9453_v47 = vadd.f32 %v9435_v55, %v9372_v13  ;;  %v9415_v30 = vpop.f32.mrb[131].mxu1  ;;  %v9458_v53 = vmax.f32 %v9450_v59, 0.0  ;;  %v9457_v19 = vmax.f32 %v9449_v63, 0.0 }
 0x7d1   :  { %v9460_v16 = vmax.f32 %v9452_v10, 0.0  ;;  %v9455_v2 = vadd.f32 %v9443_v61, %v9415_v30  ;;  %v9459_v20 = vmax.f32 %v9451_v8, 0.0 }
 0x7d2   :  { %v9462_v21 = vmax.f32 %v9454_v15, 0.0  ;;  %v9461_v22 = vmax.f32 %v9453_v47, 0.0 }
 0x7d3   :  { %v9464_v23 = vpack.c.bf16 %v9460_v16, %v9456_v51  ;;  %v9463_v18 = vmax.f32 %v9455_v2, 0.0 }
 0x7d4   :  { %v9466_v24 = vpack.c.bf16 %v9462_v21, %v9458_v53  ;;  %v9465_v25 = vpack.c.bf16 %v9461_v22, %v9457_v19 }
 0x7d5   :  { %v9467_v41 = vpack.c.bf16 %v9463_v18, %v9459_v20 }
 0x7d6   :  { %9767 = vmatprep.mubr.bf16.mxu0 %v9465_v25 }
 0x7d7   :  { %11255 = vmatprep.mubr.msk.bf16.mxu1 %vm9727_vm3, %v9467_v41  ;;  %9768 = vmatmul.mubr.bf16.vlgmr.msra.gmra.mrb[132].mxu0 %v9464_v23 }
 0x7d8   :  { %9809 = vmatmul.mubr.bf16.vlgmr.msra.gmra.mrb[132].mxu1 %v9466_v24 }
 0x8aa   :  { %v11272_v26 = vpop.f32.mrb[132].mxu0 }
 0x8ab   :  { %v11294_v28 = vpop.f32.mrb[132].mxu1  ;;  %v11273_v29 = vpop.f32.mrb[133].mxu0 }
 0x8ac   :  { %v11274_v31 = vadd.f32 %v11273_v29, %v11272_v26  ;;  %v11295_v40 = vpop.f32.mrb[133].mxu1  ;;  %v11275_v17 = vpop.f32.mrb[134].mxu0 }
 0x8ad   :  { %v11296_v27 = vadd.f32 %v11295_v40, %v11294_v28  ;;  %v11297_v12 = vpop.f32.mrb[134].mxu1  ;;  %v11276_v32 = vpop.f32.mrb[135].mxu0 }
 0x8ae   :  { %v9770_v33 = vadd.f32 %v11274_v31, %v11222_v56  ;;  %v11277_v34 = vadd.f32 %v11276_v32, %v11275_v17  ;;  %v11298_v7 = vpop.f32.mrb[135].mxu1 }
 0x8af   :  { %v11299_v9 = vadd.f32 %v11298_v7, %v11297_v12 }
 0x8b0   :  { %v9773_v44 = vadd.f32 %v11277_v34, %v11222_v56  ;;  %v9811_v50 = vadd.f32 %v11296_v27, %v9770_v33 }
 0x8b2   :  { %v9818_v5 = vsel %vm9817_vm4, %v9811_v50, -inf  ;;  %v9814_v35 = vadd.f32 %v11299_v9, %v9773_v44 }
 0x8b3   :  { %9819 = vmax.xlane.f32.xlu0 %v9818_v5 }
 0x8b4   :  { %v9821_v36 = vsel %vm9817_vm4, %v9814_v35, -inf }
 0x8b7   :  { %9822 = vmax.xlane.f32.xlu0 %v9821_v36 }
 0x940   :  { %v9820_v37 = vpop.xlane.xlu0 %9819 }
 0x941   :  { %v9824_v42 = vsub.f32 %v9811_v50, %v9820_v37 }
 0x943   :  { %v9826_v3 = vmul.f32 1.442695, %v9824_v42 }
 0x944   :  { %v9823_v14 = vpop.xlane.xlu0 %9822 }
 0x945   :  { %13334 = vpow2.f32 %v9826_v3  ;;  %v9825_v60 = vsub.f32 %v9814_v35, %v9823_v14 }
 0x947   :  { %v9828_v46 = vmul.f32 1.442695, %v9825_v60 }
 0x949   :  { %13336 = vpow2.f32 %v9828_v46 }
 0x94f   :  { %v13335_v48 = vpop.eup %13334 }
 0x950   :  { %v9830_v1 = vsel %vm9817_vm4, %v13335_v48, 0.0 }
 0x951   :  { %9831 = vadd.xlane.f32.xlu1 %v9830_v1 }
 0x953   :  { %v13337_v52 = vpop.eup %13336 }
 0x954   :  { %v9833_v54 = vsel %vm9817_vm4, %v13337_v52, 0.0 }
 0x955   :  { %9834 = vadd.xlane.f32.xlu1 %v9833_v54 }
 0x9de   :  { %v9832_v49 = vpop.xlane.xlu1 %9831 }
 0x9df   :  { %13338 = vlog2.f32 %v9832_v49 }
 0x9e2   :  { %v9835_v45 = vpop.xlane.xlu1 %9834 }
 0x9e3   :  { %13340 = vlog2.f32 %v9835_v45 }
 0x9e9   :  { %v13339_v38 = vpop.eup %13338 }
 0x9ea   :  { %v9837_v39 = vmul.f32 0.6931472, %v13339_v38 }
 0x9ec   :  { %v9840_v43 = vsub.f32 %v9824_v42, %v9837_v39 }
 0x9ed   :  { %v13341_v55 = vpop.eup %13340 }
 0x9ee   :  { %9842 = vst.msk [vmem:[%s16600_s9] sm:$0xff] %vm9817_vm4, %v9840_v43  ;;  %v9839_v61 = vmul.f32 0.6931472, %v13341_v55 }
 0x9f0   :  { %v9841_v62 = vsub.f32 %v9825_v60, %v9839_v61 }
 0x9f2   :  { %9843 = vst.msk [vmem:[%s16600_s9 + $0x8] sm:$0xff] %vm9817_vm4, %v9841_v62 }

</bundles_post_ra>
